<compile_context>
chip_gen: v7x
topology: tpu7x:2x2x1
jax: 0.10.0
libtpu: 0.0.40
codegen_flags: <defaults>
</compile_context>

<pallas_src>
import functools

import jax
import jax.numpy as jnp
from jax.experimental import pallas as pl
from jax.experimental.pallas import tpu as pltpu

_INV_SQRT2 = 0.7071067811865476
_PARALLEL = pltpu.CompilerParams(dimension_semantics=("parallel",))
_ARBITRARY = pltpu.CompilerParams(dimension_semantics=("arbitrary",))


# --------------------------------------------------------------------------- small helpers

def _row_block(rows):
    """Largest row tile that evenly divides `rows` (keeps >=2 grid steps when possible)."""
    for cand in (512, 256, 128, 64, 32, 16, 8):
        if rows > cand and rows % cand == 0:
            return cand
    return rows


def _row(v):
    return v.reshape(1, -1)


def _layer_norm(x, w, b, eps):
    mu = jnp.mean(x, axis=-1, keepdims=True)
    xc = x - mu
    var = jnp.mean(xc * xc, axis=-1, keepdims=True)
    return xc * jax.lax.rsqrt(var + eps) * w + b


def _gelu(x):  # exact (erf) GELU, matching torch.nn.GELU()
    return 0.5 * x * (1.0 + jax.lax.erf(x * _INV_SQRT2))


# --------------------------------------------------------------------------- fused kernels

def _stem_kernel(p_ref, keep_ref, w_ref, b_ref, lnw_ref, lnb_ref, o_ref, *, eps):
    """Stem Conv1d(k=s=stem_width) as patch-matmul + channels_first LN + mask."""
    x = p_ref[...].astype(jnp.float32)
    y = jnp.dot(x, w_ref[...], preferred_element_type=jnp.float32) + b_ref[...]
    y = _layer_norm(y, lnw_ref[...], lnb_ref[...], eps)
    o_ref[...] = (y * keep_ref[...]).astype(o_ref.dtype)


def stem_forward(patches, keep, w, b, ln_w, ln_b, *, eps=1e-6):
    rows, k = patches.shape
    d = w.shape[1]
    br = _row_block(rows)
    return pl.pallas_call(
        functools.partial(_stem_kernel, eps=eps),
        out_shape=jax.ShapeDtypeStruct((rows, d), patches.dtype),
        grid=(rows // br,),
        in_specs=[
            pl.BlockSpec((br, k), lambda i: (i, 0)),
            pl.BlockSpec((br, 1), lambda i: (i, 0)),
            pl.BlockSpec((k, d), lambda i: (0, 0)),
            pl.BlockSpec((1, d), lambda i: (0, 0)),
            pl.BlockSpec((1, d), lambda i: (0, 0)),
            pl.BlockSpec((1, d), lambda i: (0, 0)),
        ],
        out_specs=pl.BlockSpec((br, d), lambda i: (i, 0)),
        compiler_params=_PARALLEL,
    )(patches, keep, w, _row(b), _row(ln_w), _row(ln_b))


def _downsample_kernel(x_ref, keep_ref, lnw_ref, lnb_ref, w_ref, b_ref, o_ref, *, cin, eps):
    """MinkowskiLayerNorm + MinkowskiConvolution(k=2, s=2) + re-mask, fused.

    Input rows are contiguous position pairs: columns [:cin] = position 2j, [cin:] = 2j+1.
    """
    xp = x_ref[...].astype(jnp.float32)                 # (br, 2*cin)
    lnw = lnw_ref[...]
    lnb = lnb_ref[...]
    w = w_ref[...].astype(jnp.float32)                  # (2*cin, cout)
    ye = _layer_norm(xp[:, :cin], lnw, lnb, eps)        # even positions
    yo = _layer_norm(xp[:, cin:], lnw, lnb, eps)        # odd positions
    y = (jnp.dot(ye, w[:cin, :], preferred_element_type=jnp.float32)
         + jnp.dot(yo, w[cin:, :], preferred_element_type=jnp.float32)
         + b_ref[...])
    o_ref[...] = (y * keep_ref[...]).astype(o_ref.dtype)


def downsample_forward(pairs, keep, ln_w, ln_b, w, b, *, eps=1e-6):
    rows, two_cin = pairs.shape
    cin = two_cin // 2
    cout = w.shape[1]
    br = _row_block(rows)
    return pl.pallas_call(
        functools.partial(_downsample_kernel, cin=cin, eps=eps),
        out_shape=jax.ShapeDtypeStruct((rows, cout), pairs.dtype),
        grid=(rows // br,),
        in_specs=[
            pl.BlockSpec((br, two_cin), lambda i: (i, 0)),
            pl.BlockSpec((br, 1), lambda i: (i, 0)),
            pl.BlockSpec((1, cin), lambda i: (0, 0)),
            pl.BlockSpec((1, cin), lambda i: (0, 0)),
            pl.BlockSpec((two_cin, cout), lambda i: (0, 0)),
            pl.BlockSpec((1, cout), lambda i: (0, 0)),
        ],
        out_specs=pl.BlockSpec((br, cout), lambda i: (i, 0)),
        compiler_params=_PARALLEL,
    )(pairs, keep, _row(ln_w), _row(ln_b), w, _row(b))


def _sparse_block_kernel(x_ref, keep_ref,
                         dww_ref, dwb_ref, lnw_ref, lnb_ref,
                         w1_ref, b1_ref, gg_ref, gb_ref, w2_ref, b2_ref,
                         o_ref, pad_ref, *, seq_len, eps):
    """Whole SparseBlock fused: dwconv7 + LN + pwconv1/GELU + GRN + pwconv2 + mask + residual."""
    rows, c = x_ref.shape
    x = x_ref[...].astype(jnp.float32)                  # (R, C) block input (masked, zeros inactive)
    keep = keep_ref[...].astype(jnp.float32)            # (R, 1)
    w = dww_ref[...].astype(jnp.float32)                # (7, C)

    # within-sample position of every row (samples are contiguous, each seq_len long)
    pos = jax.lax.broadcasted_iota(jnp.int32, (rows, 1), 0) % seq_len

    # -- depthwise conv k=7, pad=3.  The +-3 halo lives in VMEM scratch; only the two 8-row
    #    halos are zero-filled, and taps that would cross a sample boundary are zeroed by a
    #    single position compare per tap.
    pad_ref[0:8, :] = jnp.zeros((8, c), jnp.float32)
    pad_ref[8 + rows:8 + rows + 8, :] = jnp.zeros((8, c), jnp.float32)
    pad_ref[8:8 + rows, :] = x
    acc = x * w[3:4, :]                                 # center tap straight from x
    for t in range(7):
        d = t - 3
        if d == 0:
            continue
        shifted = pad_ref[8 + d:8 + d + rows, :]
        valid = (pos >= -d) if d < 0 else (pos < seq_len - d)
        acc = acc + shifted * (valid.astype(jnp.float32) * w[t:t + 1, :])
    y = (acc + dwb_ref[...]) * keep

    # -- MinkowskiLayerNorm (per active coordinate, over channels)
    y = _layer_norm(y, lnw_ref[...], lnb_ref[...], eps) * keep

    # -- pwconv1 + GELU (mask before GRN so inactive rows contribute nothing to the reduction)
    h = jnp.dot(y, w1_ref[...], preferred_element_type=jnp.float32) + b1_ref[...]
    h = _gelu(h) * keep

    # -- MinkowskiGRN: L2 norm over every active coordinate of the whole batch.
    gx = jnp.sqrt(jnp.sum(h * h, axis=0, keepdims=True))        # (1, 4C)
    nx = gx / (jnp.mean(gx, axis=-1, keepdims=True) + 1e-6)
    h = gg_ref[...] * (h * nx) + gb_ref[...] + h                 # re-mask deferred to epilogue

    # -- pwconv2 + mask + residual, all in the epilogue
    y = jnp.dot(h, w2_ref[...], preferred_element_type=jnp.float32) + b2_ref[...]
    o_ref[...] = (x + y * keep).astype(o_ref.dtype)


def sparse_block_forward(x, keep, p, *, seq_len, eps=1e-6):
    rows, c = x.shape
    c4 = p["w1"].shape[1]
    return pl.pallas_call(
        functools.partial(_sparse_block_kernel, seq_len=seq_len, eps=eps),
        out_shape=jax.ShapeDtypeStruct((rows, c), x.dtype),
        grid=(1,),
        in_specs=[
            pl.BlockSpec((rows, c), lambda i: (0, 0)),   # x
            pl.BlockSpec((rows, 1), lambda i: (0, 0)),   # keep
            pl.BlockSpec((7, c), lambda i: (0, 0)),      # dw_w
            pl.BlockSpec((1, c), lambda i: (0, 0)),      # dw_b
            pl.BlockSpec((1, c), lambda i: (0, 0)),      # ln_w
            pl.BlockSpec((1, c), lambda i: (0, 0)),      # ln_b
            pl.BlockSpec((c, c4), lambda i: (0, 0)),     # w1
            pl.BlockSpec((1, c4), lambda i: (0, 0)),     # b1
            pl.BlockSpec((1, c4), lambda i: (0, 0)),     # grn gamma
            pl.BlockSpec((1, c4), lambda i: (0, 0)),     # grn beta
            pl.BlockSpec((c4, c), lambda i: (0, 0)),     # w2
            pl.BlockSpec((1, c), lambda i: (0, 0)),      # b2
        ],
        out_specs=pl.BlockSpec((rows, c), lambda i: (0, 0)),
        scratch_shapes=[pltpu.VMEM((rows + 16, c), jnp.float32)],
        compiler_params=_ARBITRARY,   # single grid step: GRN reduction spans the whole batch
    )(x, keep,
      p["dw_w"], _row(p["dw_b"]), _row(p["ln_w"]), _row(p["ln_b"]),
      p["w1"], _row(p["b1"]), _row(p["grn_g"]), _row(p["grn_b"]),
      p["w2"], _row(p["b2"]))


# ----------------------------------------------------------------------------- model forward

def sparse_convnextv2_forward(x, mask, params, *, dims, depths, stem_width, eps=1e-6):
    """SparseConvNeXtV2.forward.

    x    : (N, in_chans, W)   channels-first input
    mask : (N, num_patches)   1 = masked/removed, 0 = visible
    returns dense features (N, dims[-1], W // (stem_width * 2**(num_stages-1)))
    (== SparseTensor.dense()[0]: inactive positions are exactly zero).
    """
    n, cin, w_len = x.shape
    num_stages = len(depths)
    l0 = w_len // stem_width

    # upsample_mask: repeat_interleave(2**(num_stages-1)) to the stem resolution
    keep = 1.0 - jnp.repeat(mask.astype(x.dtype), 2 ** (num_stages - 1), axis=1)   # (N, L0)

    # stem Conv1d(k=stem_width, s=stem_width) as patch-matmul (channels-last rows)
    patches = x.reshape(n, cin, l0, stem_width).transpose(0, 2, 1, 3)
    patches = patches.reshape(n * l0, cin * stem_width)
    h = stem_forward(patches, keep.reshape(n * l0, 1),
                     params["stem_w"], params["stem_b"],
                     params["stem_ln_w"], params["stem_ln_b"], eps=eps)

    seq = l0
    for i in range(num_stages):
        if i > 0:
            dp = params["down"][i - 1]
            c_prev = dims[i - 1]
            # contiguous pairing: row j holds positions (2j, 2j+1) of one sample
            pairs = h.reshape(n * (seq // 2), 2 * c_prev)
            keep = keep[:, ::2]                     # mask is block-constant at every level
            seq = seq // 2
            h = downsample_forward(pairs, keep.reshape(n * seq, 1),
                                   dp["ln_w"], dp["ln_b"], dp["w"], dp["b"], eps=eps)
        keep_col = keep.reshape(n * seq, 1)
        for bp in params["stages"][i]:
            h = sparse_block_forward(h, keep_col, bp, seq_len=seq, eps=eps)

    return h.reshape(n, seq, dims[-1]).transpose(0, 2, 1)


# --------------------------------------------------------------------------------- parameters

def init_params(key, *, in_chans, dims, depths, stem_width):
    keys = iter(jax.random.split(key, 64))

    def nrm(shape, std=0.02):
        return (std * jax.random.normal(next(keys), shape)).astype(jnp.float32)

    def block_params(dim):
        return {
            "dw_w": nrm((7, dim)), "dw_b": jnp.zeros((dim,), jnp.float32),
            "ln_w": jnp.ones((dim,), jnp.float32), "ln_b": jnp.zeros((dim,), jnp.float32),
            "w1": nrm((dim, 4 * dim)), "b1": jnp.zeros((4 * dim,), jnp.float32),
            # MinkowskiGRN initialises gamma/beta to zeros (as in the PyTorch module)
            "grn_g": jnp.zeros((4 * dim,), jnp.float32),
            "grn_b": jnp.zeros((4 * dim,), jnp.float32),
            "w2": nrm((4 * dim, dim)), "b2": jnp.zeros((dim,), jnp.float32),
        }

    return {
        "stem_w": nrm((in_chans * stem_width, dims[0])),
        "stem_b": jnp.zeros((dims[0],), jnp.float32),
        "stem_ln_w": jnp.ones((dims[0],), jnp.float32),
        "stem_ln_b": jnp.zeros((dims[0],), jnp.float32),
        "down": [
            {
                "ln_w": jnp.ones((dims[i - 1],), jnp.float32),
                "ln_b": jnp.zeros((dims[i - 1],), jnp.float32),
                "w": nrm((2 * dims[i - 1], dims[i])),
                "b": jnp.zeros((dims[i],), jnp.float32),
            }
            for i in range(1, len(dims))
        ],
        "stages": [[block_params(dims[i]) for _ in range(depths[i])] for i in range(len(dims))],
    }


# --------------------------------------------------------------------------------------- main

if __name__ == "__main__":
    cfg = dict(in_chans=1, depths=[1, 1, 1, 1], dims=[8, 16, 32, 64], stem_width=4)
    n, w_len = 2, 128
    num_patches = w_len // (cfg["stem_width"] * 2 ** (len(cfg["depths"]) - 1))   # 4

    key = jax.random.PRNGKey(0)
    k_param, k_x, k_mask = jax.random.split(key, 3)

    params = init_params(k_param, in_chans=cfg["in_chans"], dims=cfg["dims"],
                         depths=cfg["depths"], stem_width=cfg["stem_width"])

    x = jax.random.normal(k_x, (n, cfg["in_chans"], w_len), jnp.float32)
    # binary mask at the final-stage resolution: 1 = masked (removed), 0 = visible
    mask = (jax.random.uniform(k_mask, (n, num_patches)) < 0.6).astype(jnp.float32)

    fwd = jax.jit(functools.partial(sparse_convnextv2_forward,
                                    dims=cfg["dims"], depths=cfg["depths"],
                                    stem_width=cfg["stem_width"]))
    out = fwd(x, mask, params)
    jax.block_until_ready(out)

    assert out.shape == (n, cfg["dims"][-1], num_patches), out.shape
    assert bool(jnp.all(jnp.isfinite(out)))
    # sparse semantics: masked coordinates must be exactly zero in the dense output
    masked_leak = float(jnp.max(jnp.abs(out) * mask[:, None, :]))
    assert masked_leak == 0.0, masked_leak
    print("KERNEL_OK")
</pallas_src>

<mosaic_0001>
module attributes {stable_mosaic.version = 11 : i64} {
  func.func @_stem_kernel(%arg0: i32, %arg1: memref<32x4xf32, #tpu.memory_space<vmem>>, %arg2: memref<32x1xf32, #tpu.memory_space<vmem>>, %arg3: memref<4x8xf32, #tpu.memory_space<vmem>>, %arg4: memref<1x8xf32, #tpu.memory_space<vmem>>, %arg5: memref<1x8xf32, #tpu.memory_space<vmem>>, %arg6: memref<1x8xf32, #tpu.memory_space<vmem>>, %arg7: memref<32x8xf32, #tpu.memory_space<vmem>>) attributes {dimension_semantics = [#tpu.dimension_semantics<parallel>], iteration_bounds = array<i64: 2>, scalar_prefetch = 0 : i64, scratch_operands = 0 : i64, tpu.core_type = #tpu.core_type<tc>, window_params = [{transform_indices = @transform_0, window_bounds = array<i64: 32, 4>}, {transform_indices = @transform_1, window_bounds = array<i64: 32, 1>}, {pipeline_mode = #tpu.pipeline_mode<synchronous>, transform_indices = @transform_2, window_bounds = array<i64: 4, 8>}, {pipeline_mode = #tpu.pipeline_mode<synchronous>, transform_indices = @transform_3, window_bounds = array<i64: 1, 8>}, {pipeline_mode = #tpu.pipeline_mode<synchronous>, transform_indices = @transform_4, window_bounds = array<i64: 1, 8>}, {pipeline_mode = #tpu.pipeline_mode<synchronous>, transform_indices = @transform_5, window_bounds = array<i64: 1, 8>}, {transform_indices = @transform_6, window_bounds = array<i64: 32, 8>}]} {
    %c0 = arith.constant 0 : index
    %c0_0 = arith.constant 0 : index
    %0 = vector.load %arg1[%c0, %c0_0] : memref<32x4xf32, #tpu.memory_space<vmem>>, vector<32x4xf32>
    %c0_1 = arith.constant 0 : index
    %c0_2 = arith.constant 0 : index
    %1 = vector.load %arg3[%c0_1, %c0_2] : memref<4x8xf32, #tpu.memory_space<vmem>>, vector<4x8xf32>
    %cst = arith.constant dense<0.000000e+00> : vector<32x8xf32>
    %2 = tpu.matmul %0, %1, %cst {dimension_numbers = #tpu.dot_dimension_numbers<[1], [0], [0], [1], [0, 0, 1, 1], [], []>} : vector<32x4xf32>, vector<4x8xf32>, vector<32x8xf32> -> vector<32x8xf32>
    %c0_3 = arith.constant 0 : index
    %c0_4 = arith.constant 0 : index
    %3 = vector.load %arg4[%c0_3, %c0_4] : memref<1x8xf32, #tpu.memory_space<vmem>>, vector<1x8xf32>
    %4 = vector.broadcast %3 : vector<1x8xf32> to vector<32x8xf32>
    %5 = arith.addf %2, %4 : vector<32x8xf32>
    %c0_5 = arith.constant 0 : index
    %c0_6 = arith.constant 0 : index
    %6 = vector.load %arg5[%c0_5, %c0_6] : memref<1x8xf32, #tpu.memory_space<vmem>>, vector<1x8xf32>
    %c0_7 = arith.constant 0 : index
    %c0_8 = arith.constant 0 : index
    %7 = vector.load %arg6[%c0_7, %c0_8] : memref<1x8xf32, #tpu.memory_space<vmem>>, vector<1x8xf32>
    %cst_9 = arith.constant dense<0.000000e+00> : vector<32xf32>
    %8 = vector.multi_reduction <add>, %5, %cst_9 [1] : vector<32x8xf32> to vector<32xf32>
    %9 = vector.shape_cast %8 : vector<32xf32> to vector<32x1xf32>
    %cst_10 = arith.constant 8.000000e+00 : f32
    %10 = vector.broadcast %cst_10 : f32 to vector<32x1xf32>
    %11 = arith.divf %9, %10 : vector<32x1xf32>
    %12 = vector.broadcast %11 : vector<32x1xf32> to vector<32x8xf32>
    %13 = arith.subf %5, %12 : vector<32x8xf32>
    %14 = arith.mulf %13, %13 : vector<32x8xf32>
    %cst_11 = arith.constant dense<0.000000e+00> : vector<32xf32>
    %15 = vector.multi_reduction <add>, %14, %cst_11 [1] : vector<32x8xf32> to vector<32xf32>
    %16 = vector.shape_cast %15 : vector<32xf32> to vector<32x1xf32>
    %cst_12 = arith.constant 8.000000e+00 : f32
    %17 = vector.broadcast %cst_12 : f32 to vector<32x1xf32>
    %18 = arith.divf %16, %17 : vector<32x1xf32>
    %cst_13 = arith.constant 9.99999997E-7 : f32
    %19 = vector.broadcast %cst_13 : f32 to vector<32x1xf32>
    %20 = arith.addf %18, %19 : vector<32x1xf32>
    %21 = math.rsqrt %20 : vector<32x1xf32>
    %22 = vector.broadcast %21 : vector<32x1xf32> to vector<32x8xf32>
    %23 = arith.mulf %13, %22 : vector<32x8xf32>
    %24 = vector.broadcast %6 : vector<1x8xf32> to vector<32x8xf32>
    %25 = arith.mulf %23, %24 : vector<32x8xf32>
    %26 = vector.broadcast %7 : vector<1x8xf32> to vector<32x8xf32>
    %27 = arith.addf %25, %26 : vector<32x8xf32>
    %c0_14 = arith.constant 0 : index
    %c0_15 = arith.constant 0 : index
    %28 = vector.load %arg2[%c0_14, %c0_15] : memref<32x1xf32, #tpu.memory_space<vmem>>, vector<32x1xf32>
    %29 = vector.broadcast %28 : vector<32x1xf32> to vector<32x8xf32>
    %30 = arith.mulf %27, %29 : vector<32x8xf32>
    %c0_16 = arith.constant 0 : index
    %c0_17 = arith.constant 0 : index
    %31 = vector.load %arg7[%c0_16, %c0_17] : memref<32x8xf32, #tpu.memory_space<vmem>>, vector<32x8xf32>
    tpu.vector_store %arg7[%c0_16, %c0_17], %30 {strides = array<i32>} : memref<32x8xf32, #tpu.memory_space<vmem>>, vector<32x8xf32>,
    return
  }
  func.func @transform_0(%arg0: i32) -> (i32, i32) {
    %c0_i32 = arith.constant 0 : i32
    %c0_i32_0 = arith.constant 0 : i32
    return %arg0, %c0_i32 : i32, i32
  }
  func.func @transform_1(%arg0: i32) -> (i32, i32) {
    %c0_i32 = arith.constant 0 : i32
    %c0_i32_0 = arith.constant 0 : i32
    return %arg0, %c0_i32 : i32, i32
  }
  func.func @transform_2(%arg0: i32) -> (i32, i32) {
    %c0_i32 = arith.constant 0 : i32
    %c0_i32_0 = arith.constant 0 : i32
    %c0_i32_1 = arith.constant 0 : i32
    return %c0_i32, %c0_i32_0 : i32, i32
  }
  func.func @transform_3(%arg0: i32) -> (i32, i32) {
    %c0_i32 = arith.constant 0 : i32
    %c0_i32_0 = arith.constant 0 : i32
    %c0_i32_1 = arith.constant 0 : i32
    return %c0_i32, %c0_i32_0 : i32, i32
  }
  func.func @transform_4(%arg0: i32) -> (i32, i32) {
    %c0_i32 = arith.constant 0 : i32
    %c0_i32_0 = arith.constant 0 : i32
    %c0_i32_1 = arith.constant 0 : i32
    return %c0_i32, %c0_i32_0 : i32, i32
  }
  func.func @transform_5(%arg0: i32) -> (i32, i32) {
    %c0_i32 = arith.constant 0 : i32
    %c0_i32_0 = arith.constant 0 : i32
    %c0_i32_1 = arith.constant 0 : i32
    return %c0_i32, %c0_i32_0 : i32, i32
  }
  func.func @transform_6(%arg0: i32) -> (i32, i32) {
    %c0_i32 = arith.constant 0 : i32
    %c0_i32_0 = arith.constant 0 : i32
    return %arg0, %c0_i32 : i32, i32
  }
}

module attributes {stable_mosaic.version = 11 : i64} {
  func.func @_sparse_block_kernel(%arg0: i32, %arg1: memref<64x8xf32, #tpu.memory_space<vmem>>, %arg2: memref<64x1xf32, #tpu.memory_space<vmem>>, %arg3: memref<7x8xf32, #tpu.memory_space<vmem>>, %arg4: memref<1x8xf32, #tpu.memory_space<vmem>>, %arg5: memref<1x8xf32, #tpu.memory_space<vmem>>, %arg6: memref<1x8xf32, #tpu.memory_space<vmem>>, %arg7: memref<8x32xf32, #tpu.memory_space<vmem>>, %arg8: memref<1x32xf32, #tpu.memory_space<vmem>>, %arg9: memref<1x32xf32, #tpu.memory_space<vmem>>, %arg10: memref<1x32xf32, #tpu.memory_space<vmem>>, %arg11: memref<32x8xf32, #tpu.memory_space<vmem>>, %arg12: memref<1x8xf32, #tpu.memory_space<vmem>>, %arg13: memref<64x8xf32, #tpu.memory_space<vmem>>, %arg14: memref<80x8xf32, #tpu.memory_space<vmem>>) attributes {dimension_semantics = [#tpu.dimension_semantics<arbitrary>], iteration_bounds = array<i64: 1>, scalar_prefetch = 0 : i64, scratch_operands = 1 : i64, tpu.core_type = #tpu.core_type<tc>, window_params = [{pipeline_mode = #tpu.pipeline_mode<synchronous>, transform_indices = @transform_0, window_bounds = array<i64: 64, 8>}, {pipeline_mode = #tpu.pipeline_mode<synchronous>, transform_indices = @transform_1, window_bounds = array<i64: 64, 1>}, {pipeline_mode = #tpu.pipeline_mode<synchronous>, transform_indices = @transform_2, window_bounds = array<i64: 7, 8>}, {pipeline_mode = #tpu.pipeline_mode<synchronous>, transform_indices = @transform_3, window_bounds = array<i64: 1, 8>}, {pipeline_mode = #tpu.pipeline_mode<synchronous>, transform_indices = @transform_4, window_bounds = array<i64: 1, 8>}, {pipeline_mode = #tpu.pipeline_mode<synchronous>, transform_indices = @transform_5, window_bounds = array<i64: 1, 8>}, {pipeline_mode = #tpu.pipeline_mode<synchronous>, transform_indices = @transform_6, window_bounds = array<i64: 8, 32>}, {pipeline_mode = #tpu.pipeline_mode<synchronous>, transform_indices = @transform_7, window_bounds = array<i64: 1, 32>}, {pipeline_mode = #tpu.pipeline_mode<synchronous>, transform_indices = @transform_8, window_bounds = array<i64: 1, 32>}, {pipeline_mode = #tpu.pipeline_mode<synchronous>, transform_indices = @transform_9, window_bounds = array<i64: 1, 32>}, {pipeline_mode = #tpu.pipeline_mode<synchronous>, transform_indices = @transform_10, window_bounds = array<i64: 32, 8>}, {pipeline_mode = #tpu.pipeline_mode<synchronous>, transform_indices = @transform_11, window_bounds = array<i64: 1, 8>}, {pipeline_mode = #tpu.pipeline_mode<synchronous>, transform_indices = @transform_12, window_bounds = array<i64: 64, 8>}]} {
    %c0 = arith.constant 0 : index
    %c0_0 = arith.constant 0 : index
    %0 = vector.load %arg1[%c0, %c0_0] : memref<64x8xf32, #tpu.memory_space<vmem>>, vector<64x8xf32>
    %c0_1 = arith.constant 0 : index
    %c0_2 = arith.constant 0 : index
    %1 = vector.load %arg2[%c0_1, %c0_2] : memref<64x1xf32, #tpu.memory_space<vmem>>, vector<64x1xf32>
    %c0_3 = arith.constant 0 : index
    %c0_4 = arith.constant 0 : index
    %2 = vector.load %arg3[%c0_3, %c0_4] : memref<7x8xf32, #tpu.memory_space<vmem>>, vector<7x8xf32>
    %3 = tpu.iota {dimensions = array<i32: 0>} : vector<64x1xi32>
    %c32_i32 = arith.constant 32 : i32
    %c0_i32 = arith.constant 0 : i32
    %4 = arith.cmpi eq, %c32_i32, %c0_i32 : i32
    %c1_i32 = arith.constant 1 : i32
    %5 = arith.select %4, %c1_i32, %c32_i32 : i32
    %6 = vector.broadcast %5 : i32 to vector<64x1xi32>
    %7 = arith.remsi %3, %6 : vector<64x1xi32>
    %c0_i32_5 = arith.constant 0 : i32
    %8 = vector.broadcast %c0_i32_5 : i32 to vector<64x1xi32>
    %9 = arith.cmpi ne, %7, %8 : vector<64x1xi32>
    %c0_i32_6 = arith.constant 0 : i32
    %10 = vector.broadcast %c0_i32_6 : i32 to vector<64x1xi32>
    %11 = arith.cmpi slt, %7, %10 : vector<64x1xi32>
    %c0_i32_7 = arith.constant 0 : i32
    %12 = arith.cmpi slt, %5, %c0_i32_7 : i32
    %13 = vector.broadcast %12 : i1 to vector<64x1xi1>
    %14 = vector.broadcast %13 : vector<64x1xi1> to vector<64x1xi1>
    %15 = arith.xori %11, %14 : vector<64x1xi1>
    %16 = arith.andi %15, %9 : vector<64x1xi1>
    %17 = vector.broadcast %5 : i32 to vector<64x1xi32>
    %18 = arith.addi %7, %17 : vector<64x1xi32>
    %19 = arith.select %16, %18, %7 : vector<64x1xi1>, vector<64x1xi32>
    %cst = arith.constant 0.000000e+00 : f32
    %20 = vector.broadcast %cst : f32 to vector<8x8xf32>
    %c0_8 = arith.constant 0 : index
    %c0_9 = arith.constant 0 : index
    %21 = vector.load %arg14[%c0_8, %c0_9] : memref<80x8xf32, #tpu.memory_space<vmem>>, vector<8x8xf32>
    tpu.vector_store %arg14[%c0_8, %c0_9], %20 {strides = array<i32>} : memref<80x8xf32, #tpu.memory_space<vmem>>, vector<8x8xf32>,
    %cst_10 = arith.constant 0.000000e+00 : f32
    %22 = vector.broadcast %cst_10 : f32 to vector<8x8xf32>
    %c72 = arith.constant 72 : index
    %c0_11 = arith.constant 0 : index
    %23 = vector.load %arg14[%c72, %c0_11] : memref<80x8xf32, #tpu.memory_space<vmem>>, vector<8x8xf32>
    tpu.vector_store %arg14[%c72, %c0_11], %22 {strides = array<i32>} : memref<80x8xf32, #tpu.memory_space<vmem>>, vector<8x8xf32>,
    %c8 = arith.constant 8 : index
    %c0_12 = arith.constant 0 : index
    %24 = vector.load %arg14[%c8, %c0_12] : memref<80x8xf32, #tpu.memory_space<vmem>>, vector<64x8xf32>
    tpu.vector_store %arg14[%c8, %c0_12], %0 {strides = array<i32>} : memref<80x8xf32, #tpu.memory_space<vmem>>, vector<64x8xf32>,
    %25 = vector.extract_strided_slice %2 {offsets = [3, 0], sizes = [1, 8], strides = [1, 1]} : vector<7x8xf32> to vector<1x8xf32>
    %26 = vector.broadcast %25 : vector<1x8xf32> to vector<64x8xf32>
    %27 = arith.mulf %0, %26 : vector<64x8xf32>
    %c5 = arith.constant 5 : index
    %c0_13 = arith.constant 0 : index
    %28 = vector.load %arg14[%c5, %c0_13] : memref<80x8xf32, #tpu.memory_space<vmem>>, vector<64x8xf32>
    %c3_i32 = arith.constant 3 : i32
    %29 = vector.broadcast %c3_i32 : i32 to vector<64x1xi32>
    %30 = arith.cmpi sge, %19, %29 : vector<64x1xi32>
    %31 = arith.extui %30 : vector<64x1xi1> to vector<64x1xi32>
    %32 = arith.sitofp %31 : vector<64x1xi32> to vector<64x1xf32>
    %33 = vector.extract_strided_slice %2 {offsets = [0, 0], sizes = [1, 8], strides = [1, 1]} : vector<7x8xf32> to vector<1x8xf32>
    %34 = vector.broadcast %32 : vector<64x1xf32> to vector<64x8xf32>
    %35 = vector.broadcast %33 : vector<1x8xf32> to vector<64x8xf32>
    %36 = arith.mulf %34, %35 : vector<64x8xf32>
    %37 = arith.mulf %28, %36 : vector<64x8xf32>
    %38 = arith.addf %27, %37 : vector<64x8xf32>
    %c6 = arith.constant 6 : index
    %c0_14 = arith.constant 0 : index
    %39 = vector.load %arg14[%c6, %c0_14] : memref<80x8xf32, #tpu.memory_space<vmem>>, vector<64x8xf32>
    %c2_i32 = arith.constant 2 : i32
    %40 = vector.broadcast %c2_i32 : i32 to vector<64x1xi32>
    %41 = arith.cmpi sge, %19, %40 : vector<64x1xi32>
    %42 = arith.extui %41 : vector<64x1xi1> to vector<64x1xi32>
    %43 = arith.sitofp %42 : vector<64x1xi32> to vector<64x1xf32>
    %44 = vector.extract_strided_slice %2 {offsets = [1, 0], sizes = [1, 8], strides = [1, 1]} : vector<7x8xf32> to vector<1x8xf32>
    %45 = vector.broadcast %43 : vector<64x1xf32> to vector<64x8xf32>
    %46 = vector.broadcast %44 : vector<1x8xf32> to vector<64x8xf32>
    %47 = arith.mulf %45, %46 : vector<64x8xf32>
    %48 = arith.mulf %39, %47 : vector<64x8xf32>
    %49 = arith.addf %38, %48 : vector<64x8xf32>
    %c7 = arith.constant 7 : index
    %c0_15 = arith.constant 0 : index
    %50 = vector.load %arg14[%c7, %c0_15] : memref<80x8xf32, #tpu.memory_space<vmem>>, vector<64x8xf32>
    %c1_i32_16 = arith.constant 1 : i32
    %51 = vector.broadcast %c1_i32_16 : i32 to vector<64x1xi32>
    %52 = arith.cmpi sge, %19, %51 : vector<64x1xi32>
    %53 = arith.extui %52 : vector<64x1xi1> to vector<64x1xi32>
    %54 = arith.sitofp %53 : vector<64x1xi32> to vector<64x1xf32>
    %55 = vector.extract_strided_slice %2 {offsets = [2, 0], sizes = [1, 8], strides = [1, 1]} : vector<7x8xf32> to vector<1x8xf32>
    %56 = vector.broadcast %54 : vector<64x1xf32> to vector<64x8xf32>
    %57 = vector.broadcast %55 : vector<1x8xf32> to vector<64x8xf32>
    %58 = arith.mulf %56, %57 : vector<64x8xf32>
    %59 = arith.mulf %50, %58 : vector<64x8xf32>
    %60 = arith.addf %49, %59 : vector<64x8xf32>
    %c9 = arith.constant 9 : index
    %c0_17 = arith.constant 0 : index
    %61 = vector.load %arg14[%c9, %c0_17] : memref<80x8xf32, #tpu.memory_space<vmem>>, vector<64x8xf32>
    %c31_i32 = arith.constant 31 : i32
    %62 = vector.broadcast %c31_i32 : i32 to vector<64x1xi32>
    %63 = arith.cmpi slt, %19, %62 : vector<64x1xi32>
    %64 = arith.extui %63 : vector<64x1xi1> to vector<64x1xi32>
    %65 = arith.sitofp %64 : vector<64x1xi32> to vector<64x1xf32>
    %66 = vector.extract_strided_slice %2 {offsets = [4, 0], sizes = [1, 8], strides = [1, 1]} : vector<7x8xf32> to vector<1x8xf32>
    %67 = vector.broadcast %65 : vector<64x1xf32> to vector<64x8xf32>
    %68 = vector.broadcast %66 : vector<1x8xf32> to vector<64x8xf32>
    %69 = arith.mulf %67, %68 : vector<64x8xf32>
    %70 = arith.mulf %61, %69 : vector<64x8xf32>
    %71 = arith.addf %60, %70 : vector<64x8xf32>
    %c10 = arith.constant 10 : index
    %c0_18 = arith.constant 0 : index
    %72 = vector.load %arg14[%c10, %c0_18] : memref<80x8xf32, #tpu.memory_space<vmem>>, vector<64x8xf32>
    %c30_i32 = arith.constant 30 : i32
    %73 = vector.broadcast %c30_i32 : i32 to vector<64x1xi32>
    %74 = arith.cmpi slt, %19, %73 : vector<64x1xi32>
    %75 = arith.extui %74 : vector<64x1xi1> to vector<64x1xi32>
    %76 = arith.sitofp %75 : vector<64x1xi32> to vector<64x1xf32>
    %77 = vector.extract_strided_slice %2 {offsets = [5, 0], sizes = [1, 8], strides = [1, 1]} : vector<7x8xf32> to vector<1x8xf32>
    %78 = vector.broadcast %76 : vector<64x1xf32> to vector<64x8xf32>
    %79 = vector.broadcast %77 : vector<1x8xf32> to vector<64x8xf32>
    %80 = arith.mulf %78, %79 : vector<64x8xf32>
    %81 = arith.mulf %72, %80 : vector<64x8xf32>
    %82 = arith.addf %71, %81 : vector<64x8xf32>
    %c11 = arith.constant 11 : index
    %c0_19 = arith.constant 0 : index
    %83 = vector.load %arg14[%c11, %c0_19] : memref<80x8xf32, #tpu.memory_space<vmem>>, vector<64x8xf32>
    %c29_i32 = arith.constant 29 : i32
    %84 = vector.broadcast %c29_i32 : i32 to vector<64x1xi32>
    %85 = arith.cmpi slt, %19, %84 : vector<64x1xi32>
    %86 = arith.extui %85 : vector<64x1xi1> to vector<64x1xi32>
    %87 = arith.sitofp %86 : vector<64x1xi32> to vector<64x1xf32>
    %88 = vector.extract_strided_slice %2 {offsets = [6, 0], sizes = [1, 8], strides = [1, 1]} : vector<7x8xf32> to vector<1x8xf32>
    %89 = vector.broadcast %87 : vector<64x1xf32> to vector<64x8xf32>
    %90 = vector.broadcast %88 : vector<1x8xf32> to vector<64x8xf32>
    %91 = arith.mulf %89, %90 : vector<64x8xf32>
    %92 = arith.mulf %83, %91 : vector<64x8xf32>
    %93 = arith.addf %82, %92 : vector<64x8xf32>
    %c0_20 = arith.constant 0 : index
    %c0_21 = arith.constant 0 : index
    %94 = vector.load %arg4[%c0_20, %c0_21] : memref<1x8xf32, #tpu.memory_space<vmem>>, vector<1x8xf32>
    %95 = vector.broadcast %94 : vector<1x8xf32> to vector<64x8xf32>
    %96 = arith.addf %93, %95 : vector<64x8xf32>
    %97 = vector.broadcast %1 : vector<64x1xf32> to vector<64x8xf32>
    %98 = arith.mulf %96, %97 : vector<64x8xf32>
    %c0_22 = arith.constant 0 : index
    %c0_23 = arith.constant 0 : index
    %99 = vector.load %arg5[%c0_22, %c0_23] : memref<1x8xf32, #tpu.memory_space<vmem>>, vector<1x8xf32>
    %c0_24 = arith.constant 0 : index
    %c0_25 = arith.constant 0 : index
    %100 = vector.load %arg6[%c0_24, %c0_25] : memref<1x8xf32, #tpu.memory_space<vmem>>, vector<1x8xf32>
    %cst_26 = arith.constant dense<0.000000e+00> : vector<64xf32>
    %101 = vector.multi_reduction <add>, %98, %cst_26 [1] : vector<64x8xf32> to vector<64xf32>
    %102 = vector.shape_cast %101 : vector<64xf32> to vector<64x1xf32>
    %cst_27 = arith.constant 8.000000e+00 : f32
    %103 = vector.broadcast %cst_27 : f32 to vector<64x1xf32>
    %104 = arith.divf %102, %103 : vector<64x1xf32>
    %105 = vector.broadcast %104 : vector<64x1xf32> to vector<64x8xf32>
    %106 = arith.subf %98, %105 : vector<64x8xf32>
    %107 = arith.mulf %106, %106 : vector<64x8xf32>
    %cst_28 = arith.constant dense<0.000000e+00> : vector<64xf32>
    %108 = vector.multi_reduction <add>, %107, %cst_28 [1] : vector<64x8xf32> to vector<64xf32>
    %109 = vector.shape_cast %108 : vector<64xf32> to vector<64x1xf32>
    %cst_29 = arith.constant 8.000000e+00 : f32
    %110 = vector.broadcast %cst_29 : f32 to vector<64x1xf32>
    %111 = arith.divf %109, %110 : vector<64x1xf32>
    %cst_30 = arith.constant 9.99999997E-7 : f32
    %112 = vector.broadcast %cst_30 : f32 to vector<64x1xf32>
    %113 = arith.addf %111, %112 : vector<64x1xf32>
    %114 = math.rsqrt %113 : vector<64x1xf32>
    %115 = vector.broadcast %114 : vector<64x1xf32> to vector<64x8xf32>
    %116 = arith.mulf %106, %115 : vector<64x8xf32>
    %117 = vector.broadcast %99 : vector<1x8xf32> to vector<64x8xf32>
    %118 = arith.mulf %116, %117 : vector<64x8xf32>
    %119 = vector.broadcast %100 : vector<1x8xf32> to vector<64x8xf32>
    %120 = arith.addf %118, %119 : vector<64x8xf32>
    %121 = vector.broadcast %1 : vector<64x1xf32> to vector<64x8xf32>
    %122 = arith.mulf %120, %121 : vector<64x8xf32>
    %c0_31 = arith.constant 0 : index
    %c0_32 = arith.constant 0 : index
    %123 = vector.load %arg7[%c0_31, %c0_32] : memref<8x32xf32, #tpu.memory_space<vmem>>, vector<8x32xf32>
    %cst_33 = arith.constant dense<0.000000e+00> : vector<64x32xf32>
    %124 = tpu.matmul %122, %123, %cst_33 {dimension_numbers = #tpu.dot_dimension_numbers<[1], [0], [0], [1], [0, 0, 1, 1], [], []>} : vector<64x8xf32>, vector<8x32xf32>, vector<64x32xf32> -> vector<64x32xf32>
    %c0_34 = arith.constant 0 : index
    %c0_35 = arith.constant 0 : index
    %125 = vector.load %arg8[%c0_34, %c0_35] : memref<1x32xf32, #tpu.memory_space<vmem>>, vector<1x32xf32>
    %126 = vector.broadcast %125 : vector<1x32xf32> to vector<64x32xf32>
    %127 = arith.addf %124, %126 : vector<64x32xf32>
    %cst_36 = arith.constant 5.000000e-01 : f32
    %128 = vector.broadcast %cst_36 : f32 to vector<64x32xf32>
    %129 = arith.mulf %128, %127 : vector<64x32xf32>
    %cst_37 = arith.constant 0.707106769 : f32
    %130 = vector.broadcast %cst_37 : f32 to vector<64x32xf32>
    %131 = arith.mulf %127, %130 : vector<64x32xf32>
    %132 = math.erf %131 : vector<64x32xf32>
    %cst_38 = arith.constant 1.000000e+00 : f32
    %133 = vector.broadcast %cst_38 : f32 to vector<64x32xf32>
    %134 = arith.addf %133, %132 : vector<64x32xf32>
    %135 = arith.mulf %129, %134 : vector<64x32xf32>
    %136 = vector.broadcast %1 : vector<64x1xf32> to vector<64x32xf32>
    %137 = arith.mulf %135, %136 : vector<64x32xf32>
    %138 = arith.mulf %137, %137 : vector<64x32xf32>
    %cst_39 = arith.constant dense<0.000000e+00> : vector<32xf32>
    %139 = vector.multi_reduction <add>, %138, %cst_39 [0] : vector<64x32xf32> to vector<32xf32>
    %140 = vector.shape_cast %139 : vector<32xf32> to vector<1x32xf32>
    %141 = math.sqrt %140 : vector<1x32xf32>
    %cst_40 = arith.constant dense<0.000000e+00> : vector<1xf32>
    %142 = vector.multi_reduction <add>, %141, %cst_40 [1] : vector<1x32xf32> to vector<1xf32>
    %143 = vector.shape_cast %142 : vector<1xf32> to vector<1x1xf32>
    %cst_41 = arith.constant 3.200000e+01 : f32
    %144 = vector.broadcast %cst_41 : f32 to vector<1x1xf32>
    %145 = arith.divf %143, %144 : vector<1x1xf32>
    %cst_42 = arith.constant 9.99999997E-7 : f32
    %146 = vector.broadcast %cst_42 : f32 to vector<1x1xf32>
    %147 = arith.addf %145, %146 : vector<1x1xf32>
    %148 = vector.broadcast %147 : vector<1x1xf32> to vector<1x32xf32>
    %149 = arith.divf %141, %148 : vector<1x32xf32>
    %c0_43 = arith.constant 0 : index
    %c0_44 = arith.constant 0 : index
    %150 = vector.load %arg9[%c0_43, %c0_44] : memref<1x32xf32, #tpu.memory_space<vmem>>, vector<1x32xf32>
    %151 = vector.broadcast %149 : vector<1x32xf32> to vector<64x32xf32>
    %152 = arith.mulf %137, %151 : vector<64x32xf32>
    %153 = vector.broadcast %150 : vector<1x32xf32> to vector<64x32xf32>
    %154 = arith.mulf %153, %152 : vector<64x32xf32>
    %c0_45 = arith.constant 0 : index
    %c0_46 = arith.constant 0 : index
    %155 = vector.load %arg10[%c0_45, %c0_46] : memref<1x32xf32, #tpu.memory_space<vmem>>, vector<1x32xf32>
    %156 = vector.broadcast %155 : vector<1x32xf32> to vector<64x32xf32>
    %157 = arith.addf %154, %156 : vector<64x32xf32>
    %158 = arith.addf %157, %137 : vector<64x32xf32>
    %c0_47 = arith.constant 0 : index
    %c0_48 = arith.constant 0 : index
    %159 = vector.load %arg11[%c0_47, %c0_48] : memref<32x8xf32, #tpu.memory_space<vmem>>, vector<32x8xf32>
    %cst_49 = arith.constant dense<0.000000e+00> : vector<64x8xf32>
    %160 = tpu.matmul %158, %159, %cst_49 {dimension_numbers = #tpu.dot_dimension_numbers<[1], [0], [0], [1], [0, 0, 1, 1], [], []>} : vector<64x32xf32>, vector<32x8xf32>, vector<64x8xf32> -> vector<64x8xf32>
    %c0_50 = arith.constant 0 : index
    %c0_51 = arith.constant 0 : index
    %161 = vector.load %arg12[%c0_50, %c0_51] : memref<1x8xf32, #tpu.memory_space<vmem>>, vector<1x8xf32>
    %162 = vector.broadcast %161 : vector<1x8xf32> to vector<64x8xf32>
    %163 = arith.addf %160, %162 : vector<64x8xf32>
    %164 = vector.broadcast %1 : vector<64x1xf32> to vector<64x8xf32>
    %165 = arith.mulf %163, %164 : vector<64x8xf32>
    %166 = arith.addf %0, %165 : vector<64x8xf32>
    %c0_52 = arith.constant 0 : index
    %c0_53 = arith.constant 0 : index
    %167 = vector.load %arg13[%c0_52, %c0_53] : memref<64x8xf32, #tpu.memory_space<vmem>>, vector<64x8xf32>
    tpu.vector_store %arg13[%c0_52, %c0_53], %166 {strides = array<i32>} : memref<64x8xf32, #tpu.memory_space<vmem>>, vector<64x8xf32>,
    return
  }
  func.func @transform_0(%arg0: i32) -> (i32, i32) {
    %c0_i32 = arith.constant 0 : i32
    %c0_i32_0 = arith.constant 0 : i32
    %c0_i32_1 = arith.constant 0 : i32
    return %c0_i32, %c0_i32_0 : i32, i32
  }
  func.func @transform_1(%arg0: i32) -> (i32, i32) {
    %c0_i32 = arith.constant 0 : i32
    %c0_i32_0 = arith.constant 0 : i32
    %c0_i32_1 = arith.constant 0 : i32
    return %c0_i32, %c0_i32_0 : i32, i32
  }
  func.func @transform_2(%arg0: i32) -> (i32, i32) {
    %c0_i32 = arith.constant 0 : i32
    %c0_i32_0 = arith.constant 0 : i32
    %c0_i32_1 = arith.constant 0 : i32
    return %c0_i32, %c0_i32_0 : i32, i32
  }
  func.func @transform_3(%arg0: i32) -> (i32, i32) {
    %c0_i32 = arith.constant 0 : i32
    %c0_i32_0 = arith.constant 0 : i32
    %c0_i32_1 = arith.constant 0 : i32
    return %c0_i32, %c0_i32_0 : i32, i32
  }
  func.func @transform_4(%arg0: i32) -> (i32, i32) {
    %c0_i32 = arith.constant 0 : i32
    %c0_i32_0 = arith.constant 0 : i32
    %c0_i32_1 = arith.constant 0 : i32
    return %c0_i32, %c0_i32_0 : i32, i32
  }
  func.func @transform_5(%arg0: i32) -> (i32, i32) {
    %c0_i32 = arith.constant 0 : i32
    %c0_i32_0 = arith.constant 0 : i32
    %c0_i32_1 = arith.constant 0 : i32
    return %c0_i32, %c0_i32_0 : i32, i32
  }
  func.func @transform_6(%arg0: i32) -> (i32, i32) {
    %c0_i32 = arith.constant 0 : i32
    %c0_i32_0 = arith.constant 0 : i32
    %c0_i32_1 = arith.constant 0 : i32
    return %c0_i32, %c0_i32_0 : i32, i32
  }
  func.func @transform_7(%arg0: i32) -> (i32, i32) {
    %c0_i32 = arith.constant 0 : i32
    %c0_i32_0 = arith.constant 0 : i32
    %c0_i32_1 = arith.constant 0 : i32
    return %c0_i32, %c0_i32_0 : i32, i32
  }
  func.func @transform_8(%arg0: i32) -> (i32, i32) {
    %c0_i32 = arith.constant 0 : i32
    %c0_i32_0 = arith.constant 0 : i32
    %c0_i32_1 = arith.constant 0 : i32
    return %c0_i32, %c0_i32_0 : i32, i32
  }
  func.func @transform_9(%arg0: i32) -> (i32, i32) {
    %c0_i32 = arith.constant 0 : i32
    %c0_i32_0 = arith.constant 0 : i32
    %c0_i32_1 = arith.constant 0 : i32
    return %c0_i32, %c0_i32_0 : i32, i32
  }
  func.func @transform_10(%arg0: i32) -> (i32, i32) {
    %c0_i32 = arith.constant 0 : i32
    %c0_i32_0 = arith.constant 0 : i32
    %c0_i32_1 = arith.constant 0 : i32
    return %c0_i32, %c0_i32_0 : i32, i32
  }
  func.func @transform_11(%arg0: i32) -> (i32, i32) {
    %c0_i32 = arith.constant 0 : i32
    %c0_i32_0 = arith.constant 0 : i32
    %c0_i32_1 = arith.constant 0 : i32
    return %c0_i32, %c0_i32_0 : i32, i32
  }
  func.func @transform_12(%arg0: i32) -> (i32, i32) {
    %c0_i32 = arith.constant 0 : i32
    %c0_i32_0 = arith.constant 0 : i32
    %c0_i32_1 = arith.constant 0 : i32
    return %c0_i32, %c0_i32_0 : i32, i32
  }
}

module attributes {stable_mosaic.version = 11 : i64} {
  func.func @_downsample_kernel(%arg0: i32, %arg1: memref<16x16xf32, #tpu.memory_space<vmem>>, %arg2: memref<16x1xf32, #tpu.memory_space<vmem>>, %arg3: memref<1x8xf32, #tpu.memory_space<vmem>>, %arg4: memref<1x8xf32, #tpu.memory_space<vmem>>, %arg5: memref<16x16xf32, #tpu.memory_space<vmem>>, %arg6: memref<1x16xf32, #tpu.memory_space<vmem>>, %arg7: memref<16x16xf32, #tpu.memory_space<vmem>>) attributes {dimension_semantics = [#tpu.dimension_semantics<parallel>], iteration_bounds = array<i64: 2>, scalar_prefetch = 0 : i64, scratch_operands = 0 : i64, tpu.core_type = #tpu.core_type<tc>, window_params = [{transform_indices = @transform_0, window_bounds = array<i64: 16, 16>}, {transform_indices = @transform_1, window_bounds = array<i64: 16, 1>}, {pipeline_mode = #tpu.pipeline_mode<synchronous>, transform_indices = @transform_2, window_bounds = array<i64: 1, 8>}, {pipeline_mode = #tpu.pipeline_mode<synchronous>, transform_indices = @transform_3, window_bounds = array<i64: 1, 8>}, {pipeline_mode = #tpu.pipeline_mode<synchronous>, transform_indices = @transform_4, window_bounds = array<i64: 16, 16>}, {pipeline_mode = #tpu.pipeline_mode<synchronous>, transform_indices = @transform_5, window_bounds = array<i64: 1, 16>}, {transform_indices = @transform_6, window_bounds = array<i64: 16, 16>}]} {
    %c0 = arith.constant 0 : index
    %c0_0 = arith.constant 0 : index
    %0 = vector.load %arg1[%c0, %c0_0] : memref<16x16xf32, #tpu.memory_space<vmem>>, vector<16x16xf32>
    %c0_1 = arith.constant 0 : index
    %c0_2 = arith.constant 0 : index
    %1 = vector.load %arg3[%c0_1, %c0_2] : memref<1x8xf32, #tpu.memory_space<vmem>>, vector<1x8xf32>
    %c0_3 = arith.constant 0 : index
    %c0_4 = arith.constant 0 : index
    %2 = vector.load %arg4[%c0_3, %c0_4] : memref<1x8xf32, #tpu.memory_space<vmem>>, vector<1x8xf32>
    %c0_5 = arith.constant 0 : index
    %c0_6 = arith.constant 0 : index
    %3 = vector.load %arg5[%c0_5, %c0_6] : memref<16x16xf32, #tpu.memory_space<vmem>>, vector<16x16xf32>
    %4 = vector.extract_strided_slice %0 {offsets = [0, 0], sizes = [16, 8], strides = [1, 1]} : vector<16x16xf32> to vector<16x8xf32>
    %cst = arith.constant dense<0.000000e+00> : vector<16xf32>
    %5 = vector.multi_reduction <add>, %4, %cst [1] : vector<16x8xf32> to vector<16xf32>
    %6 = vector.shape_cast %5 : vector<16xf32> to vector<16x1xf32>
    %cst_7 = arith.constant 8.000000e+00 : f32
    %7 = vector.broadcast %cst_7 : f32 to vector<16x1xf32>
    %8 = arith.divf %6, %7 : vector<16x1xf32>
    %9 = vector.broadcast %8 : vector<16x1xf32> to vector<16x8xf32>
    %10 = arith.subf %4, %9 : vector<16x8xf32>
    %11 = arith.mulf %10, %10 : vector<16x8xf32>
    %cst_8 = arith.constant dense<0.000000e+00> : vector<16xf32>
    %12 = vector.multi_reduction <add>, %11, %cst_8 [1] : vector<16x8xf32> to vector<16xf32>
    %13 = vector.shape_cast %12 : vector<16xf32> to vector<16x1xf32>
    %cst_9 = arith.constant 8.000000e+00 : f32
    %14 = vector.broadcast %cst_9 : f32 to vector<16x1xf32>
    %15 = arith.divf %13, %14 : vector<16x1xf32>
    %cst_10 = arith.constant 9.99999997E-7 : f32
    %16 = vector.broadcast %cst_10 : f32 to vector<16x1xf32>
    %17 = arith.addf %15, %16 : vector<16x1xf32>
    %18 = math.rsqrt %17 : vector<16x1xf32>
    %19 = vector.broadcast %18 : vector<16x1xf32> to vector<16x8xf32>
    %20 = arith.mulf %10, %19 : vector<16x8xf32>
    %21 = vector.broadcast %1 : vector<1x8xf32> to vector<16x8xf32>
    %22 = arith.mulf %20, %21 : vector<16x8xf32>
    %23 = vector.broadcast %2 : vector<1x8xf32> to vector<16x8xf32>
    %24 = arith.addf %22, %23 : vector<16x8xf32>
    %25 = vector.extract_strided_slice %0 {offsets = [0, 8], sizes = [16, 8], strides = [1, 1]} : vector<16x16xf32> to vector<16x8xf32>
    %cst_11 = arith.constant dense<0.000000e+00> : vector<16xf32>
    %26 = vector.multi_reduction <add>, %25, %cst_11 [1] : vector<16x8xf32> to vector<16xf32>
    %27 = vector.shape_cast %26 : vector<16xf32> to vector<16x1xf32>
    %cst_12 = arith.constant 8.000000e+00 : f32
    %28 = vector.broadcast %cst_12 : f32 to vector<16x1xf32>
    %29 = arith.divf %27, %28 : vector<16x1xf32>
    %30 = vector.broadcast %29 : vector<16x1xf32> to vector<16x8xf32>
    %31 = arith.subf %25, %30 : vector<16x8xf32>
    %32 = arith.mulf %31, %31 : vector<16x8xf32>
    %cst_13 = arith.constant dense<0.000000e+00> : vector<16xf32>
    %33 = vector.multi_reduction <add>, %32, %cst_13 [1] : vector<16x8xf32> to vector<16xf32>
    %34 = vector.shape_cast %33 : vector<16xf32> to vector<16x1xf32>
    %cst_14 = arith.constant 8.000000e+00 : f32
    %35 = vector.broadcast %cst_14 : f32 to vector<16x1xf32>
    %36 = arith.divf %34, %35 : vector<16x1xf32>
    %cst_15 = arith.constant 9.99999997E-7 : f32
    %37 = vector.broadcast %cst_15 : f32 to vector<16x1xf32>
    %38 = arith.addf %36, %37 : vector<16x1xf32>
    %39 = math.rsqrt %38 : vector<16x1xf32>
    %40 = vector.broadcast %39 : vector<16x1xf32> to vector<16x8xf32>
    %41 = arith.mulf %31, %40 : vector<16x8xf32>
    %42 = vector.broadcast %1 : vector<1x8xf32> to vector<16x8xf32>
    %43 = arith.mulf %41, %42 : vector<16x8xf32>
    %44 = vector.broadcast %2 : vector<1x8xf32> to vector<16x8xf32>
    %45 = arith.addf %43, %44 : vector<16x8xf32>
    %46 = vector.extract_strided_slice %3 {offsets = [0, 0], sizes = [8, 16], strides = [1, 1]} : vector<16x16xf32> to vector<8x16xf32>
    %cst_16 = arith.constant dense<0.000000e+00> : vector<16x16xf32>
    %47 = tpu.matmul %24, %46, %cst_16 {dimension_numbers = #tpu.dot_dimension_numbers<[1], [0], [0], [1], [0, 0, 1, 1], [], []>} : vector<16x8xf32>, vector<8x16xf32>, vector<16x16xf32> -> vector<16x16xf32>
    %48 = vector.extract_strided_slice %3 {offsets = [8, 0], sizes = [8, 16], strides = [1, 1]} : vector<16x16xf32> to vector<8x16xf32>
    %cst_17 = arith.constant dense<0.000000e+00> : vector<16x16xf32>
    %49 = tpu.matmul %45, %48, %cst_17 {dimension_numbers = #tpu.dot_dimension_numbers<[1], [0], [0], [1], [0, 0, 1, 1], [], []>} : vector<16x8xf32>, vector<8x16xf32>, vector<16x16xf32> -> vector<16x16xf32>
    %50 = arith.addf %47, %49 : vector<16x16xf32>
    %c0_18 = arith.constant 0 : index
    %c0_19 = arith.constant 0 : index
    %51 = vector.load %arg6[%c0_18, %c0_19] : memref<1x16xf32, #tpu.memory_space<vmem>>, vector<1x16xf32>
    %52 = vector.broadcast %51 : vector<1x16xf32> to vector<16x16xf32>
    %53 = arith.addf %50, %52 : vector<16x16xf32>
    %c0_20 = arith.constant 0 : index
    %c0_21 = arith.constant 0 : index
    %54 = vector.load %arg2[%c0_20, %c0_21] : memref<16x1xf32, #tpu.memory_space<vmem>>, vector<16x1xf32>
    %55 = vector.broadcast %54 : vector<16x1xf32> to vector<16x16xf32>
    %56 = arith.mulf %53, %55 : vector<16x16xf32>
    %c0_22 = arith.constant 0 : index
    %c0_23 = arith.constant 0 : index
    %57 = vector.load %arg7[%c0_22, %c0_23] : memref<16x16xf32, #tpu.memory_space<vmem>>, vector<16x16xf32>
    tpu.vector_store %arg7[%c0_22, %c0_23], %56 {strides = array<i32>} : memref<16x16xf32, #tpu.memory_space<vmem>>, vector<16x16xf32>,
    return
  }
  func.func @transform_0(%arg0: i32) -> (i32, i32) {
    %c0_i32 = arith.constant 0 : i32
    %c0_i32_0 = arith.constant 0 : i32
    return %arg0, %c0_i32 : i32, i32
  }
  func.func @transform_1(%arg0: i32) -> (i32, i32) {
    %c0_i32 = arith.constant 0 : i32
    %c0_i32_0 = arith.constant 0 : i32
    return %arg0, %c0_i32 : i32, i32
  }
  func.func @transform_2(%arg0: i32) -> (i32, i32) {
    %c0_i32 = arith.constant 0 : i32
    %c0_i32_0 = arith.constant 0 : i32
    %c0_i32_1 = arith.constant 0 : i32
    return %c0_i32, %c0_i32_0 : i32, i32
  }
  func.func @transform_3(%arg0: i32) -> (i32, i32) {
    %c0_i32 = arith.constant 0 : i32
    %c0_i32_0 = arith.constant 0 : i32
    %c0_i32_1 = arith.constant 0 : i32
    return %c0_i32, %c0_i32_0 : i32, i32
  }
  func.func @transform_4(%arg0: i32) -> (i32, i32) {
    %c0_i32 = arith.constant 0 : i32
    %c0_i32_0 = arith.constant 0 : i32
    %c0_i32_1 = arith.constant 0 : i32
    return %c0_i32, %c0_i32_0 : i32, i32
  }
  func.func @transform_5(%arg0: i32) -> (i32, i32) {
    %c0_i32 = arith.constant 0 : i32
    %c0_i32_0 = arith.constant 0 : i32
    %c0_i32_1 = arith.constant 0 : i32
    return %c0_i32, %c0_i32_0 : i32, i32
  }
  func.func @transform_6(%arg0: i32) -> (i32, i32) {
    %c0_i32 = arith.constant 0 : i32
    %c0_i32_0 = arith.constant 0 : i32
    return %arg0, %c0_i32 : i32, i32
  }
}

module attributes {stable_mosaic.version = 11 : i64} {
  func.func @_sparse_block_kernel(%arg0: i32, %arg1: memref<32x16xf32, #tpu.memory_space<vmem>>, %arg2: memref<32x1xf32, #tpu.memory_space<vmem>>, %arg3: memref<7x16xf32, #tpu.memory_space<vmem>>, %arg4: memref<1x16xf32, #tpu.memory_space<vmem>>, %arg5: memref<1x16xf32, #tpu.memory_space<vmem>>, %arg6: memref<1x16xf32, #tpu.memory_space<vmem>>, %arg7: memref<16x64xf32, #tpu.memory_space<vmem>>, %arg8: memref<1x64xf32, #tpu.memory_space<vmem>>, %arg9: memref<1x64xf32, #tpu.memory_space<vmem>>, %arg10: memref<1x64xf32, #tpu.memory_space<vmem>>, %arg11: memref<64x16xf32, #tpu.memory_space<vmem>>, %arg12: memref<1x16xf32, #tpu.memory_space<vmem>>, %arg13: memref<32x16xf32, #tpu.memory_space<vmem>>, %arg14: memref<48x16xf32, #tpu.memory_space<vmem>>) attributes {dimension_semantics = [#tpu.dimension_semantics<arbitrary>], iteration_bounds = array<i64: 1>, scalar_prefetch = 0 : i64, scratch_operands = 1 : i64, tpu.core_type = #tpu.core_type<tc>, window_params = [{pipeline_mode = #tpu.pipeline_mode<synchronous>, transform_indices = @transform_0, window_bounds = array<i64: 32, 16>}, {pipeline_mode = #tpu.pipeline_mode<synchronous>, transform_indices = @transform_1, window_bounds = array<i64: 32, 1>}, {pipeline_mode = #tpu.pipeline_mode<synchronous>, transform_indices = @transform_2, window_bounds = array<i64: 7, 16>}, {pipeline_mode = #tpu.pipeline_mode<synchronous>, transform_indices = @transform_3, window_bounds = array<i64: 1, 16>}, {pipeline_mode = #tpu.pipeline_mode<synchronous>, transform_indices = @transform_4, window_bounds = array<i64: 1, 16>}, {pipeline_mode = #tpu.pipeline_mode<synchronous>, transform_indices = @transform_5, window_bounds = array<i64: 1, 16>}, {pipeline_mode = #tpu.pipeline_mode<synchronous>, transform_indices = @transform_6, window_bounds = array<i64: 16, 64>}, {pipeline_mode = #tpu.pipeline_mode<synchronous>, transform_indices = @transform_7, window_bounds = array<i64: 1, 64>}, {pipeline_mode = #tpu.pipeline_mode<synchronous>, transform_indices = @transform_8, window_bounds = array<i64: 1, 64>}, {pipeline_mode = #tpu.pipeline_mode<synchronous>, transform_indices = @transform_9, window_bounds = array<i64: 1, 64>}, {pipeline_mode = #tpu.pipeline_mode<synchronous>, transform_indices = @transform_10, window_bounds = array<i64: 64, 16>}, {pipeline_mode = #tpu.pipeline_mode<synchronous>, transform_indices = @transform_11, window_bounds = array<i64: 1, 16>}, {pipeline_mode = #tpu.pipeline_mode<synchronous>, transform_indices = @transform_12, window_bounds = array<i64: 32, 16>}]} {
    %c0 = arith.constant 0 : index
    %c0_0 = arith.constant 0 : index
    %0 = vector.load %arg1[%c0, %c0_0] : memref<32x16xf32, #tpu.memory_space<vmem>>, vector<32x16xf32>
    %c0_1 = arith.constant 0 : index
    %c0_2 = arith.constant 0 : index
    %1 = vector.load %arg2[%c0_1, %c0_2] : memref<32x1xf32, #tpu.memory_space<vmem>>, vector<32x1xf32>
    %c0_3 = arith.constant 0 : index
    %c0_4 = arith.constant 0 : index
    %2 = vector.load %arg3[%c0_3, %c0_4] : memref<7x16xf32, #tpu.memory_space<vmem>>, vector<7x16xf32>
    %3 = tpu.iota {dimensions = array<i32: 0>} : vector<32x1xi32>
    %c16_i32 = arith.constant 16 : i32
    %c0_i32 = arith.constant 0 : i32
    %4 = arith.cmpi eq, %c16_i32, %c0_i32 : i32
    %c1_i32 = arith.constant 1 : i32
    %5 = arith.select %4, %c1_i32, %c16_i32 : i32
    %6 = vector.broadcast %5 : i32 to vector<32x1xi32>
    %7 = arith.remsi %3, %6 : vector<32x1xi32>
    %c0_i32_5 = arith.constant 0 : i32
    %8 = vector.broadcast %c0_i32_5 : i32 to vector<32x1xi32>
    %9 = arith.cmpi ne, %7, %8 : vector<32x1xi32>
    %c0_i32_6 = arith.constant 0 : i32
    %10 = vector.broadcast %c0_i32_6 : i32 to vector<32x1xi32>
    %11 = arith.cmpi slt, %7, %10 : vector<32x1xi32>
    %c0_i32_7 = arith.constant 0 : i32
    %12 = arith.cmpi slt, %5, %c0_i32_7 : i32
    %13 = vector.broadcast %12 : i1 to vector<32x1xi1>
    %14 = vector.broadcast %13 : vector<32x1xi1> to vector<32x1xi1>
    %15 = arith.xori %11, %14 : vector<32x1xi1>
    %16 = arith.andi %15, %9 : vector<32x1xi1>
    %17 = vector.broadcast %5 : i32 to vector<32x1xi32>
    %18 = arith.addi %7, %17 : vector<32x1xi32>
    %19 = arith.select %16, %18, %7 : vector<32x1xi1>, vector<32x1xi32>
    %cst = arith.constant 0.000000e+00 : f32
    %20 = vector.broadcast %cst : f32 to vector<8x16xf32>
    %c0_8 = arith.constant 0 : index
    %c0_9 = arith.constant 0 : index
    %21 = vector.load %arg14[%c0_8, %c0_9] : memref<48x16xf32, #tpu.memory_space<vmem>>, vector<8x16xf32>
    tpu.vector_store %arg14[%c0_8, %c0_9], %20 {strides = array<i32>} : memref<48x16xf32, #tpu.memory_space<vmem>>, vector<8x16xf32>,
    %cst_10 = arith.constant 0.000000e+00 : f32
    %22 = vector.broadcast %cst_10 : f32 to vector<8x16xf32>
    %c40 = arith.constant 40 : index
    %c0_11 = arith.constant 0 : index
    %23 = vector.load %arg14[%c40, %c0_11] : memref<48x16xf32, #tpu.memory_space<vmem>>, vector<8x16xf32>
    tpu.vector_store %arg14[%c40, %c0_11], %22 {strides = array<i32>} : memref<48x16xf32, #tpu.memory_space<vmem>>, vector<8x16xf32>,
    %c8 = arith.constant 8 : index
    %c0_12 = arith.constant 0 : index
    %24 = vector.load %arg14[%c8, %c0_12] : memref<48x16xf32, #tpu.memory_space<vmem>>, vector<32x16xf32>
    tpu.vector_store %arg14[%c8, %c0_12], %0 {strides = array<i32>} : memref<48x16xf32, #tpu.memory_space<vmem>>, vector<32x16xf32>,
    %25 = vector.extract_strided_slice %2 {offsets = [3, 0], sizes = [1, 16], strides = [1, 1]} : vector<7x16xf32> to vector<1x16xf32>
    %26 = vector.broadcast %25 : vector<1x16xf32> to vector<32x16xf32>
    %27 = arith.mulf %0, %26 : vector<32x16xf32>
    %c5 = arith.constant 5 : index
    %c0_13 = arith.constant 0 : index
    %28 = vector.load %arg14[%c5, %c0_13] : memref<48x16xf32, #tpu.memory_space<vmem>>, vector<32x16xf32>
    %c3_i32 = arith.constant 3 : i32
    %29 = vector.broadcast %c3_i32 : i32 to vector<32x1xi32>
    %30 = arith.cmpi sge, %19, %29 : vector<32x1xi32>
    %31 = arith.extui %30 : vector<32x1xi1> to vector<32x1xi32>
    %32 = arith.sitofp %31 : vector<32x1xi32> to vector<32x1xf32>
    %33 = vector.extract_strided_slice %2 {offsets = [0, 0], sizes = [1, 16], strides = [1, 1]} : vector<7x16xf32> to vector<1x16xf32>
    %34 = vector.broadcast %32 : vector<32x1xf32> to vector<32x16xf32>
    %35 = vector.broadcast %33 : vector<1x16xf32> to vector<32x16xf32>
    %36 = arith.mulf %34, %35 : vector<32x16xf32>
    %37 = arith.mulf %28, %36 : vector<32x16xf32>
    %38 = arith.addf %27, %37 : vector<32x16xf32>
    %c6 = arith.constant 6 : index
    %c0_14 = arith.constant 0 : index
    %39 = vector.load %arg14[%c6, %c0_14] : memref<48x16xf32, #tpu.memory_space<vmem>>, vector<32x16xf32>
    %c2_i32 = arith.constant 2 : i32
    %40 = vector.broadcast %c2_i32 : i32 to vector<32x1xi32>
    %41 = arith.cmpi sge, %19, %40 : vector<32x1xi32>
    %42 = arith.extui %41 : vector<32x1xi1> to vector<32x1xi32>
    %43 = arith.sitofp %42 : vector<32x1xi32> to vector<32x1xf32>
    %44 = vector.extract_strided_slice %2 {offsets = [1, 0], sizes = [1, 16], strides = [1, 1]} : vector<7x16xf32> to vector<1x16xf32>
    %45 = vector.broadcast %43 : vector<32x1xf32> to vector<32x16xf32>
    %46 = vector.broadcast %44 : vector<1x16xf32> to vector<32x16xf32>
    %47 = arith.mulf %45, %46 : vector<32x16xf32>
    %48 = arith.mulf %39, %47 : vector<32x16xf32>
    %49 = arith.addf %38, %48 : vector<32x16xf32>
    %c7 = arith.constant 7 : index
    %c0_15 = arith.constant 0 : index
    %50 = vector.load %arg14[%c7, %c0_15] : memref<48x16xf32, #tpu.memory_space<vmem>>, vector<32x16xf32>
    %c1_i32_16 = arith.constant 1 : i32
    %51 = vector.broadcast %c1_i32_16 : i32 to vector<32x1xi32>
    %52 = arith.cmpi sge, %19, %51 : vector<32x1xi32>
    %53 = arith.extui %52 : vector<32x1xi1> to vector<32x1xi32>
    %54 = arith.sitofp %53 : vector<32x1xi32> to vector<32x1xf32>
    %55 = vector.extract_strided_slice %2 {offsets = [2, 0], sizes = [1, 16], strides = [1, 1]} : vector<7x16xf32> to vector<1x16xf32>
    %56 = vector.broadcast %54 : vector<32x1xf32> to vector<32x16xf32>
    %57 = vector.broadcast %55 : vector<1x16xf32> to vector<32x16xf32>
    %58 = arith.mulf %56, %57 : vector<32x16xf32>
    %59 = arith.mulf %50, %58 : vector<32x16xf32>
    %60 = arith.addf %49, %59 : vector<32x16xf32>
    %c9 = arith.constant 9 : index
    %c0_17 = arith.constant 0 : index
    %61 = vector.load %arg14[%c9, %c0_17] : memref<48x16xf32, #tpu.memory_space<vmem>>, vector<32x16xf32>
    %c15_i32 = arith.constant 15 : i32
    %62 = vector.broadcast %c15_i32 : i32 to vector<32x1xi32>
    %63 = arith.cmpi slt, %19, %62 : vector<32x1xi32>
    %64 = arith.extui %63 : vector<32x1xi1> to vector<32x1xi32>
    %65 = arith.sitofp %64 : vector<32x1xi32> to vector<32x1xf32>
    %66 = vector.extract_strided_slice %2 {offsets = [4, 0], sizes = [1, 16], strides = [1, 1]} : vector<7x16xf32> to vector<1x16xf32>
    %67 = vector.broadcast %65 : vector<32x1xf32> to vector<32x16xf32>
    %68 = vector.broadcast %66 : vector<1x16xf32> to vector<32x16xf32>
    %69 = arith.mulf %67, %68 : vector<32x16xf32>
    %70 = arith.mulf %61, %69 : vector<32x16xf32>
    %71 = arith.addf %60, %70 : vector<32x16xf32>
    %c10 = arith.constant 10 : index
    %c0_18 = arith.constant 0 : index
    %72 = vector.load %arg14[%c10, %c0_18] : memref<48x16xf32, #tpu.memory_space<vmem>>, vector<32x16xf32>
    %c14_i32 = arith.constant 14 : i32
    %73 = vector.broadcast %c14_i32 : i32 to vector<32x1xi32>
    %74 = arith.cmpi slt, %19, %73 : vector<32x1xi32>
    %75 = arith.extui %74 : vector<32x1xi1> to vector<32x1xi32>
    %76 = arith.sitofp %75 : vector<32x1xi32> to vector<32x1xf32>
    %77 = vector.extract_strided_slice %2 {offsets = [5, 0], sizes = [1, 16], strides = [1, 1]} : vector<7x16xf32> to vector<1x16xf32>
    %78 = vector.broadcast %76 : vector<32x1xf32> to vector<32x16xf32>
    %79 = vector.broadcast %77 : vector<1x16xf32> to vector<32x16xf32>
    %80 = arith.mulf %78, %79 : vector<32x16xf32>
    %81 = arith.mulf %72, %80 : vector<32x16xf32>
    %82 = arith.addf %71, %81 : vector<32x16xf32>
    %c11 = arith.constant 11 : index
    %c0_19 = arith.constant 0 : index
    %83 = vector.load %arg14[%c11, %c0_19] : memref<48x16xf32, #tpu.memory_space<vmem>>, vector<32x16xf32>
    %c13_i32 = arith.constant 13 : i32
    %84 = vector.broadcast %c13_i32 : i32 to vector<32x1xi32>
    %85 = arith.cmpi slt, %19, %84 : vector<32x1xi32>
    %86 = arith.extui %85 : vector<32x1xi1> to vector<32x1xi32>
    %87 = arith.sitofp %86 : vector<32x1xi32> to vector<32x1xf32>
    %88 = vector.extract_strided_slice %2 {offsets = [6, 0], sizes = [1, 16], strides = [1, 1]} : vector<7x16xf32> to vector<1x16xf32>
    %89 = vector.broadcast %87 : vector<32x1xf32> to vector<32x16xf32>
    %90 = vector.broadcast %88 : vector<1x16xf32> to vector<32x16xf32>
    %91 = arith.mulf %89, %90 : vector<32x16xf32>
    %92 = arith.mulf %83, %91 : vector<32x16xf32>
    %93 = arith.addf %82, %92 : vector<32x16xf32>
    %c0_20 = arith.constant 0 : index
    %c0_21 = arith.constant 0 : index
    %94 = vector.load %arg4[%c0_20, %c0_21] : memref<1x16xf32, #tpu.memory_space<vmem>>, vector<1x16xf32>
    %95 = vector.broadcast %94 : vector<1x16xf32> to vector<32x16xf32>
    %96 = arith.addf %93, %95 : vector<32x16xf32>
    %97 = vector.broadcast %1 : vector<32x1xf32> to vector<32x16xf32>
    %98 = arith.mulf %96, %97 : vector<32x16xf32>
    %c0_22 = arith.constant 0 : index
    %c0_23 = arith.constant 0 : index
    %99 = vector.load %arg5[%c0_22, %c0_23] : memref<1x16xf32, #tpu.memory_space<vmem>>, vector<1x16xf32>
    %c0_24 = arith.constant 0 : index
    %c0_25 = arith.constant 0 : index
    %100 = vector.load %arg6[%c0_24, %c0_25] : memref<1x16xf32, #tpu.memory_space<vmem>>, vector<1x16xf32>
    %cst_26 = arith.constant dense<0.000000e+00> : vector<32xf32>
    %101 = vector.multi_reduction <add>, %98, %cst_26 [1] : vector<32x16xf32> to vector<32xf32>
    %102 = vector.shape_cast %101 : vector<32xf32> to vector<32x1xf32>
    %cst_27 = arith.constant 1.600000e+01 : f32
    %103 = vector.broadcast %cst_27 : f32 to vector<32x1xf32>
    %104 = arith.divf %102, %103 : vector<32x1xf32>
    %105 = vector.broadcast %104 : vector<32x1xf32> to vector<32x16xf32>
    %106 = arith.subf %98, %105 : vector<32x16xf32>
    %107 = arith.mulf %106, %106 : vector<32x16xf32>
    %cst_28 = arith.constant dense<0.000000e+00> : vector<32xf32>
    %108 = vector.multi_reduction <add>, %107, %cst_28 [1] : vector<32x16xf32> to vector<32xf32>
    %109 = vector.shape_cast %108 : vector<32xf32> to vector<32x1xf32>
    %cst_29 = arith.constant 1.600000e+01 : f32
    %110 = vector.broadcast %cst_29 : f32 to vector<32x1xf32>
    %111 = arith.divf %109, %110 : vector<32x1xf32>
    %cst_30 = arith.constant 9.99999997E-7 : f32
    %112 = vector.broadcast %cst_30 : f32 to vector<32x1xf32>
    %113 = arith.addf %111, %112 : vector<32x1xf32>
    %114 = math.rsqrt %113 : vector<32x1xf32>
    %115 = vector.broadcast %114 : vector<32x1xf32> to vector<32x16xf32>
    %116 = arith.mulf %106, %115 : vector<32x16xf32>
    %117 = vector.broadcast %99 : vector<1x16xf32> to vector<32x16xf32>
    %118 = arith.mulf %116, %117 : vector<32x16xf32>
    %119 = vector.broadcast %100 : vector<1x16xf32> to vector<32x16xf32>
    %120 = arith.addf %118, %119 : vector<32x16xf32>
    %121 = vector.broadcast %1 : vector<32x1xf32> to vector<32x16xf32>
    %122 = arith.mulf %120, %121 : vector<32x16xf32>
    %c0_31 = arith.constant 0 : index
    %c0_32 = arith.constant 0 : index
    %123 = vector.load %arg7[%c0_31, %c0_32] : memref<16x64xf32, #tpu.memory_space<vmem>>, vector<16x64xf32>
    %cst_33 = arith.constant dense<0.000000e+00> : vector<32x64xf32>
    %124 = tpu.matmul %122, %123, %cst_33 {dimension_numbers = #tpu.dot_dimension_numbers<[1], [0], [0], [1], [0, 0, 1, 1], [], []>} : vector<32x16xf32>, vector<16x64xf32>, vector<32x64xf32> -> vector<32x64xf32>
    %c0_34 = arith.constant 0 : index
    %c0_35 = arith.constant 0 : index
    %125 = vector.load %arg8[%c0_34, %c0_35] : memref<1x64xf32, #tpu.memory_space<vmem>>, vector<1x64xf32>
    %126 = vector.broadcast %125 : vector<1x64xf32> to vector<32x64xf32>
    %127 = arith.addf %124, %126 : vector<32x64xf32>
    %cst_36 = arith.constant 5.000000e-01 : f32
    %128 = vector.broadcast %cst_36 : f32 to vector<32x64xf32>
    %129 = arith.mulf %128, %127 : vector<32x64xf32>
    %cst_37 = arith.constant 0.707106769 : f32
    %130 = vector.broadcast %cst_37 : f32 to vector<32x64xf32>
    %131 = arith.mulf %127, %130 : vector<32x64xf32>
    %132 = math.erf %131 : vector<32x64xf32>
    %cst_38 = arith.constant 1.000000e+00 : f32
    %133 = vector.broadcast %cst_38 : f32 to vector<32x64xf32>
    %134 = arith.addf %133, %132 : vector<32x64xf32>
    %135 = arith.mulf %129, %134 : vector<32x64xf32>
    %136 = vector.broadcast %1 : vector<32x1xf32> to vector<32x64xf32>
    %137 = arith.mulf %135, %136 : vector<32x64xf32>
    %138 = arith.mulf %137, %137 : vector<32x64xf32>
    %cst_39 = arith.constant dense<0.000000e+00> : vector<64xf32>
    %139 = vector.multi_reduction <add>, %138, %cst_39 [0] : vector<32x64xf32> to vector<64xf32>
    %140 = vector.shape_cast %139 : vector<64xf32> to vector<1x64xf32>
    %141 = math.sqrt %140 : vector<1x64xf32>
    %cst_40 = arith.constant dense<0.000000e+00> : vector<1xf32>
    %142 = vector.multi_reduction <add>, %141, %cst_40 [1] : vector<1x64xf32> to vector<1xf32>
    %143 = vector.shape_cast %142 : vector<1xf32> to vector<1x1xf32>
    %cst_41 = arith.constant 6.400000e+01 : f32
    %144 = vector.broadcast %cst_41 : f32 to vector<1x1xf32>
    %145 = arith.divf %143, %144 : vector<1x1xf32>
    %cst_42 = arith.constant 9.99999997E-7 : f32
    %146 = vector.broadcast %cst_42 : f32 to vector<1x1xf32>
    %147 = arith.addf %145, %146 : vector<1x1xf32>
    %148 = vector.broadcast %147 : vector<1x1xf32> to vector<1x64xf32>
    %149 = arith.divf %141, %148 : vector<1x64xf32>
    %c0_43 = arith.constant 0 : index
    %c0_44 = arith.constant 0 : index
    %150 = vector.load %arg9[%c0_43, %c0_44] : memref<1x64xf32, #tpu.memory_space<vmem>>, vector<1x64xf32>
    %151 = vector.broadcast %149 : vector<1x64xf32> to vector<32x64xf32>
    %152 = arith.mulf %137, %151 : vector<32x64xf32>
    %153 = vector.broadcast %150 : vector<1x64xf32> to vector<32x64xf32>
    %154 = arith.mulf %153, %152 : vector<32x64xf32>
    %c0_45 = arith.constant 0 : index
    %c0_46 = arith.constant 0 : index
    %155 = vector.load %arg10[%c0_45, %c0_46] : memref<1x64xf32, #tpu.memory_space<vmem>>, vector<1x64xf32>
    %156 = vector.broadcast %155 : vector<1x64xf32> to vector<32x64xf32>
    %157 = arith.addf %154, %156 : vector<32x64xf32>
    %158 = arith.addf %157, %137 : vector<32x64xf32>
    %c0_47 = arith.constant 0 : index
    %c0_48 = arith.constant 0 : index
    %159 = vector.load %arg11[%c0_47, %c0_48] : memref<64x16xf32, #tpu.memory_space<vmem>>, vector<64x16xf32>
    %cst_49 = arith.constant dense<0.000000e+00> : vector<32x16xf32>
    %160 = tpu.matmul %158, %159, %cst_49 {dimension_numbers = #tpu.dot_dimension_numbers<[1], [0], [0], [1], [0, 0, 1, 1], [], []>} : vector<32x64xf32>, vector<64x16xf32>, vector<32x16xf32> -> vector<32x16xf32>
    %c0_50 = arith.constant 0 : index
    %c0_51 = arith.constant 0 : index
    %161 = vector.load %arg12[%c0_50, %c0_51] : memref<1x16xf32, #tpu.memory_space<vmem>>, vector<1x16xf32>
    %162 = vector.broadcast %161 : vector<1x16xf32> to vector<32x16xf32>
    %163 = arith.addf %160, %162 : vector<32x16xf32>
    %164 = vector.broadcast %1 : vector<32x1xf32> to vector<32x16xf32>
    %165 = arith.mulf %163, %164 : vector<32x16xf32>
    %166 = arith.addf %0, %165 : vector<32x16xf32>
    %c0_52 = arith.constant 0 : index
    %c0_53 = arith.constant 0 : index
    %167 = vector.load %arg13[%c0_52, %c0_53] : memref<32x16xf32, #tpu.memory_space<vmem>>, vector<32x16xf32>
    tpu.vector_store %arg13[%c0_52, %c0_53], %166 {strides = array<i32>} : memref<32x16xf32, #tpu.memory_space<vmem>>, vector<32x16xf32>,
    return
  }
  func.func @transform_0(%arg0: i32) -> (i32, i32) {
    %c0_i32 = arith.constant 0 : i32
    %c0_i32_0 = arith.constant 0 : i32
    %c0_i32_1 = arith.constant 0 : i32
    return %c0_i32, %c0_i32_0 : i32, i32
  }
  func.func @transform_1(%arg0: i32) -> (i32, i32) {
    %c0_i32 = arith.constant 0 : i32
    %c0_i32_0 = arith.constant 0 : i32
    %c0_i32_1 = arith.constant 0 : i32
    return %c0_i32, %c0_i32_0 : i32, i32
  }
  func.func @transform_2(%arg0: i32) -> (i32, i32) {
    %c0_i32 = arith.constant 0 : i32
    %c0_i32_0 = arith.constant 0 : i32
    %c0_i32_1 = arith.constant 0 : i32
    return %c0_i32, %c0_i32_0 : i32, i32
  }
  func.func @transform_3(%arg0: i32) -> (i32, i32) {
    %c0_i32 = arith.constant 0 : i32
    %c0_i32_0 = arith.constant 0 : i32
    %c0_i32_1 = arith.constant 0 : i32
    return %c0_i32, %c0_i32_0 : i32, i32
  }
  func.func @transform_4(%arg0: i32) -> (i32, i32) {
    %c0_i32 = arith.constant 0 : i32
    %c0_i32_0 = arith.constant 0 : i32
    %c0_i32_1 = arith.constant 0 : i32
    return %c0_i32, %c0_i32_0 : i32, i32
  }
  func.func @transform_5(%arg0: i32) -> (i32, i32) {
    %c0_i32 = arith.constant 0 : i32
    %c0_i32_0 = arith.constant 0 : i32
    %c0_i32_1 = arith.constant 0 : i32
    return %c0_i32, %c0_i32_0 : i32, i32
  }
  func.func @transform_6(%arg0: i32) -> (i32, i32) {
    %c0_i32 = arith.constant 0 : i32
    %c0_i32_0 = arith.constant 0 : i32
    %c0_i32_1 = arith.constant 0 : i32
    return %c0_i32, %c0_i32_0 : i32, i32
  }
  func.func @transform_7(%arg0: i32) -> (i32, i32) {
    %c0_i32 = arith.constant 0 : i32
    %c0_i32_0 = arith.constant 0 : i32
    %c0_i32_1 = arith.constant 0 : i32
    return %c0_i32, %c0_i32_0 : i32, i32
  }
  func.func @transform_8(%arg0: i32) -> (i32, i32) {
    %c0_i32 = arith.constant 0 : i32
    %c0_i32_0 = arith.constant 0 : i32
    %c0_i32_1 = arith.constant 0 : i32
    return %c0_i32, %c0_i32_0 : i32, i32
  }
  func.func @transform_9(%arg0: i32) -> (i32, i32) {
    %c0_i32 = arith.constant 0 : i32
    %c0_i32_0 = arith.constant 0 : i32
    %c0_i32_1 = arith.constant 0 : i32
    return %c0_i32, %c0_i32_0 : i32, i32
  }
  func.func @transform_10(%arg0: i32) -> (i32, i32) {
    %c0_i32 = arith.constant 0 : i32
    %c0_i32_0 = arith.constant 0 : i32
    %c0_i32_1 = arith.constant 0 : i32
    return %c0_i32, %c0_i32_0 : i32, i32
  }
  func.func @transform_11(%arg0: i32) -> (i32, i32) {
    %c0_i32 = arith.constant 0 : i32
    %c0_i32_0 = arith.constant 0 : i32
    %c0_i32_1 = arith.constant 0 : i32
    return %c0_i32, %c0_i32_0 : i32, i32
  }
  func.func @transform_12(%arg0: i32) -> (i32, i32) {
    %c0_i32 = arith.constant 0 : i32
    %c0_i32_0 = arith.constant 0 : i32
    %c0_i32_1 = arith.constant 0 : i32
    return %c0_i32, %c0_i32_0 : i32, i32
  }
}

module attributes {stable_mosaic.version = 11 : i64} {
  func.func @_downsample_kernel(%arg0: i32, %arg1: memref<8x32xf32, #tpu.memory_space<vmem>>, %arg2: memref<8x1xf32, #tpu.memory_space<vmem>>, %arg3: memref<1x16xf32, #tpu.memory_space<vmem>>, %arg4: memref<1x16xf32, #tpu.memory_space<vmem>>, %arg5: memref<32x32xf32, #tpu.memory_space<vmem>>, %arg6: memref<1x32xf32, #tpu.memory_space<vmem>>, %arg7: memref<8x32xf32, #tpu.memory_space<vmem>>) attributes {dimension_semantics = [#tpu.dimension_semantics<parallel>], iteration_bounds = array<i64: 2>, scalar_prefetch = 0 : i64, scratch_operands = 0 : i64, tpu.core_type = #tpu.core_type<tc>, window_params = [{transform_indices = @transform_0, window_bounds = array<i64: 8, 32>}, {transform_indices = @transform_1, window_bounds = array<i64: 8, 1>}, {pipeline_mode = #tpu.pipeline_mode<synchronous>, transform_indices = @transform_2, window_bounds = array<i64: 1, 16>}, {pipeline_mode = #tpu.pipeline_mode<synchronous>, transform_indices = @transform_3, window_bounds = array<i64: 1, 16>}, {pipeline_mode = #tpu.pipeline_mode<synchronous>, transform_indices = @transform_4, window_bounds = array<i64: 32, 32>}, {pipeline_mode = #tpu.pipeline_mode<synchronous>, transform_indices = @transform_5, window_bounds = array<i64: 1, 32>}, {transform_indices = @transform_6, window_bounds = array<i64: 8, 32>}]} {
    %c0 = arith.constant 0 : index
    %c0_0 = arith.constant 0 : index
    %0 = vector.load %arg1[%c0, %c0_0] : memref<8x32xf32, #tpu.memory_space<vmem>>, vector<8x32xf32>
    %c0_1 = arith.constant 0 : index
    %c0_2 = arith.constant 0 : index
    %1 = vector.load %arg3[%c0_1, %c0_2] : memref<1x16xf32, #tpu.memory_space<vmem>>, vector<1x16xf32>
    %c0_3 = arith.constant 0 : index
    %c0_4 = arith.constant 0 : index
    %2 = vector.load %arg4[%c0_3, %c0_4] : memref<1x16xf32, #tpu.memory_space<vmem>>, vector<1x16xf32>
    %c0_5 = arith.constant 0 : index
    %c0_6 = arith.constant 0 : index
    %3 = vector.load %arg5[%c0_5, %c0_6] : memref<32x32xf32, #tpu.memory_space<vmem>>, vector<32x32xf32>
    %4 = vector.extract_strided_slice %0 {offsets = [0, 0], sizes = [8, 16], strides = [1, 1]} : vector<8x32xf32> to vector<8x16xf32>
    %cst = arith.constant dense<0.000000e+00> : vector<8xf32>
    %5 = vector.multi_reduction <add>, %4, %cst [1] : vector<8x16xf32> to vector<8xf32>
    %6 = vector.shape_cast %5 : vector<8xf32> to vector<8x1xf32>
    %cst_7 = arith.constant 1.600000e+01 : f32
    %7 = vector.broadcast %cst_7 : f32 to vector<8x1xf32>
    %8 = arith.divf %6, %7 : vector<8x1xf32>
    %9 = vector.broadcast %8 : vector<8x1xf32> to vector<8x16xf32>
    %10 = arith.subf %4, %9 : vector<8x16xf32>
    %11 = arith.mulf %10, %10 : vector<8x16xf32>
    %cst_8 = arith.constant dense<0.000000e+00> : vector<8xf32>
    %12 = vector.multi_reduction <add>, %11, %cst_8 [1] : vector<8x16xf32> to vector<8xf32>
    %13 = vector.shape_cast %12 : vector<8xf32> to vector<8x1xf32>
    %cst_9 = arith.constant 1.600000e+01 : f32
    %14 = vector.broadcast %cst_9 : f32 to vector<8x1xf32>
    %15 = arith.divf %13, %14 : vector<8x1xf32>
    %cst_10 = arith.constant 9.99999997E-7 : f32
    %16 = vector.broadcast %cst_10 : f32 to vector<8x1xf32>
    %17 = arith.addf %15, %16 : vector<8x1xf32>
    %18 = math.rsqrt %17 : vector<8x1xf32>
    %19 = vector.broadcast %18 : vector<8x1xf32> to vector<8x16xf32>
    %20 = arith.mulf %10, %19 : vector<8x16xf32>
    %21 = vector.broadcast %1 : vector<1x16xf32> to vector<8x16xf32>
    %22 = arith.mulf %20, %21 : vector<8x16xf32>
    %23 = vector.broadcast %2 : vector<1x16xf32> to vector<8x16xf32>
    %24 = arith.addf %22, %23 : vector<8x16xf32>
    %25 = vector.extract_strided_slice %0 {offsets = [0, 16], sizes = [8, 16], strides = [1, 1]} : vector<8x32xf32> to vector<8x16xf32>
    %cst_11 = arith.constant dense<0.000000e+00> : vector<8xf32>
    %26 = vector.multi_reduction <add>, %25, %cst_11 [1] : vector<8x16xf32> to vector<8xf32>
    %27 = vector.shape_cast %26 : vector<8xf32> to vector<8x1xf32>
    %cst_12 = arith.constant 1.600000e+01 : f32
    %28 = vector.broadcast %cst_12 : f32 to vector<8x1xf32>
    %29 = arith.divf %27, %28 : vector<8x1xf32>
    %30 = vector.broadcast %29 : vector<8x1xf32> to vector<8x16xf32>
    %31 = arith.subf %25, %30 : vector<8x16xf32>
    %32 = arith.mulf %31, %31 : vector<8x16xf32>
    %cst_13 = arith.constant dense<0.000000e+00> : vector<8xf32>
    %33 = vector.multi_reduction <add>, %32, %cst_13 [1] : vector<8x16xf32> to vector<8xf32>
    %34 = vector.shape_cast %33 : vector<8xf32> to vector<8x1xf32>
    %cst_14 = arith.constant 1.600000e+01 : f32
    %35 = vector.broadcast %cst_14 : f32 to vector<8x1xf32>
    %36 = arith.divf %34, %35 : vector<8x1xf32>
    %cst_15 = arith.constant 9.99999997E-7 : f32
    %37 = vector.broadcast %cst_15 : f32 to vector<8x1xf32>
    %38 = arith.addf %36, %37 : vector<8x1xf32>
    %39 = math.rsqrt %38 : vector<8x1xf32>
    %40 = vector.broadcast %39 : vector<8x1xf32> to vector<8x16xf32>
    %41 = arith.mulf %31, %40 : vector<8x16xf32>
    %42 = vector.broadcast %1 : vector<1x16xf32> to vector<8x16xf32>
    %43 = arith.mulf %41, %42 : vector<8x16xf32>
    %44 = vector.broadcast %2 : vector<1x16xf32> to vector<8x16xf32>
    %45 = arith.addf %43, %44 : vector<8x16xf32>
    %46 = vector.extract_strided_slice %3 {offsets = [0, 0], sizes = [16, 32], strides = [1, 1]} : vector<32x32xf32> to vector<16x32xf32>
    %cst_16 = arith.constant dense<0.000000e+00> : vector<8x32xf32>
    %47 = tpu.matmul %24, %46, %cst_16 {dimension_numbers = #tpu.dot_dimension_numbers<[1], [0], [0], [1], [0, 0, 1, 1], [], []>} : vector<8x16xf32>, vector<16x32xf32>, vector<8x32xf32> -> vector<8x32xf32>
    %48 = vector.extract_strided_slice %3 {offsets = [16, 0], sizes = [16, 32], strides = [1, 1]} : vector<32x32xf32> to vector<16x32xf32>
    %cst_17 = arith.constant dense<0.000000e+00> : vector<8x32xf32>
    %49 = tpu.matmul %45, %48, %cst_17 {dimension_numbers = #tpu.dot_dimension_numbers<[1], [0], [0], [1], [0, 0, 1, 1], [], []>} : vector<8x16xf32>, vector<16x32xf32>, vector<8x32xf32> -> vector<8x32xf32>
    %50 = arith.addf %47, %49 : vector<8x32xf32>
    %c0_18 = arith.constant 0 : index
    %c0_19 = arith.constant 0 : index
    %51 = vector.load %arg6[%c0_18, %c0_19] : memref<1x32xf32, #tpu.memory_space<vmem>>, vector<1x32xf32>
    %52 = vector.broadcast %51 : vector<1x32xf32> to vector<8x32xf32>
    %53 = arith.addf %50, %52 : vector<8x32xf32>
    %c0_20 = arith.constant 0 : index
    %c0_21 = arith.constant 0 : index
    %54 = vector.load %arg2[%c0_20, %c0_21] : memref<8x1xf32, #tpu.memory_space<vmem>>, vector<8x1xf32>
    %55 = vector.broadcast %54 : vector<8x1xf32> to vector<8x32xf32>
    %56 = arith.mulf %53, %55 : vector<8x32xf32>
    %c0_22 = arith.constant 0 : index
    %c0_23 = arith.constant 0 : index
    %57 = vector.load %arg7[%c0_22, %c0_23] : memref<8x32xf32, #tpu.memory_space<vmem>>, vector<8x32xf32>
    tpu.vector_store %arg7[%c0_22, %c0_23], %56 {strides = array<i32>} : memref<8x32xf32, #tpu.memory_space<vmem>>, vector<8x32xf32>,
    return
  }
  func.func @transform_0(%arg0: i32) -> (i32, i32) {
    %c0_i32 = arith.constant 0 : i32
    %c0_i32_0 = arith.constant 0 : i32
    return %arg0, %c0_i32 : i32, i32
  }
  func.func @transform_1(%arg0: i32) -> (i32, i32) {
    %c0_i32 = arith.constant 0 : i32
    %c0_i32_0 = arith.constant 0 : i32
    return %arg0, %c0_i32 : i32, i32
  }
  func.func @transform_2(%arg0: i32) -> (i32, i32) {
    %c0_i32 = arith.constant 0 : i32
    %c0_i32_0 = arith.constant 0 : i32
    %c0_i32_1 = arith.constant 0 : i32
    return %c0_i32, %c0_i32_0 : i32, i32
  }
  func.func @transform_3(%arg0: i32) -> (i32, i32) {
    %c0_i32 = arith.constant 0 : i32
    %c0_i32_0 = arith.constant 0 : i32
    %c0_i32_1 = arith.constant 0 : i32
    return %c0_i32, %c0_i32_0 : i32, i32
  }
  func.func @transform_4(%arg0: i32) -> (i32, i32) {
    %c0_i32 = arith.constant 0 : i32
    %c0_i32_0 = arith.constant 0 : i32
    %c0_i32_1 = arith.constant 0 : i32
    return %c0_i32, %c0_i32_0 : i32, i32
  }
  func.func @transform_5(%arg0: i32) -> (i32, i32) {
    %c0_i32 = arith.constant 0 : i32
    %c0_i32_0 = arith.constant 0 : i32
    %c0_i32_1 = arith.constant 0 : i32
    return %c0_i32, %c0_i32_0 : i32, i32
  }
  func.func @transform_6(%arg0: i32) -> (i32, i32) {
    %c0_i32 = arith.constant 0 : i32
    %c0_i32_0 = arith.constant 0 : i32
    return %arg0, %c0_i32 : i32, i32
  }
}

module attributes {stable_mosaic.version = 11 : i64} {
  func.func @_sparse_block_kernel(%arg0: i32, %arg1: memref<16x32xf32, #tpu.memory_space<vmem>>, %arg2: memref<16x1xf32, #tpu.memory_space<vmem>>, %arg3: memref<7x32xf32, #tpu.memory_space<vmem>>, %arg4: memref<1x32xf32, #tpu.memory_space<vmem>>, %arg5: memref<1x32xf32, #tpu.memory_space<vmem>>, %arg6: memref<1x32xf32, #tpu.memory_space<vmem>>, %arg7: memref<32x128xf32, #tpu.memory_space<vmem>>, %arg8: memref<1x128xf32, #tpu.memory_space<vmem>>, %arg9: memref<1x128xf32, #tpu.memory_space<vmem>>, %arg10: memref<1x128xf32, #tpu.memory_space<vmem>>, %arg11: memref<128x32xf32, #tpu.memory_space<vmem>>, %arg12: memref<1x32xf32, #tpu.memory_space<vmem>>, %arg13: memref<16x32xf32, #tpu.memory_space<vmem>>, %arg14: memref<32x32xf32, #tpu.memory_space<vmem>>) attributes {dimension_semantics = [#tpu.dimension_semantics<arbitrary>], iteration_bounds = array<i64: 1>, scalar_prefetch = 0 : i64, scratch_operands = 1 : i64, tpu.core_type = #tpu.core_type<tc>, window_params = [{pipeline_mode = #tpu.pipeline_mode<synchronous>, transform_indices = @transform_0, window_bounds = array<i64: 16, 32>}, {pipeline_mode = #tpu.pipeline_mode<synchronous>, transform_indices = @transform_1, window_bounds = array<i64: 16, 1>}, {pipeline_mode = #tpu.pipeline_mode<synchronous>, transform_indices = @transform_2, window_bounds = array<i64: 7, 32>}, {pipeline_mode = #tpu.pipeline_mode<synchronous>, transform_indices = @transform_3, window_bounds = array<i64: 1, 32>}, {pipeline_mode = #tpu.pipeline_mode<synchronous>, transform_indices = @transform_4, window_bounds = array<i64: 1, 32>}, {pipeline_mode = #tpu.pipeline_mode<synchronous>, transform_indices = @transform_5, window_bounds = array<i64: 1, 32>}, {pipeline_mode = #tpu.pipeline_mode<synchronous>, transform_indices = @transform_6, window_bounds = array<i64: 32, 128>}, {pipeline_mode = #tpu.pipeline_mode<synchronous>, transform_indices = @transform_7, window_bounds = array<i64: 1, 128>}, {pipeline_mode = #tpu.pipeline_mode<synchronous>, transform_indices = @transform_8, window_bounds = array<i64: 1, 128>}, {pipeline_mode = #tpu.pipeline_mode<synchronous>, transform_indices = @transform_9, window_bounds = array<i64: 1, 128>}, {pipeline_mode = #tpu.pipeline_mode<synchronous>, transform_indices = @transform_10, window_bounds = array<i64: 128, 32>}, {pipeline_mode = #tpu.pipeline_mode<synchronous>, transform_indices = @transform_11, window_bounds = array<i64: 1, 32>}, {pipeline_mode = #tpu.pipeline_mode<synchronous>, transform_indices = @transform_12, window_bounds = array<i64: 16, 32>}]} {
    %c0 = arith.constant 0 : index
    %c0_0 = arith.constant 0 : index
    %0 = vector.load %arg1[%c0, %c0_0] : memref<16x32xf32, #tpu.memory_space<vmem>>, vector<16x32xf32>
    %c0_1 = arith.constant 0 : index
    %c0_2 = arith.constant 0 : index
    %1 = vector.load %arg2[%c0_1, %c0_2] : memref<16x1xf32, #tpu.memory_space<vmem>>, vector<16x1xf32>
    %c0_3 = arith.constant 0 : index
    %c0_4 = arith.constant 0 : index
    %2 = vector.load %arg3[%c0_3, %c0_4] : memref<7x32xf32, #tpu.memory_space<vmem>>, vector<7x32xf32>
    %3 = tpu.iota {dimensions = array<i32: 0>} : vector<16x1xi32>
    %c8_i32 = arith.constant 8 : i32
    %c0_i32 = arith.constant 0 : i32
    %4 = arith.cmpi eq, %c8_i32, %c0_i32 : i32
    %c1_i32 = arith.constant 1 : i32
    %5 = arith.select %4, %c1_i32, %c8_i32 : i32
    %6 = vector.broadcast %5 : i32 to vector<16x1xi32>
    %7 = arith.remsi %3, %6 : vector<16x1xi32>
    %c0_i32_5 = arith.constant 0 : i32
    %8 = vector.broadcast %c0_i32_5 : i32 to vector<16x1xi32>
    %9 = arith.cmpi ne, %7, %8 : vector<16x1xi32>
    %c0_i32_6 = arith.constant 0 : i32
    %10 = vector.broadcast %c0_i32_6 : i32 to vector<16x1xi32>
    %11 = arith.cmpi slt, %7, %10 : vector<16x1xi32>
    %c0_i32_7 = arith.constant 0 : i32
    %12 = arith.cmpi slt, %5, %c0_i32_7 : i32
    %13 = vector.broadcast %12 : i1 to vector<16x1xi1>
    %14 = vector.broadcast %13 : vector<16x1xi1> to vector<16x1xi1>
    %15 = arith.xori %11, %14 : vector<16x1xi1>
    %16 = arith.andi %15, %9 : vector<16x1xi1>
    %17 = vector.broadcast %5 : i32 to vector<16x1xi32>
    %18 = arith.addi %7, %17 : vector<16x1xi32>
    %19 = arith.select %16, %18, %7 : vector<16x1xi1>, vector<16x1xi32>
    %cst = arith.constant 0.000000e+00 : f32
    %20 = vector.broadcast %cst : f32 to vector<8x32xf32>
    %c0_8 = arith.constant 0 : index
    %c0_9 = arith.constant 0 : index
    %21 = vector.load %arg14[%c0_8, %c0_9] : memref<32x32xf32, #tpu.memory_space<vmem>>, vector<8x32xf32>
    tpu.vector_store %arg14[%c0_8, %c0_9], %20 {strides = array<i32>} : memref<32x32xf32, #tpu.memory_space<vmem>>, vector<8x32xf32>,
    %cst_10 = arith.constant 0.000000e+00 : f32
    %22 = vector.broadcast %cst_10 : f32 to vector<8x32xf32>
    %c24 = arith.constant 24 : index
    %c0_11 = arith.constant 0 : index
    %23 = vector.load %arg14[%c24, %c0_11] : memref<32x32xf32, #tpu.memory_space<vmem>>, vector<8x32xf32>
    tpu.vector_store %arg14[%c24, %c0_11], %22 {strides = array<i32>} : memref<32x32xf32, #tpu.memory_space<vmem>>, vector<8x32xf32>,
    %c8 = arith.constant 8 : index
    %c0_12 = arith.constant 0 : index
    %24 = vector.load %arg14[%c8, %c0_12] : memref<32x32xf32, #tpu.memory_space<vmem>>, vector<16x32xf32>
    tpu.vector_store %arg14[%c8, %c0_12], %0 {strides = array<i32>} : memref<32x32xf32, #tpu.memory_space<vmem>>, vector<16x32xf32>,
    %25 = vector.extract_strided_slice %2 {offsets = [3, 0], sizes = [1, 32], strides = [1, 1]} : vector<7x32xf32> to vector<1x32xf32>
    %26 = vector.broadcast %25 : vector<1x32xf32> to vector<16x32xf32>
    %27 = arith.mulf %0, %26 : vector<16x32xf32>
    %c5 = arith.constant 5 : index
    %c0_13 = arith.constant 0 : index
    %28 = vector.load %arg14[%c5, %c0_13] : memref<32x32xf32, #tpu.memory_space<vmem>>, vector<16x32xf32>
    %c3_i32 = arith.constant 3 : i32
    %29 = vector.broadcast %c3_i32 : i32 to vector<16x1xi32>
    %30 = arith.cmpi sge, %19, %29 : vector<16x1xi32>
    %31 = arith.extui %30 : vector<16x1xi1> to vector<16x1xi32>
    %32 = arith.sitofp %31 : vector<16x1xi32> to vector<16x1xf32>
    %33 = vector.extract_strided_slice %2 {offsets = [0, 0], sizes = [1, 32], strides = [1, 1]} : vector<7x32xf32> to vector<1x32xf32>
    %34 = vector.broadcast %32 : vector<16x1xf32> to vector<16x32xf32>
    %35 = vector.broadcast %33 : vector<1x32xf32> to vector<16x32xf32>
    %36 = arith.mulf %34, %35 : vector<16x32xf32>
    %37 = arith.mulf %28, %36 : vector<16x32xf32>
    %38 = arith.addf %27, %37 : vector<16x32xf32>
    %c6 = arith.constant 6 : index
    %c0_14 = arith.constant 0 : index
    %39 = vector.load %arg14[%c6, %c0_14] : memref<32x32xf32, #tpu.memory_space<vmem>>, vector<16x32xf32>
    %c2_i32 = arith.constant 2 : i32
    %40 = vector.broadcast %c2_i32 : i32 to vector<16x1xi32>
    %41 = arith.cmpi sge, %19, %40 : vector<16x1xi32>
    %42 = arith.extui %41 : vector<16x1xi1> to vector<16x1xi32>
    %43 = arith.sitofp %42 : vector<16x1xi32> to vector<16x1xf32>
    %44 = vector.extract_strided_slice %2 {offsets = [1, 0], sizes = [1, 32], strides = [1, 1]} : vector<7x32xf32> to vector<1x32xf32>
    %45 = vector.broadcast %43 : vector<16x1xf32> to vector<16x32xf32>
    %46 = vector.broadcast %44 : vector<1x32xf32> to vector<16x32xf32>
    %47 = arith.mulf %45, %46 : vector<16x32xf32>
    %48 = arith.mulf %39, %47 : vector<16x32xf32>
    %49 = arith.addf %38, %48 : vector<16x32xf32>
    %c7 = arith.constant 7 : index
    %c0_15 = arith.constant 0 : index
    %50 = vector.load %arg14[%c7, %c0_15] : memref<32x32xf32, #tpu.memory_space<vmem>>, vector<16x32xf32>
    %c1_i32_16 = arith.constant 1 : i32
    %51 = vector.broadcast %c1_i32_16 : i32 to vector<16x1xi32>
    %52 = arith.cmpi sge, %19, %51 : vector<16x1xi32>
    %53 = arith.extui %52 : vector<16x1xi1> to vector<16x1xi32>
    %54 = arith.sitofp %53 : vector<16x1xi32> to vector<16x1xf32>
    %55 = vector.extract_strided_slice %2 {offsets = [2, 0], sizes = [1, 32], strides = [1, 1]} : vector<7x32xf32> to vector<1x32xf32>
    %56 = vector.broadcast %54 : vector<16x1xf32> to vector<16x32xf32>
    %57 = vector.broadcast %55 : vector<1x32xf32> to vector<16x32xf32>
    %58 = arith.mulf %56, %57 : vector<16x32xf32>
    %59 = arith.mulf %50, %58 : vector<16x32xf32>
    %60 = arith.addf %49, %59 : vector<16x32xf32>
    %c9 = arith.constant 9 : index
    %c0_17 = arith.constant 0 : index
    %61 = vector.load %arg14[%c9, %c0_17] : memref<32x32xf32, #tpu.memory_space<vmem>>, vector<16x32xf32>
    %c7_i32 = arith.constant 7 : i32
    %62 = vector.broadcast %c7_i32 : i32 to vector<16x1xi32>
    %63 = arith.cmpi slt, %19, %62 : vector<16x1xi32>
    %64 = arith.extui %63 : vector<16x1xi1> to vector<16x1xi32>
    %65 = arith.sitofp %64 : vector<16x1xi32> to vector<16x1xf32>
    %66 = vector.extract_strided_slice %2 {offsets = [4, 0], sizes = [1, 32], strides = [1, 1]} : vector<7x32xf32> to vector<1x32xf32>
    %67 = vector.broadcast %65 : vector<16x1xf32> to vector<16x32xf32>
    %68 = vector.broadcast %66 : vector<1x32xf32> to vector<16x32xf32>
    %69 = arith.mulf %67, %68 : vector<16x32xf32>
    %70 = arith.mulf %61, %69 : vector<16x32xf32>
    %71 = arith.addf %60, %70 : vector<16x32xf32>
    %c10 = arith.constant 10 : index
    %c0_18 = arith.constant 0 : index
    %72 = vector.load %arg14[%c10, %c0_18] : memref<32x32xf32, #tpu.memory_space<vmem>>, vector<16x32xf32>
    %c6_i32 = arith.constant 6 : i32
    %73 = vector.broadcast %c6_i32 : i32 to vector<16x1xi32>
    %74 = arith.cmpi slt, %19, %73 : vector<16x1xi32>
    %75 = arith.extui %74 : vector<16x1xi1> to vector<16x1xi32>
    %76 = arith.sitofp %75 : vector<16x1xi32> to vector<16x1xf32>
    %77 = vector.extract_strided_slice %2 {offsets = [5, 0], sizes = [1, 32], strides = [1, 1]} : vector<7x32xf32> to vector<1x32xf32>
    %78 = vector.broadcast %76 : vector<16x1xf32> to vector<16x32xf32>
    %79 = vector.broadcast %77 : vector<1x32xf32> to vector<16x32xf32>
    %80 = arith.mulf %78, %79 : vector<16x32xf32>
    %81 = arith.mulf %72, %80 : vector<16x32xf32>
    %82 = arith.addf %71, %81 : vector<16x32xf32>
    %c11 = arith.constant 11 : index
    %c0_19 = arith.constant 0 : index
    %83 = vector.load %arg14[%c11, %c0_19] : memref<32x32xf32, #tpu.memory_space<vmem>>, vector<16x32xf32>
    %c5_i32 = arith.constant 5 : i32
    %84 = vector.broadcast %c5_i32 : i32 to vector<16x1xi32>
    %85 = arith.cmpi slt, %19, %84 : vector<16x1xi32>
    %86 = arith.extui %85 : vector<16x1xi1> to vector<16x1xi32>
    %87 = arith.sitofp %86 : vector<16x1xi32> to vector<16x1xf32>
    %88 = vector.extract_strided_slice %2 {offsets = [6, 0], sizes = [1, 32], strides = [1, 1]} : vector<7x32xf32> to vector<1x32xf32>
    %89 = vector.broadcast %87 : vector<16x1xf32> to vector<16x32xf32>
    %90 = vector.broadcast %88 : vector<1x32xf32> to vector<16x32xf32>
    %91 = arith.mulf %89, %90 : vector<16x32xf32>
    %92 = arith.mulf %83, %91 : vector<16x32xf32>
    %93 = arith.addf %82, %92 : vector<16x32xf32>
    %c0_20 = arith.constant 0 : index
    %c0_21 = arith.constant 0 : index
    %94 = vector.load %arg4[%c0_20, %c0_21] : memref<1x32xf32, #tpu.memory_space<vmem>>, vector<1x32xf32>
    %95 = vector.broadcast %94 : vector<1x32xf32> to vector<16x32xf32>
    %96 = arith.addf %93, %95 : vector<16x32xf32>
    %97 = vector.broadcast %1 : vector<16x1xf32> to vector<16x32xf32>
    %98 = arith.mulf %96, %97 : vector<16x32xf32>
    %c0_22 = arith.constant 0 : index
    %c0_23 = arith.constant 0 : index
    %99 = vector.load %arg5[%c0_22, %c0_23] : memref<1x32xf32, #tpu.memory_space<vmem>>, vector<1x32xf32>
    %c0_24 = arith.constant 0 : index
    %c0_25 = arith.constant 0 : index
    %100 = vector.load %arg6[%c0_24, %c0_25] : memref<1x32xf32, #tpu.memory_space<vmem>>, vector<1x32xf32>
    %cst_26 = arith.constant dense<0.000000e+00> : vector<16xf32>
    %101 = vector.multi_reduction <add>, %98, %cst_26 [1] : vector<16x32xf32> to vector<16xf32>
    %102 = vector.shape_cast %101 : vector<16xf32> to vector<16x1xf32>
    %cst_27 = arith.constant 3.200000e+01 : f32
    %103 = vector.broadcast %cst_27 : f32 to vector<16x1xf32>
    %104 = arith.divf %102, %103 : vector<16x1xf32>
    %105 = vector.broadcast %104 : vector<16x1xf32> to vector<16x32xf32>
    %106 = arith.subf %98, %105 : vector<16x32xf32>
    %107 = arith.mulf %106, %106 : vector<16x32xf32>
    %cst_28 = arith.constant dense<0.000000e+00> : vector<16xf32>
    %108 = vector.multi_reduction <add>, %107, %cst_28 [1] : vector<16x32xf32> to vector<16xf32>
    %109 = vector.shape_cast %108 : vector<16xf32> to vector<16x1xf32>
    %cst_29 = arith.constant 3.200000e+01 : f32
    %110 = vector.broadcast %cst_29 : f32 to vector<16x1xf32>
    %111 = arith.divf %109, %110 : vector<16x1xf32>
    %cst_30 = arith.constant 9.99999997E-7 : f32
    %112 = vector.broadcast %cst_30 : f32 to vector<16x1xf32>
    %113 = arith.addf %111, %112 : vector<16x1xf32>
    %114 = math.rsqrt %113 : vector<16x1xf32>
    %115 = vector.broadcast %114 : vector<16x1xf32> to vector<16x32xf32>
    %116 = arith.mulf %106, %115 : vector<16x32xf32>
    %117 = vector.broadcast %99 : vector<1x32xf32> to vector<16x32xf32>
    %118 = arith.mulf %116, %117 : vector<16x32xf32>
    %119 = vector.broadcast %100 : vector<1x32xf32> to vector<16x32xf32>
    %120 = arith.addf %118, %119 : vector<16x32xf32>
    %121 = vector.broadcast %1 : vector<16x1xf32> to vector<16x32xf32>
    %122 = arith.mulf %120, %121 : vector<16x32xf32>
    %c0_31 = arith.constant 0 : index
    %c0_32 = arith.constant 0 : index
    %123 = vector.load %arg7[%c0_31, %c0_32] : memref<32x128xf32, #tpu.memory_space<vmem>>, vector<32x128xf32>
    %cst_33 = arith.constant dense<0.000000e+00> : vector<16x128xf32>
    %124 = tpu.matmul %122, %123, %cst_33 {dimension_numbers = #tpu.dot_dimension_numbers<[1], [0], [0], [1], [0, 0, 1, 1], [], []>} : vector<16x32xf32>, vector<32x128xf32>, vector<16x128xf32> -> vector<16x128xf32>
    %c0_34 = arith.constant 0 : index
    %c0_35 = arith.constant 0 : index
    %125 = vector.load %arg8[%c0_34, %c0_35] : memref<1x128xf32, #tpu.memory_space<vmem>>, vector<1x128xf32>
    %126 = vector.broadcast %125 : vector<1x128xf32> to vector<16x128xf32>
    %127 = arith.addf %124, %126 : vector<16x128xf32>
    %cst_36 = arith.constant 5.000000e-01 : f32
    %128 = vector.broadcast %cst_36 : f32 to vector<16x128xf32>
    %129 = arith.mulf %128, %127 : vector<16x128xf32>
    %cst_37 = arith.constant 0.707106769 : f32
    %130 = vector.broadcast %cst_37 : f32 to vector<16x128xf32>
    %131 = arith.mulf %127, %130 : vector<16x128xf32>
    %132 = math.erf %131 : vector<16x128xf32>
    %cst_38 = arith.constant 1.000000e+00 : f32
    %133 = vector.broadcast %cst_38 : f32 to vector<16x128xf32>
    %134 = arith.addf %133, %132 : vector<16x128xf32>
    %135 = arith.mulf %129, %134 : vector<16x128xf32>
    %136 = vector.broadcast %1 : vector<16x1xf32> to vector<16x128xf32>
    %137 = arith.mulf %135, %136 : vector<16x128xf32>
    %138 = arith.mulf %137, %137 : vector<16x128xf32>
    %cst_39 = arith.constant dense<0.000000e+00> : vector<128xf32>
    %139 = vector.multi_reduction <add>, %138, %cst_39 [0] : vector<16x128xf32> to vector<128xf32>
    %140 = vector.shape_cast %139 : vector<128xf32> to vector<1x128xf32>
    %141 = math.sqrt %140 : vector<1x128xf32>
    %cst_40 = arith.constant dense<0.000000e+00> : vector<1xf32>
    %142 = vector.multi_reduction <add>, %141, %cst_40 [1] : vector<1x128xf32> to vector<1xf32>
    %143 = vector.shape_cast %142 : vector<1xf32> to vector<1x1xf32>
    %cst_41 = arith.constant 1.280000e+02 : f32
    %144 = vector.broadcast %cst_41 : f32 to vector<1x1xf32>
    %145 = arith.divf %143, %144 : vector<1x1xf32>
    %cst_42 = arith.constant 9.99999997E-7 : f32
    %146 = vector.broadcast %cst_42 : f32 to vector<1x1xf32>
    %147 = arith.addf %145, %146 : vector<1x1xf32>
    %148 = vector.broadcast %147 : vector<1x1xf32> to vector<1x128xf32>
    %149 = arith.divf %141, %148 : vector<1x128xf32>
    %c0_43 = arith.constant 0 : index
    %c0_44 = arith.constant 0 : index
    %150 = vector.load %arg9[%c0_43, %c0_44] : memref<1x128xf32, #tpu.memory_space<vmem>>, vector<1x128xf32>
    %151 = vector.broadcast %149 : vector<1x128xf32> to vector<16x128xf32>
    %152 = arith.mulf %137, %151 : vector<16x128xf32>
    %153 = vector.broadcast %150 : vector<1x128xf32> to vector<16x128xf32>
    %154 = arith.mulf %153, %152 : vector<16x128xf32>
    %c0_45 = arith.constant 0 : index
    %c0_46 = arith.constant 0 : index
    %155 = vector.load %arg10[%c0_45, %c0_46] : memref<1x128xf32, #tpu.memory_space<vmem>>, vector<1x128xf32>
    %156 = vector.broadcast %155 : vector<1x128xf32> to vector<16x128xf32>
    %157 = arith.addf %154, %156 : vector<16x128xf32>
    %158 = arith.addf %157, %137 : vector<16x128xf32>
    %c0_47 = arith.constant 0 : index
    %c0_48 = arith.constant 0 : index
    %159 = vector.load %arg11[%c0_47, %c0_48] : memref<128x32xf32, #tpu.memory_space<vmem>>, vector<128x32xf32>
    %cst_49 = arith.constant dense<0.000000e+00> : vector<16x32xf32>
    %160 = tpu.matmul %158, %159, %cst_49 {dimension_numbers = #tpu.dot_dimension_numbers<[1], [0], [0], [1], [0, 0, 1, 1], [], []>} : vector<16x128xf32>, vector<128x32xf32>, vector<16x32xf32> -> vector<16x32xf32>
    %c0_50 = arith.constant 0 : index
    %c0_51 = arith.constant 0 : index
    %161 = vector.load %arg12[%c0_50, %c0_51] : memref<1x32xf32, #tpu.memory_space<vmem>>, vector<1x32xf32>
    %162 = vector.broadcast %161 : vector<1x32xf32> to vector<16x32xf32>
    %163 = arith.addf %160, %162 : vector<16x32xf32>
    %164 = vector.broadcast %1 : vector<16x1xf32> to vector<16x32xf32>
    %165 = arith.mulf %163, %164 : vector<16x32xf32>
    %166 = arith.addf %0, %165 : vector<16x32xf32>
    %c0_52 = arith.constant 0 : index
    %c0_53 = arith.constant 0 : index
    %167 = vector.load %arg13[%c0_52, %c0_53] : memref<16x32xf32, #tpu.memory_space<vmem>>, vector<16x32xf32>
    tpu.vector_store %arg13[%c0_52, %c0_53], %166 {strides = array<i32>} : memref<16x32xf32, #tpu.memory_space<vmem>>, vector<16x32xf32>,
    return
  }
  func.func @transform_0(%arg0: i32) -> (i32, i32) {
    %c0_i32 = arith.constant 0 : i32
    %c0_i32_0 = arith.constant 0 : i32
    %c0_i32_1 = arith.constant 0 : i32
    return %c0_i32, %c0_i32_0 : i32, i32
  }
  func.func @transform_1(%arg0: i32) -> (i32, i32) {
    %c0_i32 = arith.constant 0 : i32
    %c0_i32_0 = arith.constant 0 : i32
    %c0_i32_1 = arith.constant 0 : i32
    return %c0_i32, %c0_i32_0 : i32, i32
  }
  func.func @transform_2(%arg0: i32) -> (i32, i32) {
    %c0_i32 = arith.constant 0 : i32
    %c0_i32_0 = arith.constant 0 : i32
    %c0_i32_1 = arith.constant 0 : i32
    return %c0_i32, %c0_i32_0 : i32, i32
  }
  func.func @transform_3(%arg0: i32) -> (i32, i32) {
    %c0_i32 = arith.constant 0 : i32
    %c0_i32_0 = arith.constant 0 : i32
    %c0_i32_1 = arith.constant 0 : i32
    return %c0_i32, %c0_i32_0 : i32, i32
  }
  func.func @transform_4(%arg0: i32) -> (i32, i32) {
    %c0_i32 = arith.constant 0 : i32
    %c0_i32_0 = arith.constant 0 : i32
    %c0_i32_1 = arith.constant 0 : i32
    return %c0_i32, %c0_i32_0 : i32, i32
  }
  func.func @transform_5(%arg0: i32) -> (i32, i32) {
    %c0_i32 = arith.constant 0 : i32
    %c0_i32_0 = arith.constant 0 : i32
    %c0_i32_1 = arith.constant 0 : i32
    return %c0_i32, %c0_i32_0 : i32, i32
  }
  func.func @transform_6(%arg0: i32) -> (i32, i32) {
    %c0_i32 = arith.constant 0 : i32
    %c0_i32_0 = arith.constant 0 : i32
    %c0_i32_1 = arith.constant 0 : i32
    return %c0_i32, %c0_i32_0 : i32, i32
  }
  func.func @transform_7(%arg0: i32) -> (i32, i32) {
    %c0_i32 = arith.constant 0 : i32
    %c0_i32_0 = arith.constant 0 : i32
    %c0_i32_1 = arith.constant 0 : i32
    return %c0_i32, %c0_i32_0 : i32, i32
  }
  func.func @transform_8(%arg0: i32) -> (i32, i32) {
    %c0_i32 = arith.constant 0 : i32
    %c0_i32_0 = arith.constant 0 : i32
    %c0_i32_1 = arith.constant 0 : i32
    return %c0_i32, %c0_i32_0 : i32, i32
  }
  func.func @transform_9(%arg0: i32) -> (i32, i32) {
    %c0_i32 = arith.constant 0 : i32
    %c0_i32_0 = arith.constant 0 : i32
    %c0_i32_1 = arith.constant 0 : i32
    return %c0_i32, %c0_i32_0 : i32, i32
  }
  func.func @transform_10(%arg0: i32) -> (i32, i32) {
    %c0_i32 = arith.constant 0 : i32
    %c0_i32_0 = arith.constant 0 : i32
    %c0_i32_1 = arith.constant 0 : i32
    return %c0_i32, %c0_i32_0 : i32, i32
  }
  func.func @transform_11(%arg0: i32) -> (i32, i32) {
    %c0_i32 = arith.constant 0 : i32
    %c0_i32_0 = arith.constant 0 : i32
    %c0_i32_1 = arith.constant 0 : i32
    return %c0_i32, %c0_i32_0 : i32, i32
  }
  func.func @transform_12(%arg0: i32) -> (i32, i32) {
    %c0_i32 = arith.constant 0 : i32
    %c0_i32_0 = arith.constant 0 : i32
    %c0_i32_1 = arith.constant 0 : i32
    return %c0_i32, %c0_i32_0 : i32, i32
  }
}

module attributes {stable_mosaic.version = 11 : i64} {
  func.func @_sparse_block_kernel(%arg0: i32, %arg1: memref<8x64xf32, #tpu.memory_space<vmem>>, %arg2: memref<8x1xf32, #tpu.memory_space<vmem>>, %arg3: memref<7x64xf32, #tpu.memory_space<vmem>>, %arg4: memref<1x64xf32, #tpu.memory_space<vmem>>, %arg5: memref<1x64xf32, #tpu.memory_space<vmem>>, %arg6: memref<1x64xf32, #tpu.memory_space<vmem>>, %arg7: memref<64x256xf32, #tpu.memory_space<vmem>>, %arg8: memref<1x256xf32, #tpu.memory_space<vmem>>, %arg9: memref<1x256xf32, #tpu.memory_space<vmem>>, %arg10: memref<1x256xf32, #tpu.memory_space<vmem>>, %arg11: memref<256x64xf32, #tpu.memory_space<vmem>>, %arg12: memref<1x64xf32, #tpu.memory_space<vmem>>, %arg13: memref<8x64xf32, #tpu.memory_space<vmem>>, %arg14: memref<24x64xf32, #tpu.memory_space<vmem>>) attributes {dimension_semantics = [#tpu.dimension_semantics<arbitrary>], iteration_bounds = array<i64: 1>, scalar_prefetch = 0 : i64, scratch_operands = 1 : i64, tpu.core_type = #tpu.core_type<tc>, window_params = [{pipeline_mode = #tpu.pipeline_mode<synchronous>, transform_indices = @transform_0, window_bounds = array<i64: 8, 64>}, {pipeline_mode = #tpu.pipeline_mode<synchronous>, transform_indices = @transform_1, window_bounds = array<i64: 8, 1>}, {pipeline_mode = #tpu.pipeline_mode<synchronous>, transform_indices = @transform_2, window_bounds = array<i64: 7, 64>}, {pipeline_mode = #tpu.pipeline_mode<synchronous>, transform_indices = @transform_3, window_bounds = array<i64: 1, 64>}, {pipeline_mode = #tpu.pipeline_mode<synchronous>, transform_indices = @transform_4, window_bounds = array<i64: 1, 64>}, {pipeline_mode = #tpu.pipeline_mode<synchronous>, transform_indices = @transform_5, window_bounds = array<i64: 1, 64>}, {pipeline_mode = #tpu.pipeline_mode<synchronous>, transform_indices = @transform_6, window_bounds = array<i64: 64, 256>}, {pipeline_mode = #tpu.pipeline_mode<synchronous>, transform_indices = @transform_7, window_bounds = array<i64: 1, 256>}, {pipeline_mode = #tpu.pipeline_mode<synchronous>, transform_indices = @transform_8, window_bounds = array<i64: 1, 256>}, {pipeline_mode = #tpu.pipeline_mode<synchronous>, transform_indices = @transform_9, window_bounds = array<i64: 1, 256>}, {pipeline_mode = #tpu.pipeline_mode<synchronous>, transform_indices = @transform_10, window_bounds = array<i64: 256, 64>}, {pipeline_mode = #tpu.pipeline_mode<synchronous>, transform_indices = @transform_11, window_bounds = array<i64: 1, 64>}, {pipeline_mode = #tpu.pipeline_mode<synchronous>, transform_indices = @transform_12, window_bounds = array<i64: 8, 64>}]} {
    %c0 = arith.constant 0 : index
    %c0_0 = arith.constant 0 : index
    %0 = vector.load %arg1[%c0, %c0_0] : memref<8x64xf32, #tpu.memory_space<vmem>>, vector<8x64xf32>
    %c0_1 = arith.constant 0 : index
    %c0_2 = arith.constant 0 : index
    %1 = vector.load %arg2[%c0_1, %c0_2] : memref<8x1xf32, #tpu.memory_space<vmem>>, vector<8x1xf32>
    %c0_3 = arith.constant 0 : index
    %c0_4 = arith.constant 0 : index
    %2 = vector.load %arg3[%c0_3, %c0_4] : memref<7x64xf32, #tpu.memory_space<vmem>>, vector<7x64xf32>
    %3 = tpu.iota {dimensions = array<i32: 0>} : vector<8x1xi32>
    %c4_i32 = arith.constant 4 : i32
    %c0_i32 = arith.constant 0 : i32
    %4 = arith.cmpi eq, %c4_i32, %c0_i32 : i32
    %c1_i32 = arith.constant 1 : i32
    %5 = arith.select %4, %c1_i32, %c4_i32 : i32
    %6 = vector.broadcast %5 : i32 to vector<8x1xi32>
    %7 = arith.remsi %3, %6 : vector<8x1xi32>
    %c0_i32_5 = arith.constant 0 : i32
    %8 = vector.broadcast %c0_i32_5 : i32 to vector<8x1xi32>
    %9 = arith.cmpi ne, %7, %8 : vector<8x1xi32>
    %c0_i32_6 = arith.constant 0 : i32
    %10 = vector.broadcast %c0_i32_6 : i32 to vector<8x1xi32>
    %11 = arith.cmpi slt, %7, %10 : vector<8x1xi32>
    %c0_i32_7 = arith.constant 0 : i32
    %12 = arith.cmpi slt, %5, %c0_i32_7 : i32
    %13 = vector.broadcast %12 : i1 to vector<8x1xi1>
    %14 = vector.broadcast %13 : vector<8x1xi1> to vector<8x1xi1>
    %15 = arith.xori %11, %14 : vector<8x1xi1>
    %16 = arith.andi %15, %9 : vector<8x1xi1>
    %17 = vector.broadcast %5 : i32 to vector<8x1xi32>
    %18 = arith.addi %7, %17 : vector<8x1xi32>
    %19 = arith.select %16, %18, %7 : vector<8x1xi1>, vector<8x1xi32>
    %cst = arith.constant 0.000000e+00 : f32
    %20 = vector.broadcast %cst : f32 to vector<8x64xf32>
    %c0_8 = arith.constant 0 : index
    %c0_9 = arith.constant 0 : index
    %21 = vector.load %arg14[%c0_8, %c0_9] : memref<24x64xf32, #tpu.memory_space<vmem>>, vector<8x64xf32>
    tpu.vector_store %arg14[%c0_8, %c0_9], %20 {strides = array<i32>} : memref<24x64xf32, #tpu.memory_space<vmem>>, vector<8x64xf32>,
    %cst_10 = arith.constant 0.000000e+00 : f32
    %22 = vector.broadcast %cst_10 : f32 to vector<8x64xf32>
    %c16 = arith.constant 16 : index
    %c0_11 = arith.constant 0 : index
    %23 = vector.load %arg14[%c16, %c0_11] : memref<24x64xf32, #tpu.memory_space<vmem>>, vector<8x64xf32>
    tpu.vector_store %arg14[%c16, %c0_11], %22 {strides = array<i32>} : memref<24x64xf32, #tpu.memory_space<vmem>>, vector<8x64xf32>,
    %c8 = arith.constant 8 : index
    %c0_12 = arith.constant 0 : index
    %24 = vector.load %arg14[%c8, %c0_12] : memref<24x64xf32, #tpu.memory_space<vmem>>, vector<8x64xf32>
    tpu.vector_store %arg14[%c8, %c0_12], %0 {strides = array<i32>} : memref<24x64xf32, #tpu.memory_space<vmem>>, vector<8x64xf32>,
    %25 = vector.extract_strided_slice %2 {offsets = [3, 0], sizes = [1, 64], strides = [1, 1]} : vector<7x64xf32> to vector<1x64xf32>
    %26 = vector.broadcast %25 : vector<1x64xf32> to vector<8x64xf32>
    %27 = arith.mulf %0, %26 : vector<8x64xf32>
    %c5 = arith.constant 5 : index
    %c0_13 = arith.constant 0 : index
    %28 = vector.load %arg14[%c5, %c0_13] : memref<24x64xf32, #tpu.memory_space<vmem>>, vector<8x64xf32>
    %c3_i32 = arith.constant 3 : i32
    %29 = vector.broadcast %c3_i32 : i32 to vector<8x1xi32>
    %30 = arith.cmpi sge, %19, %29 : vector<8x1xi32>
    %31 = arith.extui %30 : vector<8x1xi1> to vector<8x1xi32>
    %32 = arith.sitofp %31 : vector<8x1xi32> to vector<8x1xf32>
    %33 = vector.extract_strided_slice %2 {offsets = [0, 0], sizes = [1, 64], strides = [1, 1]} : vector<7x64xf32> to vector<1x64xf32>
    %34 = vector.broadcast %32 : vector<8x1xf32> to vector<8x64xf32>
    %35 = vector.broadcast %33 : vector<1x64xf32> to vector<8x64xf32>
    %36 = arith.mulf %34, %35 : vector<8x64xf32>
    %37 = arith.mulf %28, %36 : vector<8x64xf32>
    %38 = arith.addf %27, %37 : vector<8x64xf32>
    %c6 = arith.constant 6 : index
    %c0_14 = arith.constant 0 : index
    %39 = vector.load %arg14[%c6, %c0_14] : memref<24x64xf32, #tpu.memory_space<vmem>>, vector<8x64xf32>
    %c2_i32 = arith.constant 2 : i32
    %40 = vector.broadcast %c2_i32 : i32 to vector<8x1xi32>
    %41 = arith.cmpi sge, %19, %40 : vector<8x1xi32>
    %42 = arith.extui %41 : vector<8x1xi1> to vector<8x1xi32>
    %43 = arith.sitofp %42 : vector<8x1xi32> to vector<8x1xf32>
    %44 = vector.extract_strided_slice %2 {offsets = [1, 0], sizes = [1, 64], strides = [1, 1]} : vector<7x64xf32> to vector<1x64xf32>
    %45 = vector.broadcast %43 : vector<8x1xf32> to vector<8x64xf32>
    %46 = vector.broadcast %44 : vector<1x64xf32> to vector<8x64xf32>
    %47 = arith.mulf %45, %46 : vector<8x64xf32>
    %48 = arith.mulf %39, %47 : vector<8x64xf32>
    %49 = arith.addf %38, %48 : vector<8x64xf32>
    %c7 = arith.constant 7 : index
    %c0_15 = arith.constant 0 : index
    %50 = vector.load %arg14[%c7, %c0_15] : memref<24x64xf32, #tpu.memory_space<vmem>>, vector<8x64xf32>
    %c1_i32_16 = arith.constant 1 : i32
    %51 = vector.broadcast %c1_i32_16 : i32 to vector<8x1xi32>
    %52 = arith.cmpi sge, %19, %51 : vector<8x1xi32>
    %53 = arith.extui %52 : vector<8x1xi1> to vector<8x1xi32>
    %54 = arith.sitofp %53 : vector<8x1xi32> to vector<8x1xf32>
    %55 = vector.extract_strided_slice %2 {offsets = [2, 0], sizes = [1, 64], strides = [1, 1]} : vector<7x64xf32> to vector<1x64xf32>
    %56 = vector.broadcast %54 : vector<8x1xf32> to vector<8x64xf32>
    %57 = vector.broadcast %55 : vector<1x64xf32> to vector<8x64xf32>
    %58 = arith.mulf %56, %57 : vector<8x64xf32>
    %59 = arith.mulf %50, %58 : vector<8x64xf32>
    %60 = arith.addf %49, %59 : vector<8x64xf32>
    %c9 = arith.constant 9 : index
    %c0_17 = arith.constant 0 : index
    %61 = vector.load %arg14[%c9, %c0_17] : memref<24x64xf32, #tpu.memory_space<vmem>>, vector<8x64xf32>
    %c3_i32_18 = arith.constant 3 : i32
    %62 = vector.broadcast %c3_i32_18 : i32 to vector<8x1xi32>
    %63 = arith.cmpi slt, %19, %62 : vector<8x1xi32>
    %64 = arith.extui %63 : vector<8x1xi1> to vector<8x1xi32>
    %65 = arith.sitofp %64 : vector<8x1xi32> to vector<8x1xf32>
    %66 = vector.extract_strided_slice %2 {offsets = [4, 0], sizes = [1, 64], strides = [1, 1]} : vector<7x64xf32> to vector<1x64xf32>
    %67 = vector.broadcast %65 : vector<8x1xf32> to vector<8x64xf32>
    %68 = vector.broadcast %66 : vector<1x64xf32> to vector<8x64xf32>
    %69 = arith.mulf %67, %68 : vector<8x64xf32>
    %70 = arith.mulf %61, %69 : vector<8x64xf32>
    %71 = arith.addf %60, %70 : vector<8x64xf32>
    %c10 = arith.constant 10 : index
    %c0_19 = arith.constant 0 : index
    %72 = vector.load %arg14[%c10, %c0_19] : memref<24x64xf32, #tpu.memory_space<vmem>>, vector<8x64xf32>
    %c2_i32_20 = arith.constant 2 : i32
    %73 = vector.broadcast %c2_i32_20 : i32 to vector<8x1xi32>
    %74 = arith.cmpi slt, %19, %73 : vector<8x1xi32>
    %75 = arith.extui %74 : vector<8x1xi1> to vector<8x1xi32>
    %76 = arith.sitofp %75 : vector<8x1xi32> to vector<8x1xf32>
    %77 = vector.extract_strided_slice %2 {offsets = [5, 0], sizes = [1, 64], strides = [1, 1]} : vector<7x64xf32> to vector<1x64xf32>
    %78 = vector.broadcast %76 : vector<8x1xf32> to vector<8x64xf32>
    %79 = vector.broadcast %77 : vector<1x64xf32> to vector<8x64xf32>
    %80 = arith.mulf %78, %79 : vector<8x64xf32>
    %81 = arith.mulf %72, %80 : vector<8x64xf32>
    %82 = arith.addf %71, %81 : vector<8x64xf32>
    %c11 = arith.constant 11 : index
    %c0_21 = arith.constant 0 : index
    %83 = vector.load %arg14[%c11, %c0_21] : memref<24x64xf32, #tpu.memory_space<vmem>>, vector<8x64xf32>
    %c1_i32_22 = arith.constant 1 : i32
    %84 = vector.broadcast %c1_i32_22 : i32 to vector<8x1xi32>
    %85 = arith.cmpi slt, %19, %84 : vector<8x1xi32>
    %86 = arith.extui %85 : vector<8x1xi1> to vector<8x1xi32>
    %87 = arith.sitofp %86 : vector<8x1xi32> to vector<8x1xf32>
    %88 = vector.extract_strided_slice %2 {offsets = [6, 0], sizes = [1, 64], strides = [1, 1]} : vector<7x64xf32> to vector<1x64xf32>
    %89 = vector.broadcast %87 : vector<8x1xf32> to vector<8x64xf32>
    %90 = vector.broadcast %88 : vector<1x64xf32> to vector<8x64xf32>
    %91 = arith.mulf %89, %90 : vector<8x64xf32>
    %92 = arith.mulf %83, %91 : vector<8x64xf32>
    %93 = arith.addf %82, %92 : vector<8x64xf32>
    %c0_23 = arith.constant 0 : index
    %c0_24 = arith.constant 0 : index
    %94 = vector.load %arg4[%c0_23, %c0_24] : memref<1x64xf32, #tpu.memory_space<vmem>>, vector<1x64xf32>
    %95 = vector.broadcast %94 : vector<1x64xf32> to vector<8x64xf32>
    %96 = arith.addf %93, %95 : vector<8x64xf32>
    %97 = vector.broadcast %1 : vector<8x1xf32> to vector<8x64xf32>
    %98 = arith.mulf %96, %97 : vector<8x64xf32>
    %c0_25 = arith.constant 0 : index
    %c0_26 = arith.constant 0 : index
    %99 = vector.load %arg5[%c0_25, %c0_26] : memref<1x64xf32, #tpu.memory_space<vmem>>, vector<1x64xf32>
    %c0_27 = arith.constant 0 : index
    %c0_28 = arith.constant 0 : index
    %100 = vector.load %arg6[%c0_27, %c0_28] : memref<1x64xf32, #tpu.memory_space<vmem>>, vector<1x64xf32>
    %cst_29 = arith.constant dense<0.000000e+00> : vector<8xf32>
    %101 = vector.multi_reduction <add>, %98, %cst_29 [1] : vector<8x64xf32> to vector<8xf32>
    %102 = vector.shape_cast %101 : vector<8xf32> to vector<8x1xf32>
    %cst_30 = arith.constant 6.400000e+01 : f32
    %103 = vector.broadcast %cst_30 : f32 to vector<8x1xf32>
    %104 = arith.divf %102, %103 : vector<8x1xf32>
    %105 = vector.broadcast %104 : vector<8x1xf32> to vector<8x64xf32>
    %106 = arith.subf %98, %105 : vector<8x64xf32>
    %107 = arith.mulf %106, %106 : vector<8x64xf32>
    %cst_31 = arith.constant dense<0.000000e+00> : vector<8xf32>
    %108 = vector.multi_reduction <add>, %107, %cst_31 [1] : vector<8x64xf32> to vector<8xf32>
    %109 = vector.shape_cast %108 : vector<8xf32> to vector<8x1xf32>
    %cst_32 = arith.constant 6.400000e+01 : f32
    %110 = vector.broadcast %cst_32 : f32 to vector<8x1xf32>
    %111 = arith.divf %109, %110 : vector<8x1xf32>
    %cst_33 = arith.constant 9.99999997E-7 : f32
    %112 = vector.broadcast %cst_33 : f32 to vector<8x1xf32>
    %113 = arith.addf %111, %112 : vector<8x1xf32>
    %114 = math.rsqrt %113 : vector<8x1xf32>
    %115 = vector.broadcast %114 : vector<8x1xf32> to vector<8x64xf32>
    %116 = arith.mulf %106, %115 : vector<8x64xf32>
    %117 = vector.broadcast %99 : vector<1x64xf32> to vector<8x64xf32>
    %118 = arith.mulf %116, %117 : vector<8x64xf32>
    %119 = vector.broadcast %100 : vector<1x64xf32> to vector<8x64xf32>
    %120 = arith.addf %118, %119 : vector<8x64xf32>
    %121 = vector.broadcast %1 : vector<8x1xf32> to vector<8x64xf32>
    %122 = arith.mulf %120, %121 : vector<8x64xf32>
    %c0_34 = arith.constant 0 : index
    %c0_35 = arith.constant 0 : index
    %123 = vector.load %arg7[%c0_34, %c0_35] : memref<64x256xf32, #tpu.memory_space<vmem>>, vector<64x256xf32>
    %cst_36 = arith.constant dense<0.000000e+00> : vector<8x256xf32>
    %124 = tpu.matmul %122, %123, %cst_36 {dimension_numbers = #tpu.dot_dimension_numbers<[1], [0], [0], [1], [0, 0, 1, 1], [], []>} : vector<8x64xf32>, vector<64x256xf32>, vector<8x256xf32> -> vector<8x256xf32>
    %c0_37 = arith.constant 0 : index
    %c0_38 = arith.constant 0 : index
    %125 = vector.load %arg8[%c0_37, %c0_38] : memref<1x256xf32, #tpu.memory_space<vmem>>, vector<1x256xf32>
    %126 = vector.broadcast %125 : vector<1x256xf32> to vector<8x256xf32>
    %127 = arith.addf %124, %126 : vector<8x256xf32>
    %cst_39 = arith.constant 5.000000e-01 : f32
    %128 = vector.broadcast %cst_39 : f32 to vector<8x256xf32>
    %129 = arith.mulf %128, %127 : vector<8x256xf32>
    %cst_40 = arith.constant 0.707106769 : f32
    %130 = vector.broadcast %cst_40 : f32 to vector<8x256xf32>
    %131 = arith.mulf %127, %130 : vector<8x256xf32>
    %132 = math.erf %131 : vector<8x256xf32>
    %cst_41 = arith.constant 1.000000e+00 : f32
    %133 = vector.broadcast %cst_41 : f32 to vector<8x256xf32>
    %134 = arith.addf %133, %132 : vector<8x256xf32>
    %135 = arith.mulf %129, %134 : vector<8x256xf32>
    %136 = vector.broadcast %1 : vector<8x1xf32> to vector<8x256xf32>
    %137 = arith.mulf %135, %136 : vector<8x256xf32>
    %138 = arith.mulf %137, %137 : vector<8x256xf32>
    %cst_42 = arith.constant dense<0.000000e+00> : vector<256xf32>
    %139 = vector.multi_reduction <add>, %138, %cst_42 [0] : vector<8x256xf32> to vector<256xf32>
    %140 = vector.shape_cast %139 : vector<256xf32> to vector<1x256xf32>
    %141 = math.sqrt %140 : vector<1x256xf32>
    %cst_43 = arith.constant dense<0.000000e+00> : vector<1xf32>
    %142 = vector.multi_reduction <add>, %141, %cst_43 [1] : vector<1x256xf32> to vector<1xf32>
    %143 = vector.shape_cast %142 : vector<1xf32> to vector<1x1xf32>
    %cst_44 = arith.constant 2.560000e+02 : f32
    %144 = vector.broadcast %cst_44 : f32 to vector<1x1xf32>
    %145 = arith.divf %143, %144 : vector<1x1xf32>
    %cst_45 = arith.constant 9.99999997E-7 : f32
    %146 = vector.broadcast %cst_45 : f32 to vector<1x1xf32>
    %147 = arith.addf %145, %146 : vector<1x1xf32>
    %148 = vector.broadcast %147 : vector<1x1xf32> to vector<1x256xf32>
    %149 = arith.divf %141, %148 : vector<1x256xf32>
    %c0_46 = arith.constant 0 : index
    %c0_47 = arith.constant 0 : index
    %150 = vector.load %arg9[%c0_46, %c0_47] : memref<1x256xf32, #tpu.memory_space<vmem>>, vector<1x256xf32>
    %151 = vector.broadcast %149 : vector<1x256xf32> to vector<8x256xf32>
    %152 = arith.mulf %137, %151 : vector<8x256xf32>
    %153 = vector.broadcast %150 : vector<1x256xf32> to vector<8x256xf32>
    %154 = arith.mulf %153, %152 : vector<8x256xf32>
    %c0_48 = arith.constant 0 : index
    %c0_49 = arith.constant 0 : index
    %155 = vector.load %arg10[%c0_48, %c0_49] : memref<1x256xf32, #tpu.memory_space<vmem>>, vector<1x256xf32>
    %156 = vector.broadcast %155 : vector<1x256xf32> to vector<8x256xf32>
    %157 = arith.addf %154, %156 : vector<8x256xf32>
    %158 = arith.addf %157, %137 : vector<8x256xf32>
    %c0_50 = arith.constant 0 : index
    %c0_51 = arith.constant 0 : index
    %159 = vector.load %arg11[%c0_50, %c0_51] : memref<256x64xf32, #tpu.memory_space<vmem>>, vector<256x64xf32>
    %cst_52 = arith.constant dense<0.000000e+00> : vector<8x64xf32>
    %160 = tpu.matmul %158, %159, %cst_52 {dimension_numbers = #tpu.dot_dimension_numbers<[1], [0], [0], [1], [0, 0, 1, 1], [], []>} : vector<8x256xf32>, vector<256x64xf32>, vector<8x64xf32> -> vector<8x64xf32>
    %c0_53 = arith.constant 0 : index
    %c0_54 = arith.constant 0 : index
    %161 = vector.load %arg12[%c0_53, %c0_54] : memref<1x64xf32, #tpu.memory_space<vmem>>, vector<1x64xf32>
    %162 = vector.broadcast %161 : vector<1x64xf32> to vector<8x64xf32>
    %163 = arith.addf %160, %162 : vector<8x64xf32>
    %164 = vector.broadcast %1 : vector<8x1xf32> to vector<8x64xf32>
    %165 = arith.mulf %163, %164 : vector<8x64xf32>
    %166 = arith.addf %0, %165 : vector<8x64xf32>
    %c0_55 = arith.constant 0 : index
    %c0_56 = arith.constant 0 : index
    %167 = vector.load %arg13[%c0_55, %c0_56] : memref<8x64xf32, #tpu.memory_space<vmem>>, vector<8x64xf32>
    tpu.vector_store %arg13[%c0_55, %c0_56], %166 {strides = array<i32>} : memref<8x64xf32, #tpu.memory_space<vmem>>, vector<8x64xf32>,
    return
  }
  func.func @transform_0(%arg0: i32) -> (i32, i32) {
    %c0_i32 = arith.constant 0 : i32
    %c0_i32_0 = arith.constant 0 : i32
    %c0_i32_1 = arith.constant 0 : i32
    return %c0_i32, %c0_i32_0 : i32, i32
  }
  func.func @transform_1(%arg0: i32) -> (i32, i32) {
    %c0_i32 = arith.constant 0 : i32
    %c0_i32_0 = arith.constant 0 : i32
    %c0_i32_1 = arith.constant 0 : i32
    return %c0_i32, %c0_i32_0 : i32, i32
  }
  func.func @transform_2(%arg0: i32) -> (i32, i32) {
    %c0_i32 = arith.constant 0 : i32
    %c0_i32_0 = arith.constant 0 : i32
    %c0_i32_1 = arith.constant 0 : i32
    return %c0_i32, %c0_i32_0 : i32, i32
  }
  func.func @transform_3(%arg0: i32) -> (i32, i32) {
    %c0_i32 = arith.constant 0 : i32
    %c0_i32_0 = arith.constant 0 : i32
    %c0_i32_1 = arith.constant 0 : i32
    return %c0_i32, %c0_i32_0 : i32, i32
  }
  func.func @transform_4(%arg0: i32) -> (i32, i32) {
    %c0_i32 = arith.constant 0 : i32
    %c0_i32_0 = arith.constant 0 : i32
    %c0_i32_1 = arith.constant 0 : i32
    return %c0_i32, %c0_i32_0 : i32, i32
  }
  func.func @transform_5(%arg0: i32) -> (i32, i32) {
    %c0_i32 = arith.constant 0 : i32
    %c0_i32_0 = arith.constant 0 : i32
    %c0_i32_1 = arith.constant 0 : i32
    return %c0_i32, %c0_i32_0 : i32, i32
  }
  func.func @transform_6(%arg0: i32) -> (i32, i32) {
    %c0_i32 = arith.constant 0 : i32
    %c0_i32_0 = arith.constant 0 : i32
    %c0_i32_1 = arith.constant 0 : i32
    return %c0_i32, %c0_i32_0 : i32, i32
  }
  func.func @transform_7(%arg0: i32) -> (i32, i32) {
    %c0_i32 = arith.constant 0 : i32
    %c0_i32_0 = arith.constant 0 : i32
    %c0_i32_1 = arith.constant 0 : i32
    return %c0_i32, %c0_i32_0 : i32, i32
  }
  func.func @transform_8(%arg0: i32) -> (i32, i32) {
    %c0_i32 = arith.constant 0 : i32
    %c0_i32_0 = arith.constant 0 : i32
    %c0_i32_1 = arith.constant 0 : i32
    return %c0_i32, %c0_i32_0 : i32, i32
  }
  func.func @transform_9(%arg0: i32) -> (i32, i32) {
    %c0_i32 = arith.constant 0 : i32
    %c0_i32_0 = arith.constant 0 : i32
    %c0_i32_1 = arith.constant 0 : i32
    return %c0_i32, %c0_i32_0 : i32, i32
  }
  func.func @transform_10(%arg0: i32) -> (i32, i32) {
    %c0_i32 = arith.constant 0 : i32
    %c0_i32_0 = arith.constant 0 : i32
    %c0_i32_1 = arith.constant 0 : i32
    return %c0_i32, %c0_i32_0 : i32, i32
  }
  func.func @transform_11(%arg0: i32) -> (i32, i32) {
    %c0_i32 = arith.constant 0 : i32
    %c0_i32_0 = arith.constant 0 : i32
    %c0_i32_1 = arith.constant 0 : i32
    return %c0_i32, %c0_i32_0 : i32, i32
  }
  func.func @transform_12(%arg0: i32) -> (i32, i32) {
    %c0_i32 = arith.constant 0 : i32
    %c0_i32_0 = arith.constant 0 : i32
    %c0_i32_1 = arith.constant 0 : i32
    return %c0_i32, %c0_i32_0 : i32, i32
  }
}

module attributes {stable_mosaic.version = 11 : i64} {
  func.func @_downsample_kernel(%arg0: i32, %arg1: memref<8x64xf32, #tpu.memory_space<vmem>>, %arg2: memref<8x1xf32, #tpu.memory_space<vmem>>, %arg3: memref<1x32xf32, #tpu.memory_space<vmem>>, %arg4: memref<1x32xf32, #tpu.memory_space<vmem>>, %arg5: memref<64x64xf32, #tpu.memory_space<vmem>>, %arg6: memref<1x64xf32, #tpu.memory_space<vmem>>, %arg7: memref<8x64xf32, #tpu.memory_space<vmem>>) attributes {dimension_semantics = [#tpu.dimension_semantics<parallel>], iteration_bounds = array<i64: 1>, scalar_prefetch = 0 : i64, scratch_operands = 0 : i64, tpu.core_type = #tpu.core_type<tc>, window_params = [{transform_indices = @transform_0, window_bounds = array<i64: 8, 64>}, {transform_indices = @transform_1, window_bounds = array<i64: 8, 1>}, {pipeline_mode = #tpu.pipeline_mode<synchronous>, transform_indices = @transform_2, window_bounds = array<i64: 1, 32>}, {pipeline_mode = #tpu.pipeline_mode<synchronous>, transform_indices = @transform_3, window_bounds = array<i64: 1, 32>}, {pipeline_mode = #tpu.pipeline_mode<synchronous>, transform_indices = @transform_4, window_bounds = array<i64: 64, 64>}, {pipeline_mode = #tpu.pipeline_mode<synchronous>, transform_indices = @transform_5, window_bounds = array<i64: 1, 64>}, {transform_indices = @transform_6, window_bounds = array<i64: 8, 64>}]} {
    %c0 = arith.constant 0 : index
    %c0_0 = arith.constant 0 : index
    %0 = vector.load %arg1[%c0, %c0_0] : memref<8x64xf32, #tpu.memory_space<vmem>>, vector<8x64xf32>
    %c0_1 = arith.constant 0 : index
    %c0_2 = arith.constant 0 : index
    %1 = vector.load %arg3[%c0_1, %c0_2] : memref<1x32xf32, #tpu.memory_space<vmem>>, vector<1x32xf32>
    %c0_3 = arith.constant 0 : index
    %c0_4 = arith.constant 0 : index
    %2 = vector.load %arg4[%c0_3, %c0_4] : memref<1x32xf32, #tpu.memory_space<vmem>>, vector<1x32xf32>
    %c0_5 = arith.constant 0 : index
    %c0_6 = arith.constant 0 : index
    %3 = vector.load %arg5[%c0_5, %c0_6] : memref<64x64xf32, #tpu.memory_space<vmem>>, vector<64x64xf32>
    %4 = vector.extract_strided_slice %0 {offsets = [0, 0], sizes = [8, 32], strides = [1, 1]} : vector<8x64xf32> to vector<8x32xf32>
    %cst = arith.constant dense<0.000000e+00> : vector<8xf32>
    %5 = vector.multi_reduction <add>, %4, %cst [1] : vector<8x32xf32> to vector<8xf32>
    %6 = vector.shape_cast %5 : vector<8xf32> to vector<8x1xf32>
    %cst_7 = arith.constant 3.200000e+01 : f32
    %7 = vector.broadcast %cst_7 : f32 to vector<8x1xf32>
    %8 = arith.divf %6, %7 : vector<8x1xf32>
    %9 = vector.broadcast %8 : vector<8x1xf32> to vector<8x32xf32>
    %10 = arith.subf %4, %9 : vector<8x32xf32>
    %11 = arith.mulf %10, %10 : vector<8x32xf32>
    %cst_8 = arith.constant dense<0.000000e+00> : vector<8xf32>
    %12 = vector.multi_reduction <add>, %11, %cst_8 [1] : vector<8x32xf32> to vector<8xf32>
    %13 = vector.shape_cast %12 : vector<8xf32> to vector<8x1xf32>
    %cst_9 = arith.constant 3.200000e+01 : f32
    %14 = vector.broadcast %cst_9 : f32 to vector<8x1xf32>
    %15 = arith.divf %13, %14 : vector<8x1xf32>
    %cst_10 = arith.constant 9.99999997E-7 : f32
    %16 = vector.broadcast %cst_10 : f32 to vector<8x1xf32>
    %17 = arith.addf %15, %16 : vector<8x1xf32>
    %18 = math.rsqrt %17 : vector<8x1xf32>
    %19 = vector.broadcast %18 : vector<8x1xf32> to vector<8x32xf32>
    %20 = arith.mulf %10, %19 : vector<8x32xf32>
    %21 = vector.broadcast %1 : vector<1x32xf32> to vector<8x32xf32>
    %22 = arith.mulf %20, %21 : vector<8x32xf32>
    %23 = vector.broadcast %2 : vector<1x32xf32> to vector<8x32xf32>
    %24 = arith.addf %22, %23 : vector<8x32xf32>
    %25 = vector.extract_strided_slice %0 {offsets = [0, 32], sizes = [8, 32], strides = [1, 1]} : vector<8x64xf32> to vector<8x32xf32>
    %cst_11 = arith.constant dense<0.000000e+00> : vector<8xf32>
    %26 = vector.multi_reduction <add>, %25, %cst_11 [1] : vector<8x32xf32> to vector<8xf32>
    %27 = vector.shape_cast %26 : vector<8xf32> to vector<8x1xf32>
    %cst_12 = arith.constant 3.200000e+01 : f32
    %28 = vector.broadcast %cst_12 : f32 to vector<8x1xf32>
    %29 = arith.divf %27, %28 : vector<8x1xf32>
    %30 = vector.broadcast %29 : vector<8x1xf32> to vector<8x32xf32>
    %31 = arith.subf %25, %30 : vector<8x32xf32>
    %32 = arith.mulf %31, %31 : vector<8x32xf32>
    %cst_13 = arith.constant dense<0.000000e+00> : vector<8xf32>
    %33 = vector.multi_reduction <add>, %32, %cst_13 [1] : vector<8x32xf32> to vector<8xf32>
    %34 = vector.shape_cast %33 : vector<8xf32> to vector<8x1xf32>
    %cst_14 = arith.constant 3.200000e+01 : f32
    %35 = vector.broadcast %cst_14 : f32 to vector<8x1xf32>
    %36 = arith.divf %34, %35 : vector<8x1xf32>
    %cst_15 = arith.constant 9.99999997E-7 : f32
    %37 = vector.broadcast %cst_15 : f32 to vector<8x1xf32>
    %38 = arith.addf %36, %37 : vector<8x1xf32>
    %39 = math.rsqrt %38 : vector<8x1xf32>
    %40 = vector.broadcast %39 : vector<8x1xf32> to vector<8x32xf32>
    %41 = arith.mulf %31, %40 : vector<8x32xf32>
    %42 = vector.broadcast %1 : vector<1x32xf32> to vector<8x32xf32>
    %43 = arith.mulf %41, %42 : vector<8x32xf32>
    %44 = vector.broadcast %2 : vector<1x32xf32> to vector<8x32xf32>
    %45 = arith.addf %43, %44 : vector<8x32xf32>
    %46 = vector.extract_strided_slice %3 {offsets = [0, 0], sizes = [32, 64], strides = [1, 1]} : vector<64x64xf32> to vector<32x64xf32>
    %cst_16 = arith.constant dense<0.000000e+00> : vector<8x64xf32>
    %47 = tpu.matmul %24, %46, %cst_16 {dimension_numbers = #tpu.dot_dimension_numbers<[1], [0], [0], [1], [0, 0, 1, 1], [], []>} : vector<8x32xf32>, vector<32x64xf32>, vector<8x64xf32> -> vector<8x64xf32>
    %48 = vector.extract_strided_slice %3 {offsets = [32, 0], sizes = [32, 64], strides = [1, 1]} : vector<64x64xf32> to vector<32x64xf32>
    %cst_17 = arith.constant dense<0.000000e+00> : vector<8x64xf32>
    %49 = tpu.matmul %45, %48, %cst_17 {dimension_numbers = #tpu.dot_dimension_numbers<[1], [0], [0], [1], [0, 0, 1, 1], [], []>} : vector<8x32xf32>, vector<32x64xf32>, vector<8x64xf32> -> vector<8x64xf32>
    %50 = arith.addf %47, %49 : vector<8x64xf32>
    %c0_18 = arith.constant 0 : index
    %c0_19 = arith.constant 0 : index
    %51 = vector.load %arg6[%c0_18, %c0_19] : memref<1x64xf32, #tpu.memory_space<vmem>>, vector<1x64xf32>
    %52 = vector.broadcast %51 : vector<1x64xf32> to vector<8x64xf32>
    %53 = arith.addf %50, %52 : vector<8x64xf32>
    %c0_20 = arith.constant 0 : index
    %c0_21 = arith.constant 0 : index
    %54 = vector.load %arg2[%c0_20, %c0_21] : memref<8x1xf32, #tpu.memory_space<vmem>>, vector<8x1xf32>
    %55 = vector.broadcast %54 : vector<8x1xf32> to vector<8x64xf32>
    %56 = arith.mulf %53, %55 : vector<8x64xf32>
    %c0_22 = arith.constant 0 : index
    %c0_23 = arith.constant 0 : index
    %57 = vector.load %arg7[%c0_22, %c0_23] : memref<8x64xf32, #tpu.memory_space<vmem>>, vector<8x64xf32>
    tpu.vector_store %arg7[%c0_22, %c0_23], %56 {strides = array<i32>} : memref<8x64xf32, #tpu.memory_space<vmem>>, vector<8x64xf32>,
    return
  }
  func.func @transform_0(%arg0: i32) -> (i32, i32) {
    %c0_i32 = arith.constant 0 : i32
    %c0_i32_0 = arith.constant 0 : i32
    return %arg0, %c0_i32 : i32, i32
  }
  func.func @transform_1(%arg0: i32) -> (i32, i32) {
    %c0_i32 = arith.constant 0 : i32
    %c0_i32_0 = arith.constant 0 : i32
    return %arg0, %c0_i32 : i32, i32
  }
  func.func @transform_2(%arg0: i32) -> (i32, i32) {
    %c0_i32 = arith.constant 0 : i32
    %c0_i32_0 = arith.constant 0 : i32
    %c0_i32_1 = arith.constant 0 : i32
    return %c0_i32, %c0_i32_0 : i32, i32
  }
  func.func @transform_3(%arg0: i32) -> (i32, i32) {
    %c0_i32 = arith.constant 0 : i32
    %c0_i32_0 = arith.constant 0 : i32
    %c0_i32_1 = arith.constant 0 : i32
    return %c0_i32, %c0_i32_0 : i32, i32
  }
  func.func @transform_4(%arg0: i32) -> (i32, i32) {
    %c0_i32 = arith.constant 0 : i32
    %c0_i32_0 = arith.constant 0 : i32
    %c0_i32_1 = arith.constant 0 : i32
    return %c0_i32, %c0_i32_0 : i32, i32
  }
  func.func @transform_5(%arg0: i32) -> (i32, i32) {
    %c0_i32 = arith.constant 0 : i32
    %c0_i32_0 = arith.constant 0 : i32
    %c0_i32_1 = arith.constant 0 : i32
    return %c0_i32, %c0_i32_0 : i32, i32
  }
  func.func @transform_6(%arg0: i32) -> (i32, i32) {
    %c0_i32 = arith.constant 0 : i32
    %c0_i32_0 = arith.constant 0 : i32
    return %arg0, %c0_i32 : i32, i32
  }
}

</mosaic_0001>

<bundles_post_ra>
// kernel: sparse_convnextv2_forward.10
= control target key start
LH: loop header
LB: loop body
LE: loop exit
PB: predicated region body
PF: predicated region fallthrough
CT: control target
= control target key end

     0   :  { %s744_s21 = smov 0   ;;  %s812_s0 = inlined_call_operand.vmem [shape: f32[32,16], index: 0, kind: input, shape index: {}]   ;;  %s813_s1 = inlined_call_operand.vmem [shape: f32[32,1], index: 1, kind: input, shape index: {}]   ;;  %s814_s2 = inlined_call_operand.vmem [shape: f32[1,8], index: 2, kind: input, shape index: {}]   ;;  %s815_s3 = inlined_call_operand.vmem [shape: f32[1,8], index: 3, kind: input, shape index: {}]   ;;  %s816_s4 = inlined_call_operand.vmem [shape: f32[16,16], index: 4, kind: input, shape index: {}]   ;;  %s817_s5 = inlined_call_operand.vmem [shape: f32[1,16], index: 5, kind: input, shape index: {}]   ;;  %s818_s6 = inlined_call_operand.vmem [shape: f32[32,16], index: 6, kind: output, shape index: {}]  }
   0x1 LB: > { %s639_s22 = sadd.s32 4294967295, %s704_s21   ;;  %p643_p0 = scmp.ge.s32.totalorder %s704_s21, 1  ;;  %s704_s21 = sphi %s744_s21, %s16_s21  }
   0x2   : > { %p224_p1 = scmp.lt.s32.totalorder %s704_s21, 3 }
   0x4   : > { %p225_p2 = pnand %p643_p0, %p224_p1 }
   0x5   : > { %s644_s23 = sshll.u32 (!%p225_p2), %s639_s22, 1  ;;  %s706_s28 = smov (!%p225_p2), 120   ;;  %vm283_vm0 = vcmask (!%p225_p2), 64512   ;;  %v769_v16 = vld [vmem:[%s815_s3] ss:$0 sm:$0xff] (!%p225_p2)  ;;  %v282_v39 = vld [vmem:[%s816_s4 + $0x8] sm:$0xff] (!%p225_p2) }
   0x6   : > { %228 = sbr.rel (%p225_p2) target bundleno = 899 (0x383), region = 44  ;;  %p260_p3 = scmp.lt.s32.totalorder (!%p225_p2), %s644_s23, 3  ;;  %v777_v21 = vld [vmem:[%s814_s2] ss:$0 sm:$0xff] (!%p225_p2)  ;;  %665 = vmatprep.subr.mxu1 (!%p225_p2), %v282_v39  ;;  %v708_v40 = vmov (!%p225_p2), 0   ;;  %vm568_vm1 = vcmask (!%p225_p2), 130048  }
   0x7   : > { %s707_s7 = smov (!%p225_p2), 8   ;;  %v281_v32 = vld [vmem:[%s816_s4] sm:$0xff] (!%p225_p2)  ;;  %666 = vmatpush3.msra.mxu1 (!%p225_p2), %v282_v39  ;;  %689 = vset.pattern.permute.xlu1 (!%p225_p2), %v708_v40 }
   0x8   : > { %670 = vmatprep.subr.mxu0 (!%p225_p2), %v281_v32  ;;  %688 = vset.pattern.permute.xlu0 (!%p225_p2), %v708_v40 }
   0x9   : > { %671 = vmatpush3.msra.mxu0 (!%p225_p2), %v281_v32 }
   0xd   : > { %s820_s23 = smov (!%p260_p3, %s644_s23), 3 }
   0xe   : > { %s752_s24 = sshll.u32 %s820_s23, 3 }
   0xf   : > { %s263_s27 = scalar_lea.vmem %s812_s0, %s752_s24  ;;  %s269_s16 = scalar_lea.vmem %s813_s1, %s752_s24 }
  0x10   : > { %v277_v0 = vld [vmem:[%s263_s27] sm:$0xff]  ;;  %v278_v1 = vld [vmem:[%s263_s27 + $0x8] sm:$0xff]  ;;  %s275_s22 = scalar_lea.vmem %s818_s6, %s752_s24 }
  0x11   : > { %329 = vrot.lane.b32.xlu0 %v277_v0, %s706_s28  ;;  %v284_v14 = vsel %vm283_vm0, %v277_v0, 0.0  ;;  %v287_v15 = vsel %vm283_vm0, %v278_v1, 0.0  ;;  %v554_v50 = vld [vmem:[%s269_s16] sm:$0xff]  ;;  %v555_v52 = vld [vmem:[%s269_s16 + $0x8] sm:$0xff] }
  0x15   : > { %331 = vrot.lane.b32.xlu0 %v278_v1, %s706_s28 }
  0x83   : > { %v330_v2 = vpop.permute.xlu0 %329 }
  0x84   : > { %v335_v3 = vsel %vm283_vm0, %v330_v2, 0.0 }
  0x85   : > { %336 = vadd.xlane.f32.xlu1 %v335_v3 }
  0x87   : > { %v332_v4 = vpop.permute.xlu0 %331 }
  0x88   : > { %v338_v5 = vsel %vm283_vm0, %v332_v4, 0.0 }
  0x89   : > { %339 = vadd.xlane.f32.xlu1 %v338_v5 }
 0x112   : > { %v337_v6 = vpop.xlane.xlu1 %336 }
 0x113   : > { %v341_v7 = vmul.f32 0.125, %v337_v6 }
 0x115   : > { %v343_v8 = vsub.f32 %v277_v0, %v341_v7 }
 0x116   : > { %v340_v9 = vpop.xlane.xlu1 %339 }
 0x117   : > { %v342_v10 = vmul.f32 0.125, %v340_v9  ;;  %v345_v11 = vmul.f32 %v343_v8, %v343_v8 }
 0x119   : > { %v344_v12 = vsub.f32 %v278_v1, %v342_v10  ;;  %349 = vrot.lane.b32.xlu0 %v345_v11, %s706_s28 }
 0x11b   : > { %v346_v13 = vmul.f32 %v344_v12, %v344_v12 }
 0x11d   : > { %351 = vrot.lane.b32.xlu1 %v346_v13, %s706_s28 }
 0x138   : > { %285 = vadd.xlane.f32.xlu0 %v284_v14 }
 0x141   : > { %288 = vadd.xlane.f32.xlu1 %v287_v15 }
 0x152   : > { %374 = vrot.lane.b32.xlu1 %v769_v16, %s707_s7 }
 0x18b   : > { %v350_v17 = vpop.permute.xlu0 %349 }
 0x18c   : > { %v355_v18 = vsel %vm283_vm0, %v350_v17, 0.0 }
 0x18d   : > { %356 = vadd.xlane.f32.xlu0 %v355_v18 }
 0x18f   : > { %v352_v19 = vpop.permute.xlu1 %351 }
 0x190   : > { %v358_v20 = vsel %vm283_vm0, %v352_v19, 0.0 }
 0x191   : > { %359 = vadd.xlane.f32.xlu0 %v358_v20 }
 0x1a7   : > { %369 = vrot.lane.b32.xlu0 %v777_v21, %s707_s7 }
 0x1c5   : > { %v286_v22 = vpop.xlane.xlu0 %285 }
 0x1c6   : > { %v291_v23 = vmul.f32 0.125, %v286_v22 }
 0x1c8   : > { %v293_v24 = vsub.f32 %v277_v0, %v291_v23 }
 0x1ca   : > { %v295_v25 = vmul.f32 %v293_v24, %v293_v24 }
 0x1cc   : > { %v297_v26 = vsel %vm283_vm0, %v295_v25, 0.0 }
 0x1cd   : > { %298 = vadd.xlane.f32.xlu0 %v297_v26 }
 0x1ce   : > { %v289_v27 = vpop.xlane.xlu1 %288 }
 0x1cf   : > { %v292_v28 = vmul.f32 0.125, %v289_v27 }
 0x1d1   : > { %v294_v29 = vsub.f32 %v278_v1, %v292_v28 }
 0x1d2   : > { %v375_v44 = vpop.permute.xlu1 %374 }
 0x1d3   : > { %v296_v30 = vmul.f32 %v294_v29, %v294_v29 }
 0x1d5   : > { %v300_v31 = vsel %vm283_vm0, %v296_v30, 0.0 }
 0x1d6   : > { %301 = vadd.xlane.f32.xlu1 %v300_v31 }
 0x21a   : > { %v357_v33 = vpop.xlane.xlu0 %356 }
 0x21b   : > { %v361_v34 = vmul.f32 0.125, %v357_v33 }
 0x21d   : > { %v363_v35 = vadd.f32 1e-06, %v361_v34 }
 0x21e   : > { %v360_v36 = vpop.xlane.xlu0 %359 }
 0x21f   : > { %690 = vrsqrt.f32 %v363_v35  ;;  %v362_v37 = vmul.f32 0.125, %v360_v36 }
 0x221   : > { %v364_v38 = vadd.f32 1e-06, %v362_v37 }
 0x222   : > { %v370_v42 = vpop.permute.xlu0 %369 }
 0x223   : > { %692 = vrsqrt.f32 %v364_v38 }
 0x229   : > { %v691_v41 = vpop.eup %690 }
 0x22a   : > { %v367_v43 = vmul.f32 %v691_v41, %v343_v8  ;;  %v656_v8 = vld [vmem:[%s817_s5] ss:$0 sm:$0xff] }
 0x22c   : > { %v372_v45 = vmul.f32 %v370_v42, %v367_v43 }
 0x22d   : > { %v693_v46 = vpop.eup %692 }
 0x22e   : > { %v368_v47 = vmul.f32 %v693_v46, %v344_v12  ;;  %v377_v48 = vadd.f32 %v375_v44, %v372_v45 }
 0x230   : > { %v373_v49 = vmul.f32 %v370_v42, %v368_v47  ;;  %381 = vrot.lane.b32.xlu0 %v377_v48, %s706_s28 }
 0x232   : > { %v378_v51 = vadd.f32 %v375_v44, %v373_v49 }
 0x234   : > { %383 = vrot.lane.b32.xlu1 %v378_v51, %s706_s28  ;;  %558 = vperm.xlu0 %688, %v554_v50  }
 0x238   : > { %563 = vperm.xlu1 %689, %v555_v52  }
 0x25a   : > { %v299_v53 = vpop.xlane.xlu0 %298 }
 0x25b   : > { %v303_v54 = vmul.f32 0.125, %v299_v53 }
 0x25d   : > { %v305_v55 = vadd.f32 1e-06, %v303_v54 }
 0x25f   : > { %694 = vrsqrt.f32 %v305_v55 }
 0x263   : > { %v302_v56 = vpop.xlane.xlu1 %301 }
 0x264   : > { %v304_v57 = vmul.f32 0.125, %v302_v56 }
 0x266   : > { %v306_v58 = vadd.f32 1e-06, %v304_v57 }
 0x268   : > { %696 = vrsqrt.f32 %v306_v58 }
 0x269   : > { %v695_v59 = vpop.eup %694 }
 0x26a   : > { %v309_v60 = vmul.f32 %v695_v59, %v293_v24 }
 0x26c   : > { %v317_v61 = vmul.f32 %v777_v21, %v309_v60 }
 0x26e   : > { %v325_v62 = vadd.f32 %v769_v16, %v317_v61 }
 0x270   : > { %672 = vmatprep.mubr.msk.f32.mxu0 %vm283_vm0, %v325_v62 }
 0x272   : > { %v697_v63 = vpop.eup %696 }
 0x273   : > { %v310_v0 = vmul.f32 %v697_v63, %v294_v29 }
 0x275   : > { %v318_v1 = vmul.f32 %v777_v21, %v310_v0 }
 0x277   : > { %v326_v2 = vadd.f32 %v769_v16, %v318_v1 }
 0x279   : > { %673 = vmatmul.mubr.msk.f32.vlgmr.msra.gmra.mrb[0].mxu0 %vm283_vm0, %v326_v2 }
 0x2a2   : > { %v382_v3 = vpop.permute.xlu0 %381 }
 0x2a3   : > { %667 = vmatprep.mubr.msk.f32.mxu1 %vm283_vm0, %v382_v3 }
 0x2a6   : > { %v384_v4 = vpop.permute.xlu1 %383 }
 0x2a7   : > { %668 = vmatmul.mubr.msk.f32.vlgmr.msra.gmra.mrb[0].mxu1 %vm283_vm0, %v384_v4 }
 0x2b3   : > { %v559_v13 = vpop.permute.xlu0 %558 }
 0x2b7   : > { %v564_v14 = vpop.permute.xlu1 %563 }
 0x34c   : > { %v674_v5 = vpop.f32.mrb[0].mxu0 }
 0x34d   : > { %v536_v6 = vpop.f32.mrb[1].mxu0 }
 0x37a   : > { %v669_v7 = vpop.f32.mrb[0].mxu1 }
 0x37b   : > { %v542_v9 = vadd.f32 %v674_v5, %v669_v7  ;;  %v455_v10 = vpop.f32.mrb[1].mxu1 }
 0x37c   : > { %v537_v11 = vadd.f32 %v536_v6, %v455_v10 }
 0x37d   : > { %v553_v12 = vadd.f32 %v656_v8, %v542_v9 }
 0x37e   : > { %v552_v15 = vadd.f32 %v656_v8, %v537_v11 }
 0x37f   : > { %v567_v17 = vmul.f32 %v564_v14, %v553_v12 }
 0x380   : > { %v566_v16 = vmul.f32 %v559_v13, %v552_v15 }
 0x381   : > { %570 = vst.msk [vmem:[%s275_s22 + $0x8] sm:$0xff] %vm568_vm1, %v567_v17 }
 0x382   : > { %569 = vst.msk [vmem:[%s275_s22] sm:$0xff] %vm568_vm1, %v566_v16 }
 0x383 PF: > { %s16_s21 = sadd.s32 1, %s704_s21  }
 0x384   : > { %p13_p4 = scmp.ge.s32.totalorder %s16_s21, 4  }
 0x386   :  { %15 = sbr.rel (!%p13_p4) target bundleno = 1 (0x1), region = 77 }

// kernel: sparse_convnextv2_forward.8
= control target key start
LH: loop header
LB: loop body
LE: loop exit
PB: predicated region body
PF: predicated region fallthrough
CT: control target
= control target key end

     0   :  { %s666_s21 = smov 0   ;;  %s715_s0 = inlined_call_operand.vmem [shape: f32[64,4], index: 0, kind: input, shape index: {}]   ;;  %s716_s1 = inlined_call_operand.vmem [shape: f32[64,1], index: 1, kind: input, shape index: {}]   ;;  %s717_s2 = inlined_call_operand.vmem [shape: f32[4,8], index: 2, kind: input, shape index: {}]   ;;  %s718_s3 = inlined_call_operand.vmem [shape: f32[1,8], index: 3, kind: input, shape index: {}]   ;;  %s719_s4 = inlined_call_operand.vmem [shape: f32[1,8], index: 4, kind: input, shape index: {}]   ;;  %s720_s5 = inlined_call_operand.vmem [shape: f32[1,8], index: 5, kind: input, shape index: {}]   ;;  %s721_s6 = inlined_call_operand.vmem [shape: f32[64,8], index: 6, kind: output, shape index: {}]  }
   0x1 LB: > { %s567_s22 = sadd.s32 4294967295, %s628_s21   ;;  %p571_p0 = scmp.ge.s32.totalorder %s628_s21, 1  ;;  %s628_s21 = sphi %s666_s21, %s16_s21  }
   0x2   : > { %p224_p1 = scmp.lt.s32.totalorder %s628_s21, 3 }
   0x4   : > { %p225_p2 = pnand %p571_p0, %p224_p1 }
   0x5   : > { %v281_v0 = vld [vmem:[%s717_s2] sm:$0xf] (!%p225_p2)  ;;  %vm302_vm0 = vcmask (!%p225_p2), 1043456   ;;  %s572_s25 = sshll.u32 (!%p225_p2), %s567_s22, 2  ;;  %vm289_vm1 = vcmask (!%p225_p2), 31744   ;;  %vm393_vm2 = vcmask (!%p225_p2), 64512  }
   0x6   : > { %228 = sbr.rel (%p225_p2) target bundleno = 557 (0x22d), region = 44  ;;  %593 = vmatprep.subr.msk.mxu0 (!%p225_p2), %vm302_vm0, %v281_v0  ;;  %601 = vmatprep.subr.msk.mxu1 (!%p225_p2), %vm302_vm0, %v281_v0  ;;  %p260_p3 = scmp.lt.s32.totalorder (!%p225_p2), %s572_s25, 7  ;;  %v578_v5 = vld [vmem:[%s718_s3] ss:$0 sm:$0xff] (!%p225_p2)  ;;  %v630_v18 = vmov (!%p225_p2), 0  }
   0x7   : > { %594 = vmatpush3.msk.msra.mxu0 (!%p225_p2), %vm302_vm0, %v281_v0  ;;  %602 = vmatpush3.msk.msra.mxu1 (!%p225_p2), %vm302_vm0, %v281_v0  ;;  %v584_v56 = vld [vmem:[%s719_s4] ss:$0 sm:$0xff] (!%p225_p2) }
   0x8   : > { %613 = vset.pattern.permute.xlu1 (!%p225_p2), %v630_v18  ;;  %612 = vset.pattern.permute.xlu0 (!%p225_p2), %v630_v18  ;;  %v585_v58 = vld [vmem:[%s720_s5] ss:$0 sm:$0xff] (!%p225_p2) }
   0xd   : > { %s723_s25 = smov (!%p260_p3, %s572_s25), 7 }
   0xe   : > { %s677_s26 = sshll.u32 %s723_s25, 3 }
   0xf   : > { %s263_s29 = scalar_lea.vmem %s715_s0, %s677_s26  ;;  %s269_s10 = scalar_lea.vmem %s716_s1, %s677_s26 }
  0x10   : > { %v277_v1 = vld [vmem:[%s263_s29] sm:$0xff]  ;;  %v279_v2 = vld [vmem:[%s263_s29 + $0x10] sm:$0xff]  ;;  %v278_v3 = vld [vmem:[%s263_s29 + $0x8] sm:$0xff]  ;;  %s275_s17 = scalar_lea.vmem %s721_s6, %s677_s26 }
  0x11   : > { %595 = vmatprep.mubr.msk.f32.mxu0 %vm289_vm1, %v277_v1  ;;  %598 = vmatprep.mubr.msk.f32.mxu1 %vm289_vm1, %v279_v2  ;;  %v280_v4 = vld [vmem:[%s263_s29 + $0x18] sm:$0xff]  ;;  %v468_v39 = vld [vmem:[%s269_s10 + $0x8] sm:$0xff]  ;;  %v467_v40 = vld [vmem:[%s269_s10] sm:$0xff] }
  0x12   : > { %596 = vmatmul.mubr.msk.f32.vlgmr.msra.gmra.mrb[0].mxu0 %vm289_vm1, %v278_v3  ;;  %599 = vmatmul.mubr.msk.f32.vlgmr.msra.gmra.mrb[0].mxu1 %vm289_vm1, %v280_v4  ;;  %v469_v41 = vld [vmem:[%s269_s10 + $0x10] sm:$0xff]  ;;  %v470_v42 = vld [vmem:[%s269_s10 + $0x18] sm:$0xff] }
  0xe5   : > { %v597_v6 = vpop.f32.mrb[0].mxu0  ;;  %v600_v7 = vpop.f32.mrb[0].mxu1 }
  0xe6   : > { %v372_v8 = vpop.f32.mrb[1].mxu0  ;;  %v382_v9 = vpop.f32.mrb[1].mxu1  ;;  %v388_v10 = vadd.f32 %v600_v7, %v578_v5  ;;  %v378_v13 = vadd.f32 %v597_v6, %v578_v5 }
  0xe7   : > { %v373_v11 = vadd.f32 %v578_v5, %v372_v8  ;;  %v383_v12 = vadd.f32 %v578_v5, %v382_v9 }
  0xe8   : > { %v403_v16 = vsel %vm393_vm2, %v388_v10, 0.0  ;;  %v397_v17 = vsel %vm393_vm2, %v378_v13, 0.0 }
  0xe9   : > { %v400_v14 = vsel %vm393_vm2, %v383_v12, 0.0  ;;  %v394_v15 = vsel %vm393_vm2, %v373_v11, 0.0 }
  0xea   : > { %401 = vadd.xlane.f32.xlu1 %v400_v14  ;;  %395 = vadd.xlane.f32.xlu0 %v394_v15 }
  0xee   : > { %404 = vadd.xlane.f32.xlu1 %v403_v16  ;;  %398 = vadd.xlane.f32.xlu0 %v397_v17 }
 0x177   : > { %v402_v19 = vpop.xlane.xlu1 %401  ;;  %v396_v20 = vpop.xlane.xlu0 %395 }
 0x178   : > { %v409_v21 = vmul.f32 0.125, %v402_v19  ;;  %v407_v22 = vmul.f32 0.125, %v396_v20 }
 0x17a   : > { %v413_v23 = vsub.f32 %v383_v12, %v409_v21  ;;  %v411_v24 = vsub.f32 %v373_v11, %v407_v22 }
 0x17b   : > { %v405_v25 = vpop.xlane.xlu1 %404  ;;  %v399_v26 = vpop.xlane.xlu0 %398 }
 0x17c   : > { %v410_v27 = vmul.f32 0.125, %v405_v25  ;;  %v408_v28 = vmul.f32 0.125, %v399_v26  ;;  %v415_v29 = vmul.f32 %v411_v24, %v411_v24  ;;  %v417_v33 = vmul.f32 %v413_v23, %v413_v23 }
 0x17e   : > { %v414_v30 = vsub.f32 %v388_v10, %v410_v27  ;;  %v412_v31 = vsub.f32 %v378_v13, %v408_v28  ;;  %v419_v32 = vsel %vm393_vm2, %v415_v29, 0.0  ;;  %v425_v35 = vsel %vm393_vm2, %v417_v33, 0.0 }
 0x17f   : > { %420 = vadd.xlane.f32.xlu0 %v419_v32 }
 0x180   : > { %v416_v34 = vmul.f32 %v412_v31, %v412_v31  ;;  %v418_v37 = vmul.f32 %v414_v30, %v414_v30 }
 0x182   : > { %v422_v36 = vsel %vm393_vm2, %v416_v34, 0.0  ;;  %v428_v38 = vsel %vm393_vm2, %v418_v37, 0.0 }
 0x183   : > { %426 = vadd.xlane.f32.xlu0 %v425_v35  ;;  %423 = vadd.xlane.f32.xlu1 %v422_v36 }
 0x187   : > { %429 = vadd.xlane.f32.xlu1 %v428_v38 }
 0x198   : > { %478 = vperm.xlu1 %613, %v468_v39  }
 0x199   : > { %473 = vperm.xlu0 %612, %v467_v40  }
 0x19c   : > { %483 = vperm.xlu1 %613, %v469_v41  }
 0x1a0   : > { %488 = vperm.xlu1 %613, %v470_v42  }
 0x20c   : > { %v421_v43 = vpop.xlane.xlu0 %420 }
 0x20d   : > { %v431_v44 = vmul.f32 0.125, %v421_v43 }
 0x20f   : > { %v435_v45 = vadd.f32 1e-06, %v431_v44 }
 0x210   : > { %v424_v46 = vpop.xlane.xlu1 %423  ;;  %v427_v47 = vpop.xlane.xlu0 %426 }
 0x211   : > { %614 = vrsqrt.f32 %v435_v45  ;;  %v432_v48 = vmul.f32 0.125, %v424_v46  ;;  %v433_v49 = vmul.f32 0.125, %v427_v47 }
 0x213   : > { %v436_v50 = vadd.f32 1e-06, %v432_v48  ;;  %v437_v51 = vadd.f32 1e-06, %v433_v49 }
 0x214   : > { %v430_v52 = vpop.xlane.xlu1 %429 }
 0x215   : > { %616 = vrsqrt.f32 %v436_v50  ;;  %v434_v53 = vmul.f32 0.125, %v430_v52 }
 0x216   : > { %618 = vrsqrt.f32 %v437_v51 }
 0x217   : > { %v438_v54 = vadd.f32 1e-06, %v434_v53 }
 0x218   : > { %v479_v59 = vpop.permute.xlu1 %478  ;;  %v474_v62 = vpop.permute.xlu0 %473 }
 0x219   : > { %620 = vrsqrt.f32 %v438_v54 }
 0x21b   : > { %v615_v55 = vpop.eup %614 }
 0x21c   : > { %v443_v57 = vmul.f32 %v615_v55, %v411_v24  ;;  %v484_v6 = vpop.permute.xlu1 %483 }
 0x21e   : > { %v453_v60 = vmul.f32 %v584_v56, %v443_v57 }
 0x21f   : > { %v617_v61 = vpop.eup %616 }
 0x220   : > { %v619_v63 = vpop.eup %618  ;;  %v444_v0 = vmul.f32 %v617_v61, %v412_v31  ;;  %v463_v1 = vadd.f32 %v585_v58, %v453_v60  ;;  %v489_v15 = vpop.permute.xlu1 %488 }
 0x221   : > { %v445_v2 = vmul.f32 %v619_v63, %v413_v23 }
 0x222   : > { %v454_v3 = vmul.f32 %v584_v56, %v444_v0  ;;  %v491_v4 = vmul.f32 %v474_v62, %v463_v1 }
 0x223   : > { %v621_v5 = vpop.eup %620  ;;  %v455_v7 = vmul.f32 %v584_v56, %v445_v2 }
 0x224   : > { %v464_v8 = vadd.f32 %v585_v58, %v454_v3  ;;  %v446_v9 = vmul.f32 %v621_v5, %v414_v30  ;;  %495 = vst.msk [vmem:[%s275_s17] sm:$0xff] %vm393_vm2, %v491_v4 }
 0x225   : > { %v465_v10 = vadd.f32 %v585_v58, %v455_v7 }
 0x226   : > { %v492_v11 = vmul.f32 %v479_v59, %v464_v8  ;;  %v456_v12 = vmul.f32 %v584_v56, %v446_v9 }
 0x227   : > { %v493_v13 = vmul.f32 %v484_v6, %v465_v10 }
 0x228   : > { %v466_v14 = vadd.f32 %v585_v58, %v456_v12  ;;  %496 = vst.msk [vmem:[%s275_s17 + $0x8] sm:$0xff] %vm393_vm2, %v492_v11 }
 0x229   : > { %497 = vst.msk [vmem:[%s275_s17 + $0x10] sm:$0xff] %vm393_vm2, %v493_v13 }
 0x22a   : > { %v494_v16 = vmul.f32 %v489_v15, %v466_v14 }
 0x22c   : > { %498 = vst.msk [vmem:[%s275_s17 + $0x18] sm:$0xff] %vm393_vm2, %v494_v16 }
 0x22d PF: > { %s16_s21 = sadd.s32 1, %s628_s21  }
 0x22e   : > { %p13_p4 = scmp.ge.s32.totalorder %s16_s21, 4  }
 0x230   :  { %15 = sbr.rel (!%p13_p4) target bundleno = 1 (0x1), region = 77 }

// kernel: sparse_convnextv2_forward.9
= control target key start
LH: loop header
LB: loop body
LE: loop exit
PB: predicated region body
PF: predicated region fallthrough
CT: control target
= control target key end

     0   :  { %vm163_vm0 = vcmask 64512   ;;  %v1334_v0 = vmov 0   ;;  %v1335_v3 = vmov 0.0   ;;  %v58_v18 = vlaneseq  ;;  %s1897_s1 = inlined_call_operand.vmem [shape: f32[64,1], index: 1, kind: input, shape index: {}]   ;;  %s1898_s0 = inlined_call_operand.vmem [shape: f32[64,8], index: 0, kind: input, shape index: {}]   ;;  %s1899_s2 = inlined_call_operand.vmem [shape: f32[7,8], index: 2, kind: input, shape index: {}]   ;;  %s1900_s3 = inlined_call_operand.vmem [shape: f32[1,8], index: 3, kind: input, shape index: {}]   ;;  %s1901_s6 = inlined_call_operand.vmem [shape: f32[8,32], index: 6, kind: input, shape index: {}]   ;;  %s1902_s4 = inlined_call_operand.vmem [shape: f32[1,8], index: 4, kind: input, shape index: {}]   ;;  %s1903_s5 = inlined_call_operand.vmem [shape: f32[1,8], index: 5, kind: input, shape index: {}]   ;;  %s1904_s7 = inlined_call_operand.vmem [shape: f32[1,32], index: 7, kind: input, shape index: {}]   ;;  %s1905_s10 = inlined_call_operand.vmem [shape: f32[32,8], index: 10, kind: input, shape index: {}]   ;;  %s1906_s8 = inlined_call_operand.vmem [shape: f32[1,32], index: 8, kind: input, shape index: {}]   ;;  %s1907_s9 = inlined_call_operand.vmem [shape: f32[1,32], index: 9, kind: input, shape index: {}]   ;;  %s1908_s11 = inlined_call_operand.vmem [shape: f32[1,8], index: 11, kind: input, shape index: {}]   ;;  %s1909_s12 = inlined_call_operand.vmem [shape: f32[64,8], index: 12, kind: output, shape index: {}]  }
   0x1   :  { %1297 = vset.pattern.permute.xlu1 %v1334_v0  ;;  %1296 = vset.pattern.permute.xlu0 %v1334_v0  ;;  %v51_v1 = vld [vmem:[%s1897_s1 + $0x10] sm:$0xff]  ;;  %v49_v2 = vld [vmem:[%s1897_s1] sm:$0xff]  ;;  %164 = vst.msk [vmem:[#allocation2] sm:$0xff] %vm163_vm0, %v1335_v3  ;;  %165 = vst.msk [vmem:[#allocation2 + $0x48] sm:$0xff] %vm163_vm0, %v1335_v3  ;;  %vm945_vm13 = vcmask 261120  }
   0x2   :  { %573 = vperm.xlu1 %1297, %v51_v1   ;;  %563 = vperm.xlu0 %1296, %v49_v2   ;;  %v52_v4 = vld [vmem:[%s1897_s1 + $0x18] sm:$0xff]  ;;  %v50_v5 = vld [vmem:[%s1897_s1 + $0x8] sm:$0xff]  ;;  %v1420_v6 = vld [vmem:[%s1898_s0] sm:$0xff]  ;;  %v1485_v19 = vshrl.u32 %v58_v18, 7 }
   0x3   :  { %v1425_v7 = vld [vmem:[%s1898_s0 + $0x8] sm:$0xff]  ;;  %166 = vst.msk [vmem:[#allocation2 + $0x8] sm:$0xff] %vm163_vm0, %v1420_v6  ;;  %v53_v9 = vld [vmem:[%s1897_s1 + $0x20] sm:$0xff]  ;;  %v1440_v10 = vld [vmem:[%s1898_s0 + $0x10] sm:$0xff] }
   0x4   :  { %v54_v8 = vld [vmem:[%s1897_s1 + $0x28] sm:$0xff]  ;;  %167 = vst.msk [vmem:[#allocation2 + $0x10] sm:$0xff] %vm163_vm0, %v1425_v7  ;;  %v1445_v11 = vld [vmem:[%s1898_s0 + $0x18] sm:$0xff]  ;;  %v1450_v12 = vld [vmem:[%s1898_s0 + $0x20] sm:$0xff]  ;;  %v71_v20 = vand.u32 31, %v1485_v19  ;;  %v220_v21 = vsub.s32 0, %v1485_v19 }
   0x5   :  { %168 = vst.msk [vmem:[#allocation2 + $0x18] sm:$0xff] %vm163_vm0, %v1440_v10  ;;  %169 = vst.msk [vmem:[#allocation2 + $0x20] sm:$0xff] %vm163_vm0, %v1445_v11  ;;  %v1459_v13 = vld [vmem:[%s1898_s0 + $0x28] sm:$0xff]  ;;  %v1466_v14 = vld [vmem:[%s1898_s0 + $0x30] sm:$0xff]  ;;  %v176_v23 = vsub.s32 3, %v1485_v19  ;;  %v280_v25 = vsub.s32 1, %v1485_v19 }
   0x6   :  { %578 = vperm.xlu1 %1297, %v52_v4   ;;  %568 = vperm.xlu0 %1296, %v50_v5   ;;  %170 = vst.msk [vmem:[#allocation2 + $0x28] sm:$0xff] %vm163_vm0, %v1450_v12  ;;  %v1471_v15 = vld [vmem:[%s1898_s0 + $0x38] sm:$0xff]  ;;  %171 = vst.msk [vmem:[#allocation2 + $0x30] sm:$0xff] %vm163_vm0, %v1459_v13  ;;  %v55_v17 = vld [vmem:[%s1897_s1 + $0x30] sm:$0xff]  ;;  %vm194_vm1 = vcmp.ge.s32.totalorder %v71_v20, 3  ;;  %vm254_vm2 = vcmp.ge.s32.totalorder %v71_v20, 2 }
   0x7   :  { %172 = vst.msk [vmem:[#allocation2 + $0x38] sm:$0xff] %vm163_vm0, %v1466_v14  ;;  %173 = vst.msk [vmem:[#allocation2 + $0x40] sm:$0xff] %vm163_vm0, %v1471_v15  ;;  %v56_v16 = vld [vmem:[%s1897_s1 + $0x38] sm:$0xff]  ;;  %v57_v22 = vld [vmem:[%s1899_s2] sm:$0x7f]  ;;  %v1196_v26 = vsel %vm194_vm1, 1.0, %v1335_v3 }
   0x8   :  { %v1493_v24 = vrot.slane %v57_v22, %v220_v21  ;;  %v1497_v27 = vrot.slane %v57_v22, %v176_v23  ;;  %v1500_v29 = vrot.slane %v57_v22, %v280_v25  ;;  %v340_v30 = vsub.s32 2, %v1485_v19 }
   0x9   :  { %v63_v31 = vadd.s32 32, %v1485_v19  ;;  %v1198_v33 = vsel %vm254_vm2, 1.0, %v1335_v3  ;;  %vm314_vm3 = vcmp.ge.s32.totalorder %v71_v20, 1  ;;  %v400_v41 = vsub.s32 4, %v1485_v19 }
   0xa   :  { %588 = vperm.xlu1 %1297, %v54_v8   ;;  %583 = vperm.xlu0 %1296, %v53_v9   ;;  %v222_v28 = vmul.f32 %v1196_v26, %v1493_v24  ;;  %v186_v32 = vld [vmem:[#allocation2 + $0x5] sm:$0xff]  ;;  %v178_v34 = vmul.f32 %v1497_v27, %v1420_v6  ;;  %v282_v36 = vmul.f32 %v1198_v33, %v1500_v29  ;;  %v1200_v40 = vsel %vm314_vm3, 1.0, %v1335_v3 }
   0xb   :  { %v1508_v37 = vrot.slane %v57_v22, %v340_v30  ;;  %v1510_v38 = vand.u32 31, %v63_v31  ;;  %v246_v39 = vld [vmem:[#allocation2 + $0x6] sm:$0xff]  ;;  %v460_v42 = vsub.s32 5, %v1485_v19  ;;  %v520_v43 = vsub.s32 6, %v1485_v19  ;;  %v247_v61 = vld [vmem:[#allocation2 + $0xe] sm:$0xff] }
   0xc   :  { %v230_v35 = vmul.f32 %v222_v28, %v186_v32  ;;  %v188_v44 = vld [vmem:[#allocation2 + $0x15] sm:$0xff]  ;;  %v290_v46 = vmul.f32 %v282_v36, %v246_v39  ;;  %v187_v48 = vld [vmem:[#allocation2 + $0xd] sm:$0xff]  ;;  %v1518_v50 = vrot.slane %v57_v22, %v400_v41  ;;  %v62_v53 = vadd.s32 24, %v1485_v19 }
   0xd   :  { %v342_v47 = vmul.f32 %v1200_v40, %v1508_v37  ;;  %vm198_vm4 = vcmp.ge.s32.totalorder %v1510_v38, 3  ;;  %v306_v49 = vld [vmem:[#allocation2 + $0x7] sm:$0xff]  ;;  %v1520_v51 = vrot.slane %v57_v22, %v460_v42  ;;  %v1522_v52 = vrot.slane %v57_v22, %v520_v43  ;;  %v248_v62 = vld [vmem:[#allocation2 + $0x16] sm:$0xff] }
   0xe   :  { %598 = vperm.xlu1 %1297, %v56_v16   ;;  %593 = vperm.xlu0 %1296, %v55_v17   ;;  %v238_v45 = vadd.f32 %v230_v35, %v178_v34  ;;  %v366_v54 = vld [vmem:[#allocation2 + $0x9] sm:$0xff]  ;;  %v180_v57 = vmul.f32 %v1497_v27, %v1440_v10  ;;  %v232_v58 = vmul.f32 %v1493_v24, %v188_v44  ;;  %v1197_v0 = vsel %vm198_vm4, 1.0, %v1335_v3  ;;  %v367_v5 = vld [vmem:[#allocation2 + $0x11] sm:$0xff]  ;;  %v189_v22 = vld [vmem:[#allocation2 + $0x1d] sm:$0xff] }
   0xf   :  { %v426_v55 = vld [vmem:[#allocation2 + $0xa] sm:$0xff]  ;;  %v179_v59 = vmul.f32 %v1497_v27, %v1425_v7  ;;  %v231_v60 = vmul.f32 %v1493_v24, %v187_v48  ;;  %v182_v63 = vmul.f32 %v1497_v27, %v1450_v12  ;;  %v350_v2 = vmul.f32 %v342_v47, %v306_v49  ;;  %v427_v18 = vld [vmem:[#allocation2 + $0x12] sm:$0xff]  ;;  %v428_v31 = vld [vmem:[#allocation2 + $0x1a] sm:$0xff] }
  0x10   :  { %v486_v56 = vld [vmem:[#allocation2 + $0xb] sm:$0xff]  ;;  %v298_v1 = vadd.f32 %v290_v46, %v238_v45  ;;  %vm258_vm5 = vcmp.ge.s32.totalorder %v1510_v38, 2  ;;  %v181_v8 = vmul.f32 %v1497_v27, %v1445_v11  ;;  %v410_v9 = vmul.f32 %v1518_v50, %v366_v54  ;;  %v487_v20 = vld [vmem:[#allocation2 + $0x13] sm:$0xff]  ;;  %v488_v42 = vld [vmem:[#allocation2 + $0x1b] sm:$0xff] }
  0x11   :  { %v307_v4 = vld [vmem:[#allocation2 + $0xf] sm:$0xff]  ;;  %v1541_v16 = vmul.f32 %v1520_v51, %v426_v55  ;;  %v1544_v17 = vmul.f32 %v1522_v52, %v486_v56  ;;  %v1546_v21 = vand.u32 31, %v62_v53  ;;  %v291_v23 = vmul.f32 %v1500_v29, %v247_v61  ;;  %v308_v28 = vld [vmem:[#allocation2 + $0x17] sm:$0xff]  ;;  %v190_v36 = vld [vmem:[#allocation2 + $0x25] sm:$0xff] }
  0x12   :  { %v240_v25 = vadd.f32 %v232_v58, %v180_v57  ;;  %v292_v26 = vmul.f32 %v1500_v29, %v248_v62  ;;  %v368_v30 = vld [vmem:[#allocation2 + $0x19] sm:$0xff]  ;;  %v226_v32 = vmul.f32 %v1197_v0, %v1493_v24  ;;  %v239_v33 = vadd.f32 %v231_v60, %v179_v59  ;;  %v370_v48 = vld [vmem:[#allocation2 + $0x29] sm:$0xff] }
  0x13   :  { %v351_v34 = vmul.f32 %v1508_v37, %v307_v4  ;;  %v1553_v35 = vmul.f32 %v1518_v50, %v367_v5  ;;  %v1199_v39 = vsel %vm258_vm5, 1.0, %v1335_v3  ;;  %v358_v40 = vadd.f32 %v350_v2, %v298_v1  ;;  %v249_v49 = vld [vmem:[#allocation2 + $0x1e] sm:$0xff]  ;;  %v191_v56 = vld [vmem:[#allocation2 + $0x2d] sm:$0xff]  ;;  %v192_v5 = vld [vmem:[#allocation2 + $0x35] sm:$0xff] }
  0x14   :  { %v1559_v41 = vmul.f32 %v1520_v51, %v427_v18  ;;  %vm318_vm6 = vcmp.ge.s32.totalorder %v1510_v38, 1  ;;  %v233_v43 = vmul.f32 %v1493_v24, %v189_v22  ;;  %v1564_v44 = vmul.f32 %v1522_v52, %v487_v20  ;;  %v250_v59 = vld [vmem:[#allocation2 + $0x26] sm:$0xff] }
  0x15   :  { %v352_v45 = vmul.f32 %v1508_v37, %v308_v28  ;;  %v412_v46 = vmul.f32 %v1518_v50, %v368_v30  ;;  %v1569_v47 = vmul.f32 %v1520_v51, %v428_v31  ;;  %v300_v53 = vadd.f32 %v292_v26, %v240_v25  ;;  %v309_v4 = vld [vmem:[#allocation2 + $0x1f] sm:$0xff]  ;;  %v251_v25 = vld [vmem:[#allocation2 + $0x2e] sm:$0xff] }
  0x16   :  { %v234_v54 = vmul.f32 %v226_v32, %v190_v36  ;;  %v286_v55 = vmul.f32 %v1199_v39, %v1500_v29  ;;  %vm377_vm7 = vcmp.lt.s32.totalorder %v1546_v21, 31  ;;  %v299_v57 = vadd.f32 %v291_v23, %v239_v33  ;;  %v310_v26 = vld [vmem:[#allocation2 + $0x27] sm:$0xff] }
  0x17   :  { %v1574_v58 = vmul.f32 %v1522_v52, %v488_v42  ;;  %v1201_v60 = vsel %vm318_vm6, 1.0, %v1335_v3  ;;  %v66_v61 = vadd.s32 56, %v1485_v19  ;;  %v418_v62 = vadd.f32 %v410_v9, %v358_v40  ;;  %v430_v28 = vld [vmem:[#allocation2 + $0x2a] sm:$0xff]  ;;  %v252_v40 = vld [vmem:[#allocation2 + $0x36] sm:$0xff]  ;;  %v369_v42 = vld [vmem:[#allocation2 + $0x21] sm:$0xff] }
  0x18   :  { %v1581_v0 = vmul.f32 %v1518_v50, %v370_v48  ;;  %v241_v1 = vadd.f32 %v233_v43, %v181_v8  ;;  %v293_v2 = vmul.f32 %v1500_v29, %v249_v49  ;;  %v1202_v18 = vsel %vm377_vm7, 1.0, %v1335_v3  ;;  %v193_v8 = vld [vmem:[#allocation2 + $0x3d] sm:$0xff] }
  0x19   :  { %vm437_vm8 = vcmp.lt.s32.totalorder %v1546_v21, 30  ;;  %v183_v20 = vmul.f32 %v1497_v27, %v1459_v13  ;;  %v235_v38 = vmul.f32 %v1493_v24, %v191_v56  ;;  %v360_v22 = vadd.f32 %v352_v45, %v300_v53 }
  0x1a   :  { %v242_v19 = vadd.f32 %v234_v54, %v182_v63  ;;  %v294_v9 = vmul.f32 %v286_v55, %v250_v59  ;;  %v346_v23 = vmul.f32 %v1201_v60, %v1508_v37  ;;  %v353_v30 = vmul.f32 %v1508_v37, %v309_v4  ;;  %v311_v59 = vld [vmem:[#allocation2 + $0x2f] sm:$0xff]  ;;  %v253_v60 = vld [vmem:[#allocation2 + $0x3e] sm:$0xff] }
  0x1b   :  { %v184_v31 = vmul.f32 %v1497_v27, %v1466_v14  ;;  %v236_v32 = vmul.f32 %v1493_v24, %v192_v5  ;;  %v1594_v33 = vand.u32 31, %v66_v61  ;;  %v301_v36 = vadd.f32 %v293_v2, %v241_v1 }
  0x1c   :  { %v405_v39 = vmul.f32 %v1202_v18, %v1518_v50  ;;  %v1204_v63 = vsel %vm437_vm8, 1.0, %v1335_v3  ;;  %vm497_vm9 = vcmp.lt.s32.totalorder %v1546_v21, 29  ;;  %v243_v43 = vadd.f32 %v235_v38, %v183_v20  ;;  %v371_v38 = vld [vmem:[#allocation2 + $0x31] sm:$0xff] }
  0x1d   :  { %v295_v45 = vmul.f32 %v1500_v29, %v251_v25  ;;  %v185_v48 = vmul.f32 %v1497_v27, %v1471_v15  ;;  %v237_v49 = vmul.f32 %v1493_v24, %v193_v8  ;;  %v359_v53 = vadd.f32 %v351_v34, %v299_v57  ;;  %v312_v27 = vld [vmem:[#allocation2 + $0x37] sm:$0xff]  ;;  %v429_v34 = vld [vmem:[#allocation2 + $0x22] sm:$0xff] }
  0x1e   :  { %v302_v54 = vadd.f32 %v294_v9, %v242_v19  ;;  %v354_v55 = vmul.f32 %v346_v23, %v310_v26  ;;  %v474_v56 = vmul.f32 %v1520_v51, %v430_v28  ;;  %v420_v61 = vadd.f32 %v412_v46, %v360_v22  ;;  %v313_v25 = vld [vmem:[#allocation2 + $0x3f] sm:$0xff] }
  0x1f   :  { %v244_v1 = vadd.f32 %v236_v32, %v184_v31  ;;  %v296_v2 = vmul.f32 %v1500_v29, %v252_v40  ;;  %vm381_vm10 = vcmp.lt.s32.totalorder %v1594_v33, 31  ;;  %v361_v4 = vadd.f32 %v353_v30, %v301_v36  ;;  %v431_v36 = vld [vmem:[#allocation2 + $0x32] sm:$0xff] }
  0x20   :  { %v413_v5 = vmul.f32 %v405_v39, %v369_v42  ;;  %v465_v18 = vmul.f32 %v1204_v63, %v1520_v51  ;;  %v1206_v24 = vsel %vm497_vm9, 1.0, %v1335_v3  ;;  %v303_v57 = vadd.f32 %v295_v45, %v243_v43  ;;  %v373_v45 = vld [vmem:[#allocation2 + $0x41] sm:$0xff] }
  0x21   :  { %v355_v20 = vmul.f32 %v1508_v37, %v311_v59  ;;  %v245_v46 = vadd.f32 %v237_v49, %v185_v48  ;;  %v297_v22 = vmul.f32 %v1500_v29, %v253_v60  ;;  %v478_v19 = vadd.f32 %v1541_v16, %v418_v62  ;;  %v372_v16 = vld [vmem:[#allocation2 + $0x39] sm:$0xff]  ;;  %v489_v62 = vld [vmem:[#allocation2 + $0x23] sm:$0xff] }
  0x22   :  { %v419_v9 = vadd.f32 %v1553_v35, %v359_v53  ;;  %v362_v23 = vadd.f32 %v354_v55, %v302_v54  ;;  %v1203_v21 = vsel %vm381_vm10, 1.0, %v1335_v3  ;;  %v480_v8 = vadd.f32 %v1569_v47, %v420_v61  ;;  %v490_v53 = vld [vmem:[#allocation2 + $0x2b] sm:$0xff]  ;;  %v491_v61 = vld [vmem:[#allocation2 + $0x33] sm:$0xff] }
  0x23   :  { %v304_v26 = vadd.f32 %v296_v2, %v244_v1  ;;  %v356_v28 = vmul.f32 %v1508_v37, %v312_v27  ;;  %vm441_vm11 = vcmp.lt.s32.totalorder %v1594_v33, 30  ;;  %v421_v30 = vadd.f32 %v413_v5, %v361_v4  ;;  %v433_v5 = vld [vmem:[#allocation2 + $0x42] sm:$0xff] }
  0x24   :  { %v473_v31 = vmul.f32 %v465_v18, %v429_v34  ;;  %v525_v29 = vmul.f32 %v1206_v24, %v1522_v52  ;;  %v415_v35 = vmul.f32 %v1518_v50, %v371_v38  ;;  %v363_v32 = vadd.f32 %v355_v20, %v303_v57  ;;  %v492_v38 = vld [vmem:[#allocation2 + $0x3b] sm:$0xff] }
  0x25   :  { %v305_v39 = vadd.f32 %v297_v22, %v245_v46  ;;  %v357_v63 = vmul.f32 %v1508_v37, %v313_v25  ;;  %v409_v47 = vmul.f32 %v1203_v21, %v1518_v50  ;;  %v538_v40 = vadd.f32 %v1544_v17, %v478_v19  ;;  %v1208_v37 = vld [vmem:[%s1900_s3] ss:$0 sm:$0xff]  ;;  %v493_v21 = vld [vmem:[#allocation2 + $0x43] sm:$0xff] }
  0x26   :  { %v479_v42 = vadd.f32 %v1559_v41, %v419_v9  ;;  %v422_v43 = vadd.f32 %v1581_v0, %v362_v23  ;;  %v1205_v48 = vsel %vm441_vm11, 1.0, %v1335_v3  ;;  %v540_v49 = vadd.f32 %v1574_v58, %v480_v8  ;;  %v432_v0 = vld [vmem:[#allocation2 + $0x3a] sm:$0xff] }
  0x27   :  { %v364_v54 = vadd.f32 %v356_v28, %v304_v26  ;;  %v416_v55 = vmul.f32 %v1518_v50, %v372_v16  ;;  %vm501_vm12 = vcmp.lt.s32.totalorder %v1594_v33, 29  ;;  %v481_v17 = vadd.f32 %v473_v31, %v421_v30 }
  0x28   :  { %v533_v41 = vmul.f32 %v525_v29, %v489_v62  ;;  %v475_v59 = vmul.f32 %v1520_v51, %v431_v36  ;;  %v423_v60 = vadd.f32 %v415_v35, %v363_v32  ;;  %v365_v1 = vadd.f32 %v357_v63, %v305_v39 }
  0x29   :  { %v417_v2 = vmul.f32 %v409_v47, %v373_v45  ;;  %v469_v58 = vmul.f32 %v1205_v48, %v1520_v51  ;;  %v539_v4 = vadd.f32 %v1564_v44, %v479_v42  ;;  %v482_v50 = vadd.f32 %v474_v56, %v422_v43 }
  0x2a   :  { %v534_v33 = vmul.f32 %v1522_v52, %v490_v53  ;;  %v1207_v18 = vsel %vm501_vm12, 1.0, %v1335_v3  ;;  %v553_v24 = vadd.f32 %v1208_v37, %v538_v40  ;;  %v555_v27 = vadd.f32 %v1208_v37, %v540_v49 }
  0x2b   :  { %v424_v34 = vadd.f32 %v416_v55, %v364_v54  ;;  %v476_v57 = vmul.f32 %v1520_v51, %v432_v0  ;;  %v541_v20 = vadd.f32 %v533_v41, %v481_v17  ;;  %v535_v46 = vmul.f32 %v1522_v52, %v491_v61 }
  0x2c   :  { %v483_v22 = vadd.f32 %v475_v59, %v423_v60  ;;  %v425_v19 = vadd.f32 %v417_v2, %v365_v1  ;;  %v477_v9 = vmul.f32 %v469_v58, %v433_v5  ;;  %v529_v44 = vmul.f32 %v1207_v18, %v1522_v52 }
  0x2d   :  { %v554_v25 = vadd.f32 %v1208_v37, %v539_v4  ;;  %v542_v3 = vadd.f32 %v534_v33, %v482_v50  ;;  %v484_v26 = vadd.f32 %v476_v57, %v424_v34  ;;  %v536_v28 = vmul.f32 %v1522_v52, %v492_v38 }
  0x2e   :  { %v556_v30 = vadd.f32 %v1208_v37, %v541_v20  ;;  %v543_v29 = vadd.f32 %v535_v46, %v483_v22  ;;  %v485_v16 = vadd.f32 %v477_v9, %v425_v19  ;;  %v537_v35 = vmul.f32 %v529_v44, %v493_v21 }
  0x2f   :  { %v557_v63 = vadd.f32 %v1208_v37, %v542_v3  ;;  %v544_v47 = vadd.f32 %v536_v28, %v484_v26 }
  0x30   :  { %v558_v42 = vadd.f32 %v1208_v37, %v543_v29  ;;  %v545_v43 = vadd.f32 %v537_v35, %v485_v16 }
  0x31   :  { %v559_v53 = vadd.f32 %v1208_v37, %v544_v47 }
  0x32   :  { %v560_v41 = vadd.f32 %v1208_v37, %v545_v43 }
  0x81   :  { %v1646_v56 = vpop.permute.xlu1 %573  ;;  %v1648_v23 = vpop.permute.xlu0 %563 }
  0x82   :  { %v601_v8 = vmul.f32 %v1648_v23, %v553_v24  ;;  %v603_v51 = vmul.f32 %v1646_v56, %v555_v27 }
  0x84   :  { %v611_v31 = vsel %vm163_vm0, %v601_v8, 0.0  ;;  %v617_v39 = vsel %vm163_vm0, %v603_v51, 0.0 }
  0x85   :  { %v1654_v62 = vpop.permute.xlu1 %578  ;;  %v1656_v32 = vpop.permute.xlu0 %568  ;;  %612 = vadd.xlane.f32.xlu0 %v611_v31 }
  0x86   :  { %v602_v36 = vmul.f32 %v1656_v32, %v554_v25  ;;  %v604_v52 = vmul.f32 %v1654_v62, %v556_v30 }
  0x88   :  { %v614_v40 = vsel %vm163_vm0, %v602_v36, 0.0  ;;  %v620_v55 = vsel %vm163_vm0, %v604_v52, 0.0 }
  0x89   :  { %v1662_v45 = vpop.permute.xlu1 %588  ;;  %v1664_v48 = vpop.permute.xlu0 %583  ;;  %615 = vadd.xlane.f32.xlu1 %v614_v40  ;;  %618 = vadd.xlane.f32.xlu0 %v617_v39 }
  0x8a   :  { %v605_v49 = vmul.f32 %v1664_v48, %v557_v63  ;;  %v606_v17 = vmul.f32 %v1662_v45, %v558_v42 }
  0x8c   :  { %v623_v54 = vsel %vm163_vm0, %v605_v49, 0.0  ;;  %v626_v1 = vsel %vm163_vm0, %v606_v17, 0.0 }
  0x8d   :  { %v1670_v0 = vpop.permute.xlu1 %598  ;;  %v1672_v59 = vpop.permute.xlu0 %593  ;;  %624 = vadd.xlane.f32.xlu1 %v623_v54  ;;  %621 = vadd.xlane.f32.xlu0 %v620_v55  ;;  %v752_v55 = vld [vmem:[%s1901_s6] sm:$0xff] }
  0x8e   :  { %v607_v60 = vmul.f32 %v1672_v59, %v559_v53  ;;  %v608_v2 = vmul.f32 %v1670_v0, %v560_v41  ;;  %1252 = vmatprep.subr.mxu0 %v752_v55 }
  0x8f   :  { %1253 = vmatpush3.msra.mxu0 %v752_v55 }
  0x90   :  { %v629_v61 = vsel %vm163_vm0, %v607_v60, 0.0  ;;  %v632_v58 = vsel %vm163_vm0, %v608_v2, 0.0 }
  0x91   :  { %630 = vadd.xlane.f32.xlu1 %v629_v61  ;;  %627 = vadd.xlane.f32.xlu0 %v626_v1 }
  0x95   :  { %633 = vadd.xlane.f32.xlu0 %v632_v58 }
 0x112   :  { %v613_v37 = vpop.xlane.xlu0 %612 }
 0x113   :  { %v636_v4 = vmul.f32 0.125, %v613_v37 }
 0x115   :  { %v1679_v50 = vsub.f32 %v601_v8, %v636_v4 }
 0x116   :  { %v616_v33 = vpop.xlane.xlu1 %615  ;;  %v619_v5 = vpop.xlane.xlu0 %618 }
 0x117   :  { %v637_v18 = vmul.f32 0.125, %v616_v33  ;;  %v638_v24 = vmul.f32 0.125, %v619_v5  ;;  %v652_v27 = vmul.f32 %v1679_v50, %v1679_v50 }
 0x119   :  { %v1683_v34 = vsub.f32 %v602_v36, %v637_v18  ;;  %v1685_v57 = vsub.f32 %v603_v51, %v638_v24  ;;  %v660_v20 = vsel %vm163_vm0, %v652_v27, 0.0 }
 0x11a   :  { %v625_v38 = vpop.xlane.xlu1 %624  ;;  %661 = vadd.xlane.f32.xlu1 %v660_v20  ;;  %v622_v46 = vpop.xlane.xlu0 %621 }
 0x11b   :  { %v640_v22 = vmul.f32 0.125, %v625_v38  ;;  %v639_v19 = vmul.f32 0.125, %v622_v46  ;;  %v653_v9 = vmul.f32 %v1683_v34, %v1683_v34  ;;  %v654_v44 = vmul.f32 %v1685_v57, %v1685_v57 }
 0x11d   :  { %v1692_v25 = vsub.f32 %v605_v49, %v640_v22  ;;  %v1694_v3 = vsub.f32 %v604_v52, %v639_v19  ;;  %v663_v21 = vsel %vm163_vm0, %v653_v9, 0.0  ;;  %v666_v8 = vsel %vm163_vm0, %v654_v44, 0.0 }
 0x11e   :  { %v631_v51 = vpop.xlane.xlu1 %630  ;;  %664 = vadd.xlane.f32.xlu0 %v663_v21  ;;  %667 = vadd.xlane.f32.xlu1 %v666_v8  ;;  %v628_v26 = vpop.xlane.xlu0 %627  ;;  %v1209_v8 = vld [vmem:[%s1902_s4] ss:$0 sm:$0xff] }
 0x11f   :  { %v642_v28 = vmul.f32 0.125, %v631_v51  ;;  %v641_v30 = vmul.f32 0.125, %v628_v26  ;;  %v656_v31 = vmul.f32 %v1692_v25, %v1692_v25  ;;  %v655_v29 = vmul.f32 %v1694_v3, %v1694_v3 }
 0x121   :  { %v1702_v16 = vsub.f32 %v607_v60, %v642_v28  ;;  %v1704_v35 = vsub.f32 %v606_v17, %v641_v30  ;;  %v672_v36 = vsel %vm163_vm0, %v656_v31, 0.0  ;;  %v669_v39 = vsel %vm163_vm0, %v655_v29, 0.0  ;;  %v1210_v30 = vld [vmem:[%s1903_s5] ss:$0 sm:$0xff] }
 0x122   :  { %673 = vadd.xlane.f32.xlu1 %v672_v36  ;;  %670 = vadd.xlane.f32.xlu0 %v669_v39  ;;  %v634_v63 = vpop.xlane.xlu0 %633 }
 0x123   :  { %v643_v47 = vmul.f32 0.125, %v634_v63  ;;  %v658_v40 = vmul.f32 %v1702_v16, %v1702_v16  ;;  %v657_v52 = vmul.f32 %v1704_v35, %v1704_v35 }
 0x125   :  { %v1712_v42 = vsub.f32 %v608_v2, %v643_v47  ;;  %v678_v43 = vsel %vm163_vm0, %v658_v40, 0.0  ;;  %v675_v49 = vsel %vm163_vm0, %v657_v52, 0.0 }
 0x126   :  { %679 = vadd.xlane.f32.xlu1 %v678_v43  ;;  %676 = vadd.xlane.f32.xlu0 %v675_v49 }
 0x127   :  { %v659_v53 = vmul.f32 %v1712_v42, %v1712_v42 }
 0x129   :  { %v681_v54 = vsel %vm163_vm0, %v659_v53, 0.0 }
 0x12a   :  { %682 = vadd.xlane.f32.xlu0 %v681_v54 }
 0x1a7   :  { %v662_v17 = vpop.xlane.xlu1 %661 }
 0x1a8   :  { %v684_v41 = vmul.f32 0.125, %v662_v17 }
 0x1aa   :  { %v692_v60 = vadd.f32 1e-06, %v684_v41 }
 0x1ab   :  { %v668_v61 = vpop.xlane.xlu1 %667  ;;  %v665_v1 = vpop.xlane.xlu0 %664 }
 0x1ac   :  { %1298 = vrsqrt.f32 %v692_v60  ;;  %v686_v2 = vmul.f32 0.125, %v668_v61  ;;  %v685_v58 = vmul.f32 0.125, %v665_v1 }
 0x1ae   :  { %v694_v37 = vadd.f32 1e-06, %v686_v2  ;;  %v693_v4 = vadd.f32 1e-06, %v685_v58 }
 0x1af   :  { %v674_v33 = vpop.xlane.xlu1 %673  ;;  %v671_v5 = vpop.xlane.xlu0 %670 }
 0x1b0   :  { %1300 = vrsqrt.f32 %v694_v37  ;;  %v688_v18 = vmul.f32 0.125, %v674_v33  ;;  %v687_v24 = vmul.f32 0.125, %v671_v5 }
 0x1b1   :  { %1302 = vrsqrt.f32 %v693_v4 }
 0x1b2   :  { %v696_v27 = vadd.f32 1e-06, %v688_v18  ;;  %v695_v20 = vadd.f32 1e-06, %v687_v24 }
 0x1b3   :  { %v680_v38 = vpop.xlane.xlu1 %679  ;;  %v677_v46 = vpop.xlane.xlu0 %676 }
 0x1b4   :  { %1304 = vrsqrt.f32 %v696_v27  ;;  %v690_v22 = vmul.f32 0.125, %v680_v38  ;;  %v689_v19 = vmul.f32 0.125, %v677_v46 }
 0x1b5   :  { %1306 = vrsqrt.f32 %v695_v20 }
 0x1b6   :  { %v1299_v9 = vpop.eup %1298  ;;  %v698_v44 = vadd.f32 1e-06, %v690_v22  ;;  %v697_v21 = vadd.f32 1e-06, %v689_v19 }
 0x1b7   :  { %v683_v51 = vpop.xlane.xlu0 %682  ;;  %v708_v26 = vmul.f32 %v1299_v9, %v1679_v50 }
 0x1b8   :  { %1308 = vrsqrt.f32 %v698_v44  ;;  %v691_v28 = vmul.f32 0.125, %v683_v51 }
 0x1b9   :  { %1310 = vrsqrt.f32 %v697_v21  ;;  %v722_v31 = vmul.f32 %v1209_v8, %v708_v26 }
 0x1ba   :  { %v1301_v29 = vpop.eup %1300  ;;  %v699_v36 = vadd.f32 1e-06, %v691_v28 }
 0x1bb   :  { %v1303_v39 = vpop.eup %1302  ;;  %v710_v63 = vmul.f32 %v1301_v29, %v1685_v57  ;;  %v736_v47 = vadd.f32 %v1210_v30, %v722_v31 }
 0x1bc   :  { %v709_v40 = vmul.f32 %v1303_v39, %v1683_v34  ;;  %1312 = vrsqrt.f32 %v699_v36 }
 0x1bd   :  { %v744_v52 = vmul.f32 %v736_v47, %v1648_v23  ;;  %v724_v50 = vmul.f32 %v1209_v8, %v710_v63 }
 0x1be   :  { %v1305_v43 = vpop.eup %1304  ;;  %v723_v49 = vmul.f32 %v1209_v8, %v709_v40 }
 0x1bf   :  { %v1307_v53 = vpop.eup %1306  ;;  %v712_v54 = vmul.f32 %v1305_v43, %v1692_v25  ;;  %1254 = vmatprep.mubr.msk.f32.mxu0 %vm163_vm0, %v744_v52  ;;  %v738_v55 = vadd.f32 %v1210_v30, %v724_v50 }
 0x1c0   :  { %v711_v17 = vmul.f32 %v1307_v53, %v1694_v3  ;;  %v737_v41 = vadd.f32 %v1210_v30, %v723_v49 }
 0x1c1   :  { %v746_v57 = vmul.f32 %v738_v55, %v1646_v56  ;;  %v726_v60 = vmul.f32 %v1209_v8, %v712_v54 }
 0x1c2   :  { %v1309_v61 = vpop.eup %1308  ;;  %v745_v34 = vmul.f32 %v737_v41, %v1656_v32  ;;  %v725_v1 = vmul.f32 %v1209_v8, %v711_v17 }
 0x1c3   :  { %v1311_v2 = vpop.eup %1310  ;;  %v714_v58 = vmul.f32 %v1309_v61, %v1702_v16  ;;  %v740_v37 = vadd.f32 %v1210_v30, %v726_v60 }
 0x1c4   :  { %v713_v4 = vmul.f32 %v1311_v2, %v1704_v35  ;;  %1255 = vmatmul.mubr.msk.f32.vlgmr.msra.gmra.mrb[0].mxu0 %vm163_vm0, %v745_v34  ;;  %v739_v25 = vadd.f32 %v1210_v30, %v725_v1 }
 0x1c5   :  { %1257 = vmatprep.mubr.msk.f32.mxu0 %vm163_vm0, %v746_v57  ;;  %v748_v3 = vmul.f32 %v740_v37, %v1664_v48  ;;  %v728_v33 = vmul.f32 %v1209_v8, %v714_v58 }
 0x1c6   :  { %v1313_v5 = vpop.eup %1312  ;;  %v747_v18 = vmul.f32 %v739_v25, %v1654_v62  ;;  %v727_v24 = vmul.f32 %v1209_v8, %v713_v4 }
 0x1c7   :  { %v715_v27 = vmul.f32 %v1313_v5, %v1712_v42  ;;  %v742_v20 = vadd.f32 %v1210_v30, %v728_v33  ;;  %v1211_v42 = vld [vmem:[%s1904_s7] ss:$0 sm:$0xff] }
 0x1c8   :  { %1258 = vmatmul.mubr.msk.f32.gmra.mrb[2].mxu0 %vm163_vm0, %v747_v18  ;;  %v741_v16 = vadd.f32 %v1210_v30, %v727_v24 }
 0x1c9   :  { %1260 = vmatprep.mubr.msk.f32.mxu0 %vm163_vm0, %v748_v3  ;;  %v750_v35 = vmul.f32 %v742_v20, %v1672_v59  ;;  %v729_v38 = vmul.f32 %v1209_v8, %v715_v27 }
 0x1ca   :  { %v749_v46 = vmul.f32 %v741_v16, %v1662_v45 }
 0x1cb   :  { %v743_v22 = vadd.f32 %v1210_v30, %v729_v38 }
 0x1cc   :  { %1261 = vmatmul.mubr.msk.f32.gmra.mrb[4].mxu0 %vm163_vm0, %v749_v46 }
 0x1cd   :  { %1263 = vmatprep.mubr.msk.f32.mxu0 %vm163_vm0, %v750_v35  ;;  %v751_v19 = vmul.f32 %v743_v22, %v1670_v0 }
 0x1d0   :  { %1264 = vmatmul.mubr.msk.f32.gmra.mrb[6].mxu0 %vm163_vm0, %v751_v19 }
 0x297   :  { %v1256_v9 = vpop.f32.mrb[0].mxu0 }
 0x298   :  { %v856_v44 = vadd.f32 %v1256_v9, %v1211_v42  ;;  %v850_v21 = vpop.f32.mrb[1].mxu0 }
 0x299   :  { %v851_v51 = vadd.f32 %v1211_v42, %v850_v21 }
 0x29a   :  { %v898_v8 = vmul.f32 0.70710677, %v856_v44  ;;  %v890_v60 = vmul.f32 0.5, %v856_v44 }
 0x29b   :  { %v897_v26 = vmul.f32 0.70710677, %v851_v51  ;;  %v1259_v28 = vpop.f32.mrb[2].mxu0  ;;  %v889_v1 = vmul.f32 0.5, %v851_v51 }
 0x29c   :  { %1314 = verf.f32 %v898_v8  ;;  %v866_v30 = vadd.f32 %v1259_v28, %v1211_v42  ;;  %v860_v31 = vpop.f32.mrb[3].mxu0 }
 0x29d   :  { %1316 = verf.f32 %v897_v26  ;;  %v861_v29 = vadd.f32 %v1211_v42, %v860_v31 }
 0x29e   :  { %v900_v36 = vmul.f32 0.70710677, %v866_v30  ;;  %v892_v33 = vmul.f32 0.5, %v866_v30 }
 0x29f   :  { %v899_v39 = vmul.f32 0.70710677, %v861_v29  ;;  %v1262_v63 = vpop.f32.mrb[4].mxu0  ;;  %v891_v24 = vmul.f32 0.5, %v861_v29 }
 0x2a0   :  { %1318 = verf.f32 %v900_v36  ;;  %v876_v47 = vadd.f32 %v1262_v63, %v1211_v42  ;;  %v870_v40 = vpop.f32.mrb[5].mxu0 }
 0x2a1   :  { %1320 = verf.f32 %v899_v39  ;;  %v871_v52 = vadd.f32 %v1211_v42, %v870_v40 }
 0x2a2   :  { %v902_v50 = vmul.f32 0.70710677, %v876_v47 }
 0x2a3   :  { %v901_v43 = vmul.f32 0.70710677, %v871_v52  ;;  %v1265_v49 = vpop.f32.mrb[6].mxu0  ;;  %v893_v44 = vmul.f32 0.5, %v871_v52 }
 0x2a4   :  { %1322 = verf.f32 %v902_v50  ;;  %v886_v53 = vadd.f32 %v1265_v49, %v1211_v42  ;;  %v880_v54 = vpop.f32.mrb[7].mxu0 }
 0x2a5   :  { %1324 = verf.f32 %v901_v43  ;;  %v881_v55 = vadd.f32 %v1211_v42, %v880_v54  ;;  %v894_v42 = vmul.f32 0.5, %v876_v47 }
 0x2a6   :  { %v1315_v17 = vpop.eup %1314  ;;  %v904_v41 = vmul.f32 0.70710677, %v886_v53  ;;  %v896_v40 = vmul.f32 0.5, %v886_v53 }
 0x2a7   :  { %v1317_v57 = vpop.eup %1316  ;;  %v914_v61 = vadd.f32 1.0, %v1315_v17  ;;  %v903_v34 = vmul.f32 0.70710677, %v881_v55  ;;  %v895_v49 = vmul.f32 0.5, %v881_v55 }
 0x2a8   :  { %v913_v2 = vadd.f32 1.0, %v1317_v57  ;;  %1326 = verf.f32 %v904_v41 }
 0x2a9   :  { %v922_v58 = vmul.f32 %v914_v61, %v890_v60  ;;  %1328 = verf.f32 %v903_v34 }
 0x2aa   :  { %v1319_v37 = vpop.eup %1318  ;;  %v921_v4 = vmul.f32 %v913_v2, %v889_v1 }
 0x2ab   :  { %v1321_v25 = vpop.eup %1320  ;;  %v1756_v3 = vmul.f32 %v922_v58, %v1656_v32  ;;  %v916_v5 = vadd.f32 1.0, %v1319_v37 }
 0x2ac   :  { %v1759_v18 = vmul.f32 %v921_v4, %v1648_v23  ;;  %v915_v27 = vadd.f32 1.0, %v1321_v25 }
 0x2ad   :  { %v938_v20 = vmul.f32 %v1756_v3, %v1756_v3  ;;  %v924_v16 = vmul.f32 %v916_v5, %v892_v33 }
 0x2ae   :  { %v1323_v35 = vpop.eup %1322  ;;  %v937_v38 = vmul.f32 %v1759_v18, %v1759_v18  ;;  %v923_v46 = vmul.f32 %v915_v27, %v891_v24 }
 0x2af   :  { %v1325_v22 = vpop.eup %1324  ;;  %v1766_v19 = vmul.f32 %v924_v16, %v1654_v62  ;;  %v918_v9 = vadd.f32 1.0, %v1323_v35  ;;  %v947_v21 = vsel %vm945_vm13, %v938_v20, 0.0 }
 0x2b0   :  { %v946_v51 = vsel %vm945_vm13, %v937_v38, 0.0  ;;  %v1771_v8 = vmul.f32 %v923_v46, %v1646_v56  ;;  %v917_v26 = vadd.f32 1.0, %v1325_v22 }
 0x2b1   :  { %v926_v28 = vmul.f32 %v918_v9, %v894_v42  ;;  %v940_v31 = vmul.f32 %v1766_v19, %v1766_v19  ;;  %v948_v63 = vadd.f32 %v947_v21, %v946_v51 }
 0x2b2   :  { %v1327_v30 = vpop.eup %1326  ;;  %v939_v29 = vmul.f32 %v1771_v8, %v1771_v8  ;;  %v925_v36 = vmul.f32 %v917_v26, %v893_v44 }
 0x2b3   :  { %v1329_v39 = vpop.eup %1328  ;;  %v1778_v47 = vmul.f32 %v926_v28, %v1662_v45  ;;  %v920_v52 = vadd.f32 1.0, %v1327_v30  ;;  %v951_v57 = vsel %vm945_vm13, %v940_v31, 0.0  ;;  %v1028_v30 = vld [vmem:[%s1905_s10] sm:$0xff]  ;;  %v1029_v31 = vld [vmem:[%s1905_s10 + $0x8] sm:$0xff] }
 0x2b4   :  { %v949_v50 = vsel %vm945_vm13, %v939_v29, 0.0  ;;  %v1782_v43 = vmul.f32 %v925_v36, %v1664_v48  ;;  %v919_v54 = vadd.f32 1.0, %v1329_v39  ;;  %v1030_v29 = vld [vmem:[%s1905_s10 + $0x10] sm:$0xff]  ;;  %v1286_v36 = vpack.c.bf16 %v1029_v31, %v1028_v30  ;;  %v1031_v39 = vld [vmem:[%s1905_s10 + $0x18] sm:$0xff] }
 0x2b5   :  { %v950_v17 = vadd.f32 %v949_v50, %v948_v63  ;;  %v928_v41 = vmul.f32 %v920_v52, %v896_v40  ;;  %v942_v60 = vmul.f32 %v1778_v47, %v1778_v47  ;;  %v1290_v63 = vpack.c.bf16 %v1031_v39, %v1030_v29 }
 0x2b6   :  { %v941_v61 = vmul.f32 %v1782_v43, %v1782_v43  ;;  %v927_v34 = vmul.f32 %v919_v54, %v895_v49  ;;  %1287 = vmatprep.subr.bf16.mxu1 %v1286_v36 }
 0x2b7   :  { %v952_v53 = vadd.f32 %v951_v57, %v950_v17  ;;  %v1790_v1 = vmul.f32 %v928_v41, %v1670_v0  ;;  %v955_v37 = vsel %vm945_vm13, %v942_v60, 0.0  ;;  %1289 = vmatpush3.bf16.msra.mxu1 %v1286_v36  ;;  %v1220_v17 = vld [vmem:[%s1906_s8] ss:$0 sm:$0xff] }
 0x2b8   :  { %v953_v2 = vsel %vm945_vm13, %v941_v61, 0.0  ;;  %v1794_v55 = vmul.f32 %v927_v34, %v1672_v59  ;;  %1291 = vmatprep.subr.bf16.mxu1 %v1290_v63  ;;  %v1221_v34 = vld [vmem:[%s1907_s9] ss:$0 sm:$0xff] }
 0x2b9   :  { %v954_v58 = vadd.f32 %v953_v2, %v952_v53  ;;  %v944_v4 = vmul.f32 %v1790_v1, %v1790_v1 }
 0x2ba   :  { %v943_v25 = vmul.f32 %v1794_v55, %v1794_v55 }
 0x2bb   :  { %v956_v33 = vadd.f32 %v955_v37, %v954_v58  ;;  %v959_v27 = vsel %vm945_vm13, %v944_v4, 0.0  ;;  %1293 = vmatpush3.bf16.msra.mxu1 %v1290_v63 }
 0x2bc   :  { %v957_v5 = vsel %vm945_vm13, %v943_v25, 0.0 }
 0x2bd   :  { %v958_v24 = vadd.f32 %v957_v5, %v956_v33 }
 0x2bf   :  { %v960_v20 = vadd.f32 %v959_v27, %v958_v24 }
 0x2c1   :  { %v961_v16 = vrot.slane %v960_v20, 4 }
 0x2c3   :  { %v962_v35 = vadd.f32 %v961_v16, %v960_v20 }
 0x2c5   :  { %v963_v38 = vrot.slane %v962_v35, 2 }
 0x2c7   :  { %v964_v46 = vadd.f32 %v963_v38, %v962_v35 }
 0x2c9   :  { %v965_v22 = vrot.slane %v964_v46, 1 }
 0x2cb   :  { %v966_v42 = vadd.f32 %v965_v22, %v964_v46 }
 0x2cd   :  { %1330 = vrsqrt.f32 %v966_v42  ;;  %vm969_vm14 = vcmp.eq.f32.partialorder %v966_v42, inf  ;;  %v972_v21 = vand.u32 2147483648, %v966_v42  ;;  %vm971_vm15 = vcmp.eq.f32.partialorder %v966_v42, 0.0 }
 0x2d7   :  { %v1331_v9 = vpop.eup %1330 }
 0x2d8   :  { %v968_v44 = vmul.f32 %v1331_v9, %v966_v42 }
 0x2da   :  { %v970_v51 = vsel %vm969_vm14, %v966_v42, %v968_v44 }
 0x2db   :  { %v973_v26 = vsel %vm971_vm15, %v972_v21, %v970_v51 }
 0x2dc   :  { %v974_v28 = vsel %vm945_vm13, %v973_v26, 0.0 }
 0x2dd   :  { %975 = vadd.xlane.f32.xlu1 %v974_v28 }
 0x36a   :  { %v976_v40 = vpop.xlane.xlu1 %975 }
 0x36b   :  { %v978_v52 = vmul.f32 0.03125, %v976_v40 }
 0x36d   :  { %v979_v50 = vadd.f32 1e-06, %v978_v52 }
 0x36f   :  { %1332 = vrcp.f32 %v979_v50 }
 0x379   :  { %v1333_v49 = vpop.eup %1332 }
 0x37a   :  { %v981_v54 = vmul.f32 %v1333_v49, %v973_v26 }
 0x37c   :  { %v983_v41 = vmul.f32 %v981_v54, %v1759_v18  ;;  %v984_v57 = vmul.f32 %v981_v54, %v1756_v3  ;;  %v985_v60 = vmul.f32 %v981_v54, %v1771_v8  ;;  %v986_v61 = vmul.f32 %v981_v54, %v1766_v19 }
 0x37d   :  { %v987_v53 = vmul.f32 %v981_v54, %v1782_v43  ;;  %v988_v25 = vmul.f32 %v981_v54, %v1778_v47  ;;  %v989_v33 = vmul.f32 %v981_v54, %v1794_v55  ;;  %v990_v22 = vmul.f32 %v981_v54, %v1790_v1 }
 0x37e   :  { %v997_v2 = vmul.f32 %v1220_v17, %v983_v41  ;;  %v998_v58 = vmul.f32 %v1220_v17, %v984_v57  ;;  %v999_v37 = vmul.f32 %v1220_v17, %v985_v60  ;;  %v1000_v4 = vmul.f32 %v1220_v17, %v986_v61 }
 0x37f   :  { %v1001_v20 = vmul.f32 %v1220_v17, %v987_v53  ;;  %v1002_v46 = vmul.f32 %v1220_v17, %v988_v25  ;;  %v1003_v44 = vmul.f32 %v1220_v17, %v989_v33 }
 0x380   :  { %v1012_v5 = vadd.f32 %v1221_v34, %v997_v2  ;;  %v1013_v24 = vadd.f32 %v1221_v34, %v998_v58  ;;  %v1014_v27 = vadd.f32 %v1221_v34, %v999_v37  ;;  %v1015_v38 = vadd.f32 %v1221_v34, %v1000_v4 }
 0x381   :  { %v1016_v9 = vadd.f32 %v1221_v34, %v1001_v20  ;;  %v1017_v51 = vadd.f32 %v1221_v34, %v1002_v46  ;;  %v1018_v26 = vadd.f32 %v1221_v34, %v1003_v44 }
 0x382   :  { %v1020_v16 = vadd.f32 %v1012_v5, %v1759_v18  ;;  %v1021_v35 = vadd.f32 %v1013_v24, %v1756_v3  ;;  %v1022_v42 = vadd.f32 %v1014_v27, %v1771_v8  ;;  %v1023_v21 = vadd.f32 %v1015_v38, %v1766_v19 }
 0x383   :  { %v1004_v18 = vmul.f32 %v1220_v17, %v990_v22  ;;  %v1024_v3 = vadd.f32 %v1016_v9, %v1782_v43  ;;  %v1025_v28 = vadd.f32 %v1017_v51, %v1778_v47  ;;  %v1026_v30 = vadd.f32 %v1018_v26, %v1794_v55  ;;  %v1222_v43 = vld [vmem:[%s1908_s11] ss:$0 sm:$0xff] }
 0x384   :  { %1274 = vmatprep.mubr.msk.f32.mxu1 %vm945_vm13, %v1020_v16 }
 0x385   :  { %1275 = vmatmul.mubr.msk.f32.vlgmr.msra.gmra.mrb[0].mxu1 %vm945_vm13, %v1021_v35  ;;  %v1019_v8 = vadd.f32 %v1221_v34, %v1004_v18 }
 0x386   :  { %1277 = vmatprep.mubr.msk.f32.mxu1 %vm945_vm13, %v1022_v42 }
 0x387   :  { %v1027_v19 = vadd.f32 %v1019_v8, %v1790_v1 }
 0x389   :  { %1278 = vmatmul.mubr.msk.f32.gmra.mrb[2].mxu1 %vm945_vm13, %v1023_v21 }
 0x38a   :  { %1280 = vmatprep.mubr.msk.f32.mxu1 %vm945_vm13, %v1024_v3 }
 0x38d   :  { %1281 = vmatmul.mubr.msk.f32.gmra.mrb[4].mxu1 %vm945_vm13, %v1025_v28 }
 0x38e   :  { %1283 = vmatprep.mubr.msk.f32.mxu1 %vm945_vm13, %v1026_v30 }
 0x391   :  { %1284 = vmatmul.mubr.msk.f32.gmra.mrb[6].mxu1 %vm945_vm13, %v1027_v19 }
 0x458   :  { %v1276_v31 = vpop.f32.mrb[0].mxu1 }
 0x459   :  { %v1135_v29 = vadd.f32 %v1276_v31, %v1222_v43  ;;  %v1129_v36 = vpop.f32.mrb[1].mxu1 }
 0x45a   :  { %v1130_v39 = vadd.f32 %v1222_v43, %v1129_v36 }
 0x45b   :  { %v1169_v47 = vmul.f32 %v1135_v29, %v1656_v32 }
 0x45c   :  { %v1168_v55 = vmul.f32 %v1130_v39, %v1648_v23  ;;  %v1279_v63 = vpop.f32.mrb[2].mxu1 }
 0x45d   :  { %v1177_v40 = vadd.f32 %v1169_v47, %v1425_v7  ;;  %v1145_v52 = vadd.f32 %v1279_v63, %v1222_v43  ;;  %v1139_v50 = vpop.f32.mrb[3].mxu1 }
 0x45e   :  { %v1176_v1 = vadd.f32 %v1168_v55, %v1420_v6  ;;  %v1140_v49 = vadd.f32 %v1222_v43, %v1139_v50 }
 0x45f   :  { %1185 = vst.msk [vmem:[%s1909_s12 + $0x8] sm:$0xff] %vm163_vm0, %v1177_v40  ;;  %v1171_v54 = vmul.f32 %v1145_v52, %v1654_v62 }
 0x460   :  { %1184 = vst.msk [vmem:[%s1909_s12] sm:$0xff] %vm163_vm0, %v1176_v1  ;;  %v1170_v23 = vmul.f32 %v1140_v49, %v1646_v56  ;;  %v1282_v7 = vpop.f32.mrb[4].mxu1 }
 0x461   :  { %v1179_v32 = vadd.f32 %v1171_v54, %v1445_v11  ;;  %v1155_v17 = vadd.f32 %v1282_v7, %v1222_v43  ;;  %v1149_v6 = vpop.f32.mrb[5].mxu1 }
 0x462   :  { %v1178_v41 = vadd.f32 %v1170_v23, %v1440_v10  ;;  %v1150_v57 = vadd.f32 %v1222_v43, %v1149_v6 }
 0x463   :  { %1187 = vst.msk [vmem:[%s1909_s12 + $0x18] sm:$0xff] %vm163_vm0, %v1179_v32  ;;  %v1173_v62 = vmul.f32 %v1155_v17, %v1662_v45 }
 0x464   :  { %1186 = vst.msk [vmem:[%s1909_s12 + $0x10] sm:$0xff] %vm163_vm0, %v1178_v41  ;;  %v1172_v56 = vmul.f32 %v1150_v57, %v1664_v48  ;;  %v1285_v11 = vpop.f32.mrb[6].mxu1 }
 0x465   :  { %v1181_v60 = vadd.f32 %v1173_v62, %v1459_v13  ;;  %v1165_v61 = vadd.f32 %v1285_v11, %v1222_v43  ;;  %v1159_v10 = vpop.f32.mrb[7].mxu1 }
 0x466   :  { %v1180_v34 = vadd.f32 %v1172_v56, %v1450_v12  ;;  %v1160_v53 = vadd.f32 %v1222_v43, %v1159_v10 }
 0x467   :  { %1189 = vst.msk [vmem:[%s1909_s12 + $0x28] sm:$0xff] %vm163_vm0, %v1181_v60  ;;  %v1175_v45 = vmul.f32 %v1165_v61, %v1670_v0 }
 0x468   :  { %1188 = vst.msk [vmem:[%s1909_s12 + $0x20] sm:$0xff] %vm163_vm0, %v1180_v34  ;;  %v1174_v48 = vmul.f32 %v1160_v53, %v1672_v59 }
 0x469   :  { %v1183_v13 = vadd.f32 %v1175_v45, %v1471_v15 }
 0x46a   :  { %v1182_v2 = vadd.f32 %v1174_v48, %v1466_v14 }
 0x46b   :  { %1191 = vst.msk [vmem:[%s1909_s12 + $0x38] sm:$0xff] %vm163_vm0, %v1183_v13 }
 0x46c   :  { %1190 = vst.msk [vmem:[%s1909_s12 + $0x30] sm:$0xff] %vm163_vm0, %v1182_v2 }

// kernel: sparse_convnextv2_forward.11
= control target key start
LH: loop header
LB: loop body
LE: loop exit
PB: predicated region body
PF: predicated region fallthrough
CT: control target
= control target key end

     0   :  { %vm103_vm0 = vcmask 130048   ;;  %v866_v0 = vmov 0   ;;  %v867_v3 = vmov 0.0   ;;  %v50_v10 = vlaneseq  ;;  %s1170_s1 = inlined_call_operand.vmem [shape: f32[32,1], index: 1, kind: input, shape index: {}]   ;;  %s1171_s0 = inlined_call_operand.vmem [shape: f32[32,16], index: 0, kind: input, shape index: {}]   ;;  %s1172_s2 = inlined_call_operand.vmem [shape: f32[7,16], index: 2, kind: input, shape index: {}]   ;;  %s1173_s3 = inlined_call_operand.vmem [shape: f32[1,16], index: 3, kind: input, shape index: {}]   ;;  %s1174_s6 = inlined_call_operand.vmem [shape: f32[16,64], index: 6, kind: input, shape index: {}]   ;;  %s1175_s4 = inlined_call_operand.vmem [shape: f32[1,16], index: 4, kind: input, shape index: {}]   ;;  %s1176_s5 = inlined_call_operand.vmem [shape: f32[1,16], index: 5, kind: input, shape index: {}]   ;;  %s1177_s7 = inlined_call_operand.vmem [shape: f32[1,64], index: 7, kind: input, shape index: {}]   ;;  %s1178_s10 = inlined_call_operand.vmem [shape: f32[64,16], index: 10, kind: input, shape index: {}]   ;;  %s1179_s8 = inlined_call_operand.vmem [shape: f32[1,64], index: 8, kind: input, shape index: {}]   ;;  %s1180_s9 = inlined_call_operand.vmem [shape: f32[1,64], index: 9, kind: input, shape index: {}]   ;;  %s1181_s11 = inlined_call_operand.vmem [shape: f32[1,16], index: 11, kind: input, shape index: {}]   ;;  %s1182_s12 = inlined_call_operand.vmem [shape: f32[32,16], index: 12, kind: output, shape index: {}]  }
   0x1   :  { %845 = vset.pattern.permute.xlu1 %v866_v0  ;;  %844 = vset.pattern.permute.xlu0 %v866_v0  ;;  %v47_v1 = vld [vmem:[%s1170_s1 + $0x10] sm:$0xff]  ;;  %v45_v2 = vld [vmem:[%s1170_s1] sm:$0xff]  ;;  %104 = vst.msk [vmem:[#allocation2] sm:$0xff] %vm103_vm0, %v867_v3  ;;  %105 = vst.msk [vmem:[#allocation2 + $0x28] sm:$0xff] %vm103_vm0, %v867_v3  ;;  %vm558_vm13 = vcmask 523264  }
   0x2   :  { %333 = vperm.xlu1 %845, %v47_v1   ;;  %323 = vperm.xlu0 %844, %v45_v2   ;;  %v48_v4 = vld [vmem:[%s1170_s1 + $0x18] sm:$0xff]  ;;  %v949_v5 = vld [vmem:[%s1171_s0] sm:$0xff]  ;;  %v954_v6 = vld [vmem:[%s1171_s0 + $0x8] sm:$0xff]  ;;  %v977_v11 = vshrl.u32 %v50_v10, 7 }
   0x3   :  { %v46_v7 = vld [vmem:[%s1170_s1 + $0x8] sm:$0xff]  ;;  %v962_v8 = vld [vmem:[%s1171_s0 + $0x10] sm:$0xff]  ;;  %v967_v9 = vld [vmem:[%s1171_s0 + $0x18] sm:$0xff]  ;;  %106 = vst.msk [vmem:[#allocation2 + $0x8] sm:$0xff] %vm103_vm0, %v949_v5 }
   0x4   :  { %107 = vst.msk [vmem:[#allocation2 + $0x10] sm:$0xff] %vm103_vm0, %v954_v6  ;;  %108 = vst.msk [vmem:[#allocation2 + $0x18] sm:$0xff] %vm103_vm0, %v962_v8  ;;  %v53_v12 = vadd.s32 16, %v977_v11  ;;  %v59_v13 = vand.u32 15, %v977_v11  ;;  %v136_v15 = vsub.s32 0, %v977_v11  ;;  %v112_v17 = vsub.s32 3, %v977_v11 }
   0x5   :  { %109 = vst.msk [vmem:[#allocation2 + $0x20] sm:$0xff] %vm103_vm0, %v967_v9  ;;  %v985_v16 = vld [vmem:[%s1172_s2] sm:$0x7f]  ;;  %v168_v19 = vsub.s32 1, %v977_v11  ;;  %v200_v22 = vsub.s32 2, %v977_v11  ;;  %v52_v32 = vadd.s32 8, %v977_v11 }
   0x6   :  { %338 = vperm.xlu1 %845, %v48_v4   ;;  %328 = vperm.xlu0 %844, %v46_v7   ;;  %v73_v14 = vand.u32 15, %v53_v12  ;;  %vm122_vm1 = vcmp.ge.s32.totalorder %v59_v13, 3  ;;  %v137_v18 = vrot.slane %v985_v16, %v136_v15  ;;  %vm154_vm3 = vcmp.ge.s32.totalorder %v59_v13, 2 }
   0x7   :  { %v745_v20 = vsel %vm122_vm1, 1.0, %v867_v3  ;;  %v113_v23 = vrot.slane %v985_v16, %v112_v17  ;;  %v169_v25 = vrot.slane %v985_v16, %v168_v19  ;;  %v747_v27 = vsel %vm154_vm3, 1.0, %v867_v3 }
   0x8   :  { %vm124_vm2 = vcmp.ge.s32.totalorder %v73_v14, 3  ;;  %vm156_vm4 = vcmp.ge.s32.totalorder %v73_v14, 2  ;;  %v138_v24 = vmul.f32 %v745_v20, %v137_v18  ;;  %vm186_vm5 = vcmp.ge.s32.totalorder %v59_v13, 1 }
   0x9   :  { %v746_v21 = vsel %vm124_vm2, 1.0, %v867_v3  ;;  %v748_v30 = vsel %vm156_vm4, 1.0, %v867_v3  ;;  %v998_v31 = vrot.slane %v985_v16, %v200_v22  ;;  %vm188_vm6 = vcmp.ge.s32.totalorder %v73_v14, 1 }
   0xa   :  { %v118_v26 = vld [vmem:[#allocation2 + $0x5] sm:$0xff]  ;;  %v140_v28 = vmul.f32 %v746_v21, %v137_v18  ;;  %v114_v33 = vmul.f32 %v113_v23, %v949_v5  ;;  %v170_v35 = vmul.f32 %v747_v27, %v169_v25  ;;  %v749_v36 = vsel %vm186_vm5, 1.0, %v867_v3 }
   0xb   :  { %v120_v29 = vld [vmem:[#allocation2 + $0x15] sm:$0xff]  ;;  %v142_v34 = vmul.f32 %v138_v24, %v118_v26  ;;  %v150_v37 = vld [vmem:[#allocation2 + $0x6] sm:$0xff]  ;;  %v116_v39 = vmul.f32 %v113_v23, %v962_v8  ;;  %v172_v41 = vmul.f32 %v748_v30, %v169_v25  ;;  %v54_v42 = vadd.s32 24, %v977_v11 }
   0xc   :  { %v119_v38 = vld [vmem:[#allocation2 + $0xd] sm:$0xff]  ;;  %v144_v40 = vmul.f32 %v140_v28, %v120_v29  ;;  %v232_v43 = vsub.s32 4, %v977_v11  ;;  %v152_v44 = vld [vmem:[#allocation2 + $0x16] sm:$0xff]  ;;  %v750_v45 = vsel %vm188_vm6, 1.0, %v867_v3  ;;  %v202_v46 = vmul.f32 %v749_v36, %v998_v31  ;;  %v153_v12 = vld [vmem:[#allocation2 + $0x1e] sm:$0xff] }
   0xd   :  { %v66_v47 = vand.u32 15, %v52_v32  ;;  %v146_v48 = vadd.f32 %v142_v34, %v114_v33  ;;  %v174_v49 = vmul.f32 %v170_v35, %v150_v37  ;;  %v182_v50 = vld [vmem:[#allocation2 + $0x7] sm:$0xff]  ;;  %v115_v51 = vmul.f32 %v113_v23, %v954_v6  ;;  %v121_v53 = vld [vmem:[#allocation2 + $0x1d] sm:$0xff]  ;;  %v183_v10 = vld [vmem:[#allocation2 + $0xf] sm:$0xff] }
   0xe   :  { %v143_v52 = vmul.f32 %v137_v18, %v119_v38  ;;  %v151_v54 = vld [vmem:[#allocation2 + $0xe] sm:$0xff]  ;;  %v148_v55 = vadd.f32 %v144_v40, %v116_v39  ;;  %v176_v56 = vmul.f32 %v172_v41, %v152_v44  ;;  %v204_v57 = vmul.f32 %v750_v45, %v998_v31  ;;  %v184_v61 = vld [vmem:[#allocation2 + $0x17] sm:$0xff]  ;;  %v185_v29 = vld [vmem:[#allocation2 + $0x1f] sm:$0xff] }
   0xf   :  { %v1010_v58 = vand.u32 15, %v54_v42  ;;  %v233_v59 = vrot.slane %v985_v16, %v232_v43  ;;  %v264_v60 = vsub.s32 5, %v977_v11  ;;  %v206_v62 = vmul.f32 %v202_v46, %v182_v50  ;;  %v214_v63 = vld [vmem:[#allocation2 + $0x9] sm:$0xff]  ;;  %v216_v21 = vld [vmem:[#allocation2 + $0x19] sm:$0xff]  ;;  %v215_v36 = vld [vmem:[#allocation2 + $0x11] sm:$0xff] }
  0x10   :  { %vm219_vm7 = vcmp.lt.s32.totalorder %v66_v47, 15  ;;  %v117_v0 = vmul.f32 %v113_v23, %v967_v9  ;;  %v145_v1 = vmul.f32 %v137_v18, %v121_v53  ;;  %v178_v2 = vadd.f32 %v174_v49, %v146_v48  ;;  %v246_v22 = vld [vmem:[#allocation2 + $0xa] sm:$0xff]  ;;  %v248_v37 = vld [vmem:[#allocation2 + $0x1a] sm:$0xff]  ;;  %v247_v49 = vld [vmem:[#allocation2 + $0x12] sm:$0xff] }
  0x11   :  { %v147_v4 = vadd.f32 %v143_v52, %v115_v51  ;;  %v175_v7 = vmul.f32 %v169_v25, %v151_v54  ;;  %vm251_vm8 = vcmp.lt.s32.totalorder %v66_v47, 14  ;;  %v180_v13 = vadd.f32 %v176_v56, %v148_v55  ;;  %v217_v44 = vld [vmem:[#allocation2 + $0x21] sm:$0xff]  ;;  %v278_v46 = vld [vmem:[#allocation2 + $0xb] sm:$0xff] }
  0x12   :  { %v208_v14 = vmul.f32 %v204_v57, %v184_v61  ;;  %vm221_vm9 = vcmp.lt.s32.totalorder %v1010_v58, 15  ;;  %v238_v15 = vmul.f32 %v233_v59, %v214_v63  ;;  %v265_v17 = vrot.slane %v985_v16, %v264_v60  ;;  %v280_v51 = vld [vmem:[#allocation2 + $0x1b] sm:$0xff]  ;;  %v279_v63 = vld [vmem:[#allocation2 + $0x13] sm:$0xff] }
  0x13   :  { %v296_v19 = vsub.s32 6, %v977_v11  ;;  %v751_v20 = vsel %vm219_vm7, 1.0, %v867_v3  ;;  %v207_v18 = vmul.f32 %v998_v31, %v183_v10  ;;  %v753_v23 = vsel %vm251_vm8, 1.0, %v867_v3  ;;  %v249_v57 = vld [vmem:[#allocation2 + $0x22] sm:$0xff] }
  0x14   :  { %v149_v24 = vadd.f32 %v145_v1, %v117_v0  ;;  %v177_v26 = vmul.f32 %v169_v25, %v153_v12  ;;  %v210_v27 = vadd.f32 %v206_v62, %v178_v2  ;;  %v179_v28 = vadd.f32 %v175_v7, %v147_v4  ;;  %v281_v4 = vld [vmem:[#allocation2 + $0x23] sm:$0xff] }
  0x15   :  { %vm283_vm10 = vcmp.lt.s32.totalorder %v66_v47, 13  ;;  %v752_v30 = vsel %vm221_vm9, 1.0, %v867_v3  ;;  %v235_v32 = vmul.f32 %v751_v20, %v233_v59  ;;  %v212_v33 = vadd.f32 %v208_v14, %v180_v13  ;;  %v757_v13 = vld [vmem:[%s1173_s3] ss:$0 sm:$0xff] }
  0x16   :  { %v240_v34 = vmul.f32 %v233_v59, %v216_v21  ;;  %vm253_vm11 = vcmp.lt.s32.totalorder %v1010_v58, 14  ;;  %v270_v11 = vmul.f32 %v265_v17, %v246_v22  ;;  %v297_v35 = vrot.slane %v985_v16, %v296_v19 }
  0x17   :  { %v267_v38 = vmul.f32 %v753_v23, %v265_v17  ;;  %v181_v39 = vadd.f32 %v177_v26, %v149_v24  ;;  %v209_v25 = vmul.f32 %v998_v31, %v185_v29  ;;  %v237_v40 = vmul.f32 %v752_v30, %v233_v59 }
  0x18   :  { %v242_v41 = vadd.f32 %v238_v15, %v210_v27  ;;  %v211_v42 = vadd.f32 %v207_v18, %v179_v28  ;;  %v755_v43 = vsel %vm283_vm10, 1.0, %v867_v3  ;;  %v754_v45 = vsel %vm253_vm11, 1.0, %v867_v3 }
  0x19   :  { %v239_v48 = vmul.f32 %v235_v32, %v215_v36  ;;  %v244_v50 = vadd.f32 %v240_v34, %v212_v33  ;;  %v272_v16 = vmul.f32 %v265_v17, %v248_v37  ;;  %vm285_vm12 = vcmp.lt.s32.totalorder %v1010_v58, 13 }
  0x1a   :  { %v213_v52 = vadd.f32 %v209_v25, %v181_v39  ;;  %v241_v53 = vmul.f32 %v237_v40, %v217_v44  ;;  %v269_v31 = vmul.f32 %v754_v45, %v265_v17  ;;  %v302_v54 = vmul.f32 %v297_v35, %v278_v46 }
  0x1b   :  { %v271_v55 = vmul.f32 %v267_v38, %v247_v49  ;;  %v299_v56 = vmul.f32 %v755_v43, %v297_v35  ;;  %v756_v47 = vsel %vm285_vm12, 1.0, %v867_v3  ;;  %v274_v59 = vadd.f32 %v270_v11, %v242_v41 }
  0x1c   :  { %v243_v60 = vadd.f32 %v239_v48, %v211_v42  ;;  %v276_v61 = vadd.f32 %v272_v16, %v244_v50  ;;  %v304_v62 = vmul.f32 %v297_v35, %v280_v51  ;;  %v245_v0 = vadd.f32 %v241_v53, %v213_v52 }
  0x1d   :  { %v273_v1 = vmul.f32 %v269_v31, %v249_v57  ;;  %v301_v2 = vmul.f32 %v756_v47, %v297_v35  ;;  %v306_v58 = vadd.f32 %v302_v54, %v274_v59  ;;  %v303_v10 = vmul.f32 %v299_v56, %v279_v63  ;;  %v424_v31 = vld [vmem:[%s1174_s6] sm:$0xff]  ;;  %v425_v54 = vld [vmem:[%s1174_s6 + $0x8] sm:$0xff] }
  0x1e   :  { %v275_v7 = vadd.f32 %v271_v55, %v243_v60  ;;  %v308_v12 = vadd.f32 %v304_v62, %v276_v61  ;;  %v822_v55 = vpack.c.bf16 %v425_v54, %v424_v31 }
  0x1f   :  { %v277_v14 = vadd.f32 %v273_v1, %v245_v0  ;;  %v305_v15 = vmul.f32 %v301_v2, %v281_v4  ;;  %v317_v3 = vadd.f32 %v757_v13, %v306_v58 }
  0x20   :  { %v307_v17 = vadd.f32 %v303_v10, %v275_v7  ;;  %v319_v19 = vadd.f32 %v757_v13, %v308_v12  ;;  %823 = vmatprep.subr.bf16.mxu0 %v822_v55  ;;  %v758_v7 = vld [vmem:[%s1175_s4] ss:$0 sm:$0xff] }
  0x21   :  { %v309_v20 = vadd.f32 %v305_v15, %v277_v14  ;;  %825 = vmatpush3.bf16.msra.mxu0 %v822_v55  ;;  %v759_v12 = vld [vmem:[%s1176_s5] ss:$0 sm:$0xff] }
  0x22   :  { %v318_v23 = vadd.f32 %v757_v13, %v307_v17 }
  0x23   :  { %v320_v27 = vadd.f32 %v757_v13, %v309_v20 }
  0x81   :  { %v1033_v21 = vpop.permute.xlu1 %333  ;;  %v1035_v22 = vpop.permute.xlu0 %323 }
  0x82   :  { %v341_v18 = vmul.f32 %v1035_v22, %v317_v3  ;;  %v343_v24 = vmul.f32 %v1033_v21, %v319_v19 }
  0x84   :  { %v347_v26 = vsel %vm103_vm0, %v341_v18, 0.0  ;;  %v353_v32 = vsel %vm103_vm0, %v343_v24, 0.0 }
  0x85   :  { %v1040_v28 = vpop.permute.xlu1 %338  ;;  %v1042_v29 = vpop.permute.xlu0 %328  ;;  %348 = vadd.xlane.f32.xlu0 %v347_v26 }
  0x86   :  { %v342_v30 = vmul.f32 %v1042_v29, %v318_v23  ;;  %v344_v34 = vmul.f32 %v1040_v28, %v320_v27 }
  0x88   :  { %v350_v33 = vsel %vm103_vm0, %v342_v30, 0.0  ;;  %v356_v11 = vsel %vm103_vm0, %v344_v34, 0.0 }
  0x89   :  { %351 = vadd.xlane.f32.xlu1 %v350_v33  ;;  %354 = vadd.xlane.f32.xlu0 %v353_v32 }
  0x8d   :  { %357 = vadd.xlane.f32.xlu0 %v356_v11 }
 0x112   :  { %v349_v35 = vpop.xlane.xlu0 %348 }
 0x113   :  { %v360_v36 = vmul.f32 0.0625, %v349_v35 }
 0x115   :  { %v364_v37 = vsub.f32 %v341_v18, %v360_v36  ;;  %v760_v36 = vld [vmem:[%s1177_s7] ss:$0 sm:$0xff] }
 0x116   :  { %v352_v38 = vpop.xlane.xlu1 %351  ;;  %v355_v39 = vpop.xlane.xlu0 %354 }
 0x117   :  { %v361_v25 = vmul.f32 0.0625, %v352_v38  ;;  %v362_v40 = vmul.f32 0.0625, %v355_v39  ;;  %v368_v41 = vmul.f32 %v364_v37, %v364_v37 }
 0x119   :  { %v365_v42 = vsub.f32 %v342_v30, %v361_v25  ;;  %v366_v43 = vsub.f32 %v343_v24, %v362_v40  ;;  %v372_v44 = vsel %vm103_vm0, %v368_v41, 0.0 }
 0x11a   :  { %373 = vadd.xlane.f32.xlu1 %v372_v44  ;;  %v358_v45 = vpop.xlane.xlu0 %357 }
 0x11b   :  { %v363_v46 = vmul.f32 0.0625, %v358_v45  ;;  %v369_v48 = vmul.f32 %v365_v42, %v365_v42  ;;  %v370_v49 = vmul.f32 %v366_v43, %v366_v43 }
 0x11d   :  { %v367_v50 = vsub.f32 %v344_v34, %v363_v46  ;;  %v375_v16 = vsel %vm103_vm0, %v369_v48, 0.0  ;;  %v378_v51 = vsel %vm103_vm0, %v370_v49, 0.0 }
 0x11e   :  { %376 = vadd.xlane.f32.xlu0 %v375_v16  ;;  %379 = vadd.xlane.f32.xlu1 %v378_v51 }
 0x11f   :  { %v371_v52 = vmul.f32 %v367_v50, %v367_v50 }
 0x121   :  { %v381_v53 = vsel %vm103_vm0, %v371_v52, 0.0 }
 0x122   :  { %382 = vadd.xlane.f32.xlu0 %v381_v53 }
 0x1a7   :  { %v374_v56 = vpop.xlane.xlu1 %373 }
 0x1a8   :  { %v384_v57 = vmul.f32 0.0625, %v374_v56 }
 0x1aa   :  { %v388_v47 = vadd.f32 1e-06, %v384_v57 }
 0x1ab   :  { %v380_v59 = vpop.xlane.xlu1 %379  ;;  %v377_v60 = vpop.xlane.xlu0 %376 }
 0x1ac   :  { %846 = vrsqrt.f32 %v388_v47  ;;  %v386_v61 = vmul.f32 0.0625, %v380_v59  ;;  %v385_v62 = vmul.f32 0.0625, %v377_v60 }
 0x1ae   :  { %v390_v63 = vadd.f32 1e-06, %v386_v61  ;;  %v389_v0 = vadd.f32 1e-06, %v385_v62 }
 0x1af   :  { %v383_v1 = vpop.xlane.xlu0 %382 }
 0x1b0   :  { %848 = vrsqrt.f32 %v390_v63  ;;  %v387_v2 = vmul.f32 0.0625, %v383_v1 }
 0x1b1   :  { %850 = vrsqrt.f32 %v389_v0 }
 0x1b2   :  { %v391_v4 = vadd.f32 1e-06, %v387_v2 }
 0x1b4   :  { %852 = vrsqrt.f32 %v391_v4 }
 0x1b6   :  { %v847_v58 = vpop.eup %846 }
 0x1b7   :  { %v396_v10 = vmul.f32 %v847_v58, %v364_v37 }
 0x1b9   :  { %v406_v13 = vmul.f32 %v758_v7, %v396_v10 }
 0x1ba   :  { %v849_v14 = vpop.eup %848 }
 0x1bb   :  { %v851_v15 = vpop.eup %850  ;;  %v398_v3 = vmul.f32 %v849_v14, %v366_v43  ;;  %v416_v17 = vadd.f32 %v759_v12, %v406_v13 }
 0x1bc   :  { %v397_v19 = vmul.f32 %v851_v15, %v365_v42 }
 0x1bd   :  { %v420_v20 = vmul.f32 %v416_v17, %v1035_v22  ;;  %v408_v18 = vmul.f32 %v758_v7, %v398_v3 }
 0x1be   :  { %v853_v23 = vpop.eup %852  ;;  %v407_v24 = vmul.f32 %v758_v7, %v397_v19 }
 0x1bf   :  { %v399_v26 = vmul.f32 %v853_v23, %v367_v50  ;;  %794 = vmatprep.mubr.msk.f32.mxu0 %vm103_vm0, %v420_v20  ;;  %v418_v27 = vadd.f32 %v759_v12, %v408_v18 }
 0x1c0   :  { %v417_v30 = vadd.f32 %v759_v12, %v407_v24 }
 0x1c1   :  { %v422_v32 = vmul.f32 %v418_v27, %v1033_v21  ;;  %v409_v33 = vmul.f32 %v758_v7, %v399_v26 }
 0x1c2   :  { %v421_v34 = vmul.f32 %v417_v30, %v1042_v29 }
 0x1c3   :  { %v419_v11 = vadd.f32 %v759_v12, %v409_v33 }
 0x1c4   :  { %795 = vmatmul.mubr.msk.f32.vlgmr.msra.gmra.mrb[0].mxu0 %vm103_vm0, %v421_v34 }
 0x1c5   :  { %797 = vmatprep.mubr.msk.f32.mxu0 %vm103_vm0, %v422_v32  ;;  %v423_v35 = vmul.f32 %v419_v11, %v1040_v28 }
 0x1c8   :  { %798 = vmatmul.mubr.msk.f32.gmra.mrb[2].mxu0 %vm103_vm0, %v423_v35 }
 0x297   :  { %v796_v37 = vpop.f32.mrb[0].mxu0 }
 0x298   :  { %v517_v38 = vadd.f32 %v796_v37, %v760_v36  ;;  %v511_v39 = vpop.f32.mrb[1].mxu0  ;;  %v618_v37 = vld [vmem:[%s1178_s10 + $0x8] sm:$0xff] }
 0x299   :  { %v512_v25 = vadd.f32 %v760_v36, %v511_v39  ;;  %v619_v39 = vld [vmem:[%s1178_s10 + $0x10] sm:$0xff] }
 0x29a   :  { %v535_v40 = vmul.f32 0.70710677, %v517_v38  ;;  %v531_v16 = vmul.f32 0.5, %v517_v38 }
 0x29b   :  { %v534_v41 = vmul.f32 0.70710677, %v512_v25  ;;  %v799_v42 = vpop.f32.mrb[2].mxu0  ;;  %v530_v52 = vmul.f32 0.5, %v512_v25  ;;  %v620_v25 = vld [vmem:[%s1178_s10 + $0x18] sm:$0xff] }
 0x29c   :  { %854 = verf.f32 %v535_v40  ;;  %v527_v43 = vadd.f32 %v799_v42, %v760_v36  ;;  %v521_v44 = vpop.f32.mrb[3].mxu0  ;;  %v830_v40 = vpack.c.bf16 %v620_v25, %v619_v39  ;;  %v622_v42 = vld [vmem:[%s1178_s10 + $0x28] sm:$0xff] }
 0x29d   :  { %856 = verf.f32 %v534_v41  ;;  %v522_v45 = vadd.f32 %v760_v36, %v521_v44  ;;  %v617_v36 = vld [vmem:[%s1178_s10] sm:$0xff] }
 0x29e   :  { %v537_v46 = vmul.f32 0.70710677, %v527_v43  ;;  %v533_v47 = vmul.f32 0.5, %v527_v43  ;;  %v826_v38 = vpack.c.bf16 %v618_v37, %v617_v36  ;;  %v621_v41 = vld [vmem:[%s1178_s10 + $0x20] sm:$0xff]  ;;  %v623_v43 = vld [vmem:[%s1178_s10 + $0x30] sm:$0xff] }
 0x29f   :  { %v536_v48 = vmul.f32 0.70710677, %v522_v45  ;;  %v532_v61 = vmul.f32 0.5, %v522_v45  ;;  %v834_v44 = vpack.c.bf16 %v622_v42, %v621_v41  ;;  %v624_v45 = vld [vmem:[%s1178_s10 + $0x38] sm:$0xff] }
 0x2a0   :  { %858 = verf.f32 %v537_v46  ;;  %827 = vmatprep.subr.bf16.mxu1 %v826_v38  ;;  %v838_v46 = vpack.c.bf16 %v624_v45, %v623_v43 }
 0x2a1   :  { %860 = verf.f32 %v536_v48  ;;  %829 = vmatpush3.bf16.msra.mxu1 %v826_v38 }
 0x2a2   :  { %831 = vmatprep.subr.bf16.mxu1 %v830_v40 }
 0x2a5   :  { %833 = vmatpush3.bf16.msra.mxu1 %v830_v40 }
 0x2a6   :  { %v855_v49 = vpop.eup %854  ;;  %835 = vmatprep.subr.bf16.mxu1 %v834_v44 }
 0x2a7   :  { %v857_v50 = vpop.eup %856  ;;  %v543_v51 = vadd.f32 1.0, %v855_v49 }
 0x2a8   :  { %v542_v53 = vadd.f32 1.0, %v857_v50 }
 0x2a9   :  { %v547_v31 = vmul.f32 %v543_v51, %v531_v16  ;;  %837 = vmatpush3.bf16.msra.mxu1 %v834_v44 }
 0x2aa   :  { %v859_v54 = vpop.eup %858  ;;  %v546_v55 = vmul.f32 %v542_v53, %v530_v52  ;;  %839 = vmatprep.subr.bf16.mxu1 %v838_v46  ;;  %v765_v52 = vld [vmem:[%s1179_s8] ss:$0 sm:$0xff] }
 0x2ab   :  { %v861_v56 = vpop.eup %860  ;;  %v1077_v57 = vmul.f32 %v547_v31, %v1042_v29  ;;  %v545_v59 = vadd.f32 1.0, %v859_v54 }
 0x2ac   :  { %v1080_v60 = vmul.f32 %v546_v55, %v1035_v22  ;;  %v544_v62 = vadd.f32 1.0, %v861_v56  ;;  %v766_v56 = vld [vmem:[%s1180_s9] ss:$0 sm:$0xff] }
 0x2ad   :  { %v555_v63 = vmul.f32 %v1077_v57, %v1077_v57  ;;  %v549_v0 = vmul.f32 %v545_v59, %v533_v47  ;;  %841 = vmatpush3.bf16.msra.mxu1 %v838_v46 }
 0x2ae   :  { %v554_v1 = vmul.f32 %v1080_v60, %v1080_v60  ;;  %v548_v2 = vmul.f32 %v544_v62, %v532_v61 }
 0x2af   :  { %v1087_v4 = vmul.f32 %v549_v0, %v1040_v28  ;;  %v560_v58 = vsel %vm558_vm13, %v555_v63, 0.0 }
 0x2b0   :  { %v559_v7 = vsel %vm558_vm13, %v554_v1, 0.0  ;;  %v1092_v10 = vmul.f32 %v548_v2, %v1033_v21 }
 0x2b1   :  { %v557_v12 = vmul.f32 %v1087_v4, %v1087_v4  ;;  %v561_v14 = vadd.f32 %v560_v58, %v559_v7 }
 0x2b2   :  { %v556_v13 = vmul.f32 %v1092_v10, %v1092_v10 }
 0x2b3   :  { %v564_v17 = vsel %vm558_vm13, %v557_v12, 0.0 }
 0x2b4   :  { %v562_v15 = vsel %vm558_vm13, %v556_v13, 0.0 }
 0x2b5   :  { %v563_v3 = vadd.f32 %v562_v15, %v561_v14  ;;  %v767_v14 = vld [vmem:[%s1181_s11] ss:$0 sm:$0xff] }
 0x2b7   :  { %v565_v19 = vadd.f32 %v564_v17, %v563_v3 }
 0x2b9   :  { %v566_v20 = vrot.slane %v565_v19, 4 }
 0x2bb   :  { %v567_v18 = vadd.f32 %v566_v20, %v565_v19 }
 0x2bd   :  { %v568_v23 = vrot.slane %v567_v18, 2 }
 0x2bf   :  { %v569_v24 = vadd.f32 %v568_v23, %v567_v18 }
 0x2c1   :  { %v570_v26 = vrot.slane %v569_v24, 1 }
 0x2c3   :  { %v571_v27 = vadd.f32 %v570_v26, %v569_v24 }
 0x2c5   :  { %862 = vrsqrt.f32 %v571_v27  ;;  %vm574_vm14 = vcmp.eq.f32.partialorder %v571_v27, inf  ;;  %v577_v33 = vand.u32 2147483648, %v571_v27  ;;  %vm576_vm15 = vcmp.eq.f32.partialorder %v571_v27, 0.0 }
 0x2cf   :  { %v863_v30 = vpop.eup %862 }
 0x2d0   :  { %v573_v32 = vmul.f32 %v863_v30, %v571_v27 }
 0x2d2   :  { %v575_v34 = vsel %vm574_vm14, %v571_v27, %v573_v32 }
 0x2d3   :  { %v578_v11 = vsel %vm576_vm15, %v577_v33, %v575_v34 }
 0x2d4   :  { %v579_v35 = vsel %vm558_vm13, %v578_v11, 0.0 }
 0x2d5   :  { %580 = vadd.xlane.f32.xlu1 %v579_v35 }
 0x362   :  { %v581_v48 = vpop.xlane.xlu1 %580 }
 0x363   :  { %v583_v49 = vmul.f32 0.015625, %v581_v48 }
 0x365   :  { %v584_v50 = vadd.f32 1e-06, %v583_v49 }
 0x367   :  { %864 = vrcp.f32 %v584_v50 }
 0x371   :  { %v865_v16 = vpop.eup %864 }
 0x372   :  { %v586_v51 = vmul.f32 %v865_v16, %v578_v11 }
 0x374   :  { %v588_v53 = vmul.f32 %v586_v51, %v1080_v60  ;;  %v589_v31 = vmul.f32 %v586_v51, %v1077_v57  ;;  %v590_v54 = vmul.f32 %v586_v51, %v1092_v10  ;;  %v591_v55 = vmul.f32 %v586_v51, %v1087_v4 }
 0x376   :  { %v598_v47 = vmul.f32 %v765_v52, %v588_v53  ;;  %v599_v59 = vmul.f32 %v765_v52, %v589_v31  ;;  %v600_v61 = vmul.f32 %v765_v52, %v590_v54  ;;  %v601_v62 = vmul.f32 %v765_v52, %v591_v55 }
 0x378   :  { %v609_v63 = vadd.f32 %v766_v56, %v598_v47  ;;  %v610_v0 = vadd.f32 %v766_v56, %v599_v59  ;;  %v611_v1 = vadd.f32 %v766_v56, %v600_v61  ;;  %v612_v7 = vadd.f32 %v766_v56, %v601_v62 }
 0x37a   :  { %v613_v2 = vadd.f32 %v609_v63, %v1080_v60  ;;  %v614_v58 = vadd.f32 %v610_v0, %v1077_v57  ;;  %v615_v12 = vadd.f32 %v611_v1, %v1092_v10  ;;  %v616_v13 = vadd.f32 %v612_v7, %v1087_v4 }
 0x37c   :  { %816 = vmatprep.mubr.msk.f32.mxu1 %vm558_vm13, %v613_v2 }
 0x37d   :  { %817 = vmatmul.mubr.msk.f32.vlgmr.msra.gmra.mrb[0].mxu1 %vm558_vm13, %v614_v58 }
 0x37e   :  { %819 = vmatprep.mubr.msk.f32.mxu1 %vm558_vm13, %v615_v12 }
 0x381   :  { %820 = vmatmul.mubr.msk.f32.gmra.mrb[2].mxu1 %vm558_vm13, %v616_v13 }
 0x450   :  { %v818_v60 = vpop.f32.mrb[0].mxu1 }
 0x451   :  { %v716_v15 = vadd.f32 %v818_v60, %v767_v14  ;;  %v710_v57 = vpop.f32.mrb[1].mxu1 }
 0x452   :  { %v711_v3 = vadd.f32 %v767_v14, %v710_v57 }
 0x453   :  { %v730_v17 = vmul.f32 %v716_v15, %v1042_v29 }
 0x454   :  { %v729_v10 = vmul.f32 %v711_v3, %v1035_v22  ;;  %v821_v19 = vpop.f32.mrb[2].mxu1 }
 0x455   :  { %v734_v20 = vadd.f32 %v730_v17, %v954_v6  ;;  %v726_v18 = vadd.f32 %v821_v19, %v767_v14  ;;  %v720_v23 = vpop.f32.mrb[3].mxu1 }
 0x456   :  { %v733_v4 = vadd.f32 %v729_v10, %v949_v5  ;;  %v721_v24 = vadd.f32 %v767_v14, %v720_v23 }
 0x457   :  { %738 = vst.msk [vmem:[%s1182_s12 + $0x8] sm:$0xff] %vm103_vm0, %v734_v20  ;;  %v732_v26 = vmul.f32 %v726_v18, %v1040_v28 }
 0x458   :  { %737 = vst.msk [vmem:[%s1182_s12] sm:$0xff] %vm103_vm0, %v733_v4  ;;  %v731_v22 = vmul.f32 %v721_v24, %v1033_v21 }
 0x459   :  { %v736_v6 = vadd.f32 %v732_v26, %v967_v9 }
 0x45a   :  { %v735_v29 = vadd.f32 %v731_v22, %v962_v8 }
 0x45b   :  { %740 = vst.msk [vmem:[%s1182_s12 + $0x18] sm:$0xff] %vm103_vm0, %v736_v6 }
 0x45c   :  { %739 = vst.msk [vmem:[%s1182_s12 + $0x10] sm:$0xff] %vm103_vm0, %v735_v29 }

// kernel: sparse_convnextv2_forward.12
= control target key start
LH: loop header
LB: loop body
LE: loop exit
PB: predicated region body
PF: predicated region fallthrough
CT: control target
= control target key end

     0   :  { %s668_s21 = smov 0   ;;  %s723_s0 = inlined_call_operand.vmem [shape: f32[16,32], index: 0, kind: input, shape index: {}]   ;;  %s724_s1 = inlined_call_operand.vmem [shape: f32[16,1], index: 1, kind: input, shape index: {}]   ;;  %s725_s2 = inlined_call_operand.vmem [shape: f32[1,16], index: 2, kind: input, shape index: {}]   ;;  %s726_s3 = inlined_call_operand.vmem [shape: f32[1,16], index: 3, kind: input, shape index: {}]   ;;  %s727_s4 = inlined_call_operand.vmem [shape: f32[32,32], index: 4, kind: input, shape index: {}]   ;;  %s728_s5 = inlined_call_operand.vmem [shape: f32[1,32], index: 5, kind: input, shape index: {}]   ;;  %s729_s6 = inlined_call_operand.vmem [shape: f32[16,32], index: 6, kind: output, shape index: {}]  }
   0x1 LB: > { %s559_s22 = sadd.s32 4294967295, %s625_s21   ;;  %p563_p0 = scmp.ge.s32.totalorder %s625_s21, 1  ;;  %s625_s21 = sphi %s668_s21, %s16_s21  }
   0x2   : > { %p220_p1 = scmp.lt.s32.totalorder %s625_s21, 3 }
   0x4   : > { %p221_p2 = pnand %p563_p0, %p220_p1 }
   0x5   : > { %p252_p3 = scmp.lt.s32.totalorder (!%p221_p2), %s559_s22, 1  ;;  %s627_s27 = smov (!%p221_p2), 112   ;;  %vm271_vm0 = vcmask (!%p221_p2), 130048   ;;  %v568_v8 = vld [vmem:[%s726_s3] ss:$0 sm:$0xff] (!%p221_p2)  ;;  %v268_v18 = vld [vmem:[%s727_s4 + $0x8] sm:$0xff] (!%p221_p2) }
   0x6   : > { %224 = sbr.rel (%p221_p2) target bundleno = 894 (0x37e), region = 44  ;;  %s628_s30 = smov (!%p221_p2), 16   ;;  %v567_v11 = vld [vmem:[%s725_s2] ss:$0 sm:$0xff] (!%p221_p2)  ;;  %v629_v19 = vmov (!%p221_p2), 0.0|0.0   ;;  %vm630_vm1 = vmmov (!%p221_p2), 0  }
   0x7   : > { %v267_v17 = vld [vmem:[%s727_s4] sm:$0xff] (!%p221_p2)  ;;  %597 = vmatprep.subr.bf16.mxu1 (!%p221_p2), %v629_v19  ;;  %v631_v21 = vmov (!%p221_p2), 0.0   ;;  %594 = vmatprep.subr.bf16.mxu0 (!%p221_p2), %v629_v19  ;;  %v269_v22 = vld [vmem:[%s727_s4 + $0x10] sm:$0xff] (!%p221_p2)  ;;  %v270_v23 = vld [vmem:[%s727_s4 + $0x18] sm:$0xff] (!%p221_p2)  ;;  %v632_v28 = vmov (!%p221_p2), 0   ;;  %vm492_vm2 = vcmask (!%p221_p2), 261120  }
   0x8   : > { %v598_v20 = vpack.c.bf16 (!%p221_p2), %v268_v18, %v267_v17  ;;  %591 = vmatprep.mubr.msk.f32.mxu1 (!%p221_p2), %vm630_vm1, %v631_v21  ;;  %584 = vmatprep.mubr.msk.f32.mxu0 (!%p221_p2), %vm630_vm1, %v631_v21  ;;  %v595_v24 = vpack.c.bf16 (!%p221_p2), %v270_v23, %v269_v22  ;;  %v571_v47 = vld [vmem:[%s728_s5] ss:$0 sm:$0xff] (!%p221_p2) }
   0x9   : > { %614 = vset.pattern.permute.xlu0 (!%p221_p2), %v632_v28 }
   0xa   : > { %599 = vmatpush3.bf16.msra.mxu1 (!%p221_p2), %v598_v20  ;;  %596 = vmatpush3.bf16.msra.mxu0 (!%p221_p2), %v595_v24 }
   0xd   : > { %s731_s22 = smov (!%p252_p3, %s559_s22), 1 }
   0xe   : > { %s676_s23 = sshll.u32 %s731_s22, 3 }
   0xf   : > { %s255_s26 = scalar_lea.vmem %s723_s0, %s676_s23  ;;  %s259_s19 = scalar_lea.vmem %s724_s1, %s676_s23 }
  0x10   : > { %v264_v0 = vld [vmem:[%s255_s26] sm:$0xff]  ;;  %s263_s26 = scalar_lea.vmem %s729_s6, %s676_s23 }
  0x11   : > { %301 = vrot.lane.b32.xlu0 %v264_v0, %s627_s27  ;;  %v272_v7 = vsel %vm271_vm0, %v264_v0, 0.0  ;;  %v485_v35 = vld [vmem:[%s259_s19] sm:$0xff] }
  0x83   : > { %v302_v1 = vpop.permute.xlu0 %301 }
  0x84   : > { %v304_v2 = vsel %vm271_vm0, %v302_v1, 0.0 }
  0x85   : > { %305 = vadd.xlane.f32.xlu0 %v304_v2 }
 0x112   : > { %v306_v3 = vpop.xlane.xlu0 %305 }
 0x113   : > { %v307_v4 = vmul.f32 0.0625, %v306_v3 }
 0x115   : > { %v308_v5 = vsub.f32 %v264_v0, %v307_v4 }
 0x117   : > { %v309_v6 = vmul.f32 %v308_v5, %v308_v5 }
 0x119   : > { %311 = vrot.lane.b32.xlu1 %v309_v6, %s627_s27 }
 0x13d   : > { %273 = vadd.xlane.f32.xlu1 %v272_v7 }
 0x14e   : > { %325 = vrot.lane.b32.xlu1 %v568_v8, %s628_s30 }
 0x18b   : > { %v312_v9 = vpop.permute.xlu1 %311 }
 0x18c   : > { %v314_v10 = vsel %vm271_vm0, %v312_v9, 0.0 }
 0x18d   : > { %315 = vadd.xlane.f32.xlu0 %v314_v10 }
 0x1a3   : > { %321 = vrot.lane.b32.xlu0 %v567_v11, %s628_s30 }
 0x1ca   : > { %v274_v12 = vpop.xlane.xlu1 %273 }
 0x1cb   : > { %v276_v13 = vmul.f32 0.0625, %v274_v12 }
 0x1cd   : > { %v277_v14 = vsub.f32 %v264_v0, %v276_v13 }
 0x1ce   : > { %v326_v32 = vpop.permute.xlu1 %325 }
 0x1cf   : > { %v278_v15 = vmul.f32 %v277_v14, %v277_v14 }
 0x1d1   : > { %v279_v16 = vsel %vm271_vm0, %v278_v15, 0.0 }
 0x1d2   : > { %280 = vadd.xlane.f32.xlu1 %v279_v16 }
 0x21a   : > { %v316_v25 = vpop.xlane.xlu0 %315 }
 0x21b   : > { %v317_v26 = vmul.f32 0.0625, %v316_v25 }
 0x21d   : > { %v318_v27 = vadd.f32 1e-06, %v317_v26 }
 0x21e   : > { %v322_v30 = vpop.permute.xlu0 %321 }
 0x21f   : > { %615 = vrsqrt.f32 %v318_v27 }
 0x229   : > { %v616_v29 = vpop.eup %615 }
 0x22a   : > { %v320_v31 = vmul.f32 %v616_v29, %v308_v5 }
 0x22c   : > { %v324_v33 = vmul.f32 %v322_v30, %v320_v31 }
 0x22e   : > { %v328_v34 = vadd.f32 %v326_v32, %v324_v33 }
 0x230   : > { %330 = vrot.lane.b32.xlu0 %v328_v34, %s627_s27 }
 0x234   : > { %488 = vperm.xlu0 %614, %v485_v35  }
 0x25f   : > { %v281_v36 = vpop.xlane.xlu1 %280 }
 0x260   : > { %v282_v37 = vmul.f32 0.0625, %v281_v36 }
 0x262   : > { %v283_v38 = vadd.f32 1e-06, %v282_v37 }
 0x264   : > { %617 = vrsqrt.f32 %v283_v38 }
 0x26e   : > { %v618_v39 = vpop.eup %617 }
 0x26f   : > { %v285_v40 = vmul.f32 %v618_v39, %v277_v14 }
 0x271   : > { %v292_v41 = vmul.f32 %v567_v11, %v285_v40 }
 0x273   : > { %v299_v42 = vadd.f32 %v568_v8, %v292_v41 }
 0x275   : > { %592 = vmatmul.mubr.msk.f32.vlgmr.msra.gmra.mrb[0].mxu1 %vm271_vm0, %v299_v42 }
 0x2a2   : > { %v331_v43 = vpop.permute.xlu0 %330 }
 0x2a3   : > { %585 = vmatmul.mubr.msk.f32.vlgmr.msra.gmra.mrb[0].mxu0 %vm271_vm0, %v331_v43 }
 0x2b3   : > { %v489_v50 = vpop.permute.xlu0 %488 }
 0x348   : > { %v473_v44 = vpop.f32.mrb[0].mxu1 }
 0x349   : > { %v593_v45 = vpop.f32.mrb[1].mxu1 }
 0x376   : > { %v400_v46 = vpop.f32.mrb[0].mxu0 }
 0x377   : > { %v474_v48 = vadd.f32 %v473_v44, %v400_v46  ;;  %v586_v49 = vpop.f32.mrb[1].mxu0 }
 0x379   : > { %v484_v51 = vadd.f32 %v571_v47, %v474_v48 }
 0x37b   : > { %v491_v52 = vmul.f32 %v489_v50, %v484_v51 }
 0x37d   : > { %493 = vst.msk [vmem:[%s263_s26] sm:$0xff] %vm492_vm2, %v491_v52 }
 0x37e PF: > { %s16_s21 = sadd.s32 1, %s625_s21  }
 0x37f   : > { %p13_p4 = scmp.ge.s32.totalorder %s16_s21, 4  }
 0x381   :  { %15 = sbr.rel (!%p13_p4) target bundleno = 1 (0x1), region = 77 }

// kernel: sparse_convnextv2_forward.13
= control target key start
LH: loop header
LB: loop body
LE: loop exit
PB: predicated region body
PF: predicated region fallthrough
CT: control target
= control target key end

     0   :  { %vm73_vm0 = vcmask 261120   ;;  %v663_v0 = vmov 0   ;;  %v664_v3 = vmov 0.0   ;;  %v46_v6 = vlaneseq  ;;  %s919_s1 = inlined_call_operand.vmem [shape: f32[16,1], index: 1, kind: input, shape index: {}]   ;;  %s920_s0 = inlined_call_operand.vmem [shape: f32[16,32], index: 0, kind: input, shape index: {}]   ;;  %s921_s2 = inlined_call_operand.vmem [shape: f32[7,32], index: 2, kind: input, shape index: {}]   ;;  %s922_s3 = inlined_call_operand.vmem [shape: f32[1,32], index: 3, kind: input, shape index: {}]   ;;  %s923_s6 = inlined_call_operand.vmem [shape: f32[32,128], index: 6, kind: input, shape index: {}]   ;;  %s924_s4 = inlined_call_operand.vmem [shape: f32[1,32], index: 4, kind: input, shape index: {}]   ;;  %s925_s5 = inlined_call_operand.vmem [shape: f32[1,32], index: 5, kind: input, shape index: {}]   ;;  %s926_s10 = inlined_call_operand.vmem [shape: f32[128,32], index: 10, kind: input, shape index: {}]   ;;  %s927_s7 = inlined_call_operand.vmem [shape: f32[1,128], index: 7, kind: input, shape index: {}]   ;;  %s928_s8 = inlined_call_operand.vmem [shape: f32[1,128], index: 8, kind: input, shape index: {}]   ;;  %s929_s9 = inlined_call_operand.vmem [shape: f32[1,128], index: 9, kind: input, shape index: {}]   ;;  %s930_s11 = inlined_call_operand.vmem [shape: f32[1,32], index: 11, kind: input, shape index: {}]   ;;  %s931_s12 = inlined_call_operand.vmem [shape: f32[16,32], index: 12, kind: output, shape index: {}]  }
   0x1   :  { %650 = vset.pattern.permute.xlu0 %v663_v0  ;;  %v43_v1 = vld [vmem:[%s919_s1] sm:$0xff]  ;;  %74 = vst.msk [vmem:[#allocation2] sm:$0xff] %vm73_vm0, %v664_v3  ;;  %75 = vst.msk [vmem:[#allocation2 + $0x18] sm:$0xff] %vm73_vm0, %v664_v3  ;;  %v745_v4 = vld [vmem:[%s920_s0 + $0x8] sm:$0xff] }
   0x2   :  { %v736_v2 = vld [vmem:[%s920_s0] sm:$0xff]  ;;  %203 = vperm.xlu0 %650, %v43_v1   ;;  %v44_v5 = vld [vmem:[%s919_s1 + $0x8] sm:$0xff]  ;;  %77 = vst.msk [vmem:[#allocation2 + $0x10] sm:$0xff] %vm73_vm0, %v745_v4  ;;  %v754_v7 = vshrl.u32 %v46_v6, 7 }
   0x3   :  { %76 = vst.msk [vmem:[#allocation2 + $0x8] sm:$0xff] %vm73_vm0, %v736_v2  ;;  %v45_v11 = vld [vmem:[%s921_s2] sm:$0x7f] }
   0x4   :  { %v757_v8 = vand.u32 7, %v754_v7  ;;  %v48_v9 = vadd.s32 8, %v754_v7  ;;  %v94_v10 = vsub.s32 0, %v754_v7  ;;  %v80_v13 = vsub.s32 3, %v754_v7 }
   0x5   :  { %v112_v14 = vsub.s32 1, %v754_v7  ;;  %v130_v19 = vsub.s32 2, %v754_v7  ;;  %v148_v24 = vsub.s32 4, %v754_v7  ;;  %v166_v35 = vsub.s32 5, %v754_v7 }
   0x6   :  { %208 = vperm.xlu0 %650, %v44_v5   ;;  %vm86_vm1 = vcmp.ge.s32.totalorder %v757_v8, 3  ;;  %v765_v12 = vand.u32 7, %v48_v9  ;;  %v95_v15 = vrot.slane %v45_v11, %v94_v10  ;;  %vm104_vm2 = vcmp.ge.s32.totalorder %v757_v8, 2 }
   0x7   :  { %v517_v16 = vsel %vm86_vm1, 1.0, %v664_v3  ;;  %v81_v17 = vrot.slane %v45_v11, %v80_v13  ;;  %v113_v18 = vrot.slane %v45_v11, %v112_v14  ;;  %v519_v21 = vsel %vm104_vm2, 1.0, %v664_v3 }
   0x8   :  { %vm87_vm3 = vcmp.ge.s32.totalorder %v765_v12, 3  ;;  %v96_v20 = vmul.f32 %v517_v16, %v95_v15  ;;  %vm122_vm4 = vcmp.ge.s32.totalorder %v757_v8, 1  ;;  %vm105_vm5 = vcmp.ge.s32.totalorder %v765_v12, 2 }
   0x9   :  { %v518_v23 = vsel %vm87_vm3, 1.0, %v664_v3  ;;  %v82_v25 = vmul.f32 %v81_v17, %v736_v2  ;;  %v114_v26 = vmul.f32 %v519_v21, %v113_v18  ;;  %v131_v27 = vrot.slane %v45_v11, %v130_v19  ;;  %v139_v6 = vld [vmem:[#allocation2 + $0x11] sm:$0xff] }
   0xa   :  { %v84_v22 = vld [vmem:[#allocation2 + $0x5] sm:$0xff]  ;;  %v521_v30 = vsel %vm122_vm4, 1.0, %v664_v3  ;;  %vm140_vm6 = vcmp.lt.s32.totalorder %v757_v8, 7  ;;  %v97_v31 = vmul.f32 %v518_v23, %v95_v15  ;;  %v85_v32 = vld [vmem:[#allocation2 + $0xd] sm:$0xff]  ;;  %v520_v33 = vsel %vm105_vm5, 1.0, %v664_v3 }
   0xb   :  { %v98_v28 = vmul.f32 %v96_v20, %v84_v22  ;;  %v102_v29 = vld [vmem:[#allocation2 + $0x6] sm:$0xff]  ;;  %v149_v34 = vrot.slane %v45_v11, %v148_v24  ;;  %vm123_vm7 = vcmp.ge.s32.totalorder %v765_v12, 1  ;;  %v132_v37 = vmul.f32 %v521_v30, %v131_v27  ;;  %v103_v44 = vld [vmem:[#allocation2 + $0xe] sm:$0xff] }
   0xc   :  { %v116_v36 = vmul.f32 %v114_v26, %v102_v29  ;;  %v523_v38 = vsel %vm140_vm6, 1.0, %v664_v3  ;;  %vm158_vm8 = vcmp.lt.s32.totalorder %v757_v8, 6  ;;  %v120_v40 = vld [vmem:[#allocation2 + $0x7] sm:$0xff]  ;;  %v83_v41 = vmul.f32 %v81_v17, %v745_v4  ;;  %v121_v56 = vld [vmem:[#allocation2 + $0xf] sm:$0xff] }
   0xd   :  { %v100_v39 = vadd.f32 %v98_v28, %v82_v25  ;;  %v99_v42 = vmul.f32 %v97_v31, %v85_v32  ;;  %v115_v43 = vmul.f32 %v520_v33, %v113_v18  ;;  %v522_v45 = vsel %vm123_vm7, 1.0, %v664_v3  ;;  %v138_v52 = vld [vmem:[#allocation2 + $0x9] sm:$0xff]  ;;  %v157_v17 = vld [vmem:[#allocation2 + $0x12] sm:$0xff] }
   0xe   :  { %v525_v46 = vsel %vm158_vm8, 1.0, %v664_v3  ;;  %v184_v47 = vsub.s32 6, %v754_v7  ;;  %vm141_vm9 = vcmp.lt.s32.totalorder %v765_v12, 7  ;;  %v134_v48 = vmul.f32 %v132_v37, %v120_v40  ;;  %v156_v63 = vld [vmem:[#allocation2 + $0xa] sm:$0xff]  ;;  %v175_v23 = vld [vmem:[#allocation2 + $0x13] sm:$0xff] }
   0xf   :  { %v150_v49 = vmul.f32 %v523_v38, %v149_v34  ;;  %v167_v50 = vrot.slane %v45_v11, %v166_v35  ;;  %vm176_vm10 = vcmp.lt.s32.totalorder %v757_v8, 5  ;;  %v118_v51 = vadd.f32 %v116_v36, %v100_v39  ;;  %v174_v13 = vld [vmem:[#allocation2 + $0xb] sm:$0xff] }
  0x10   :  { %v101_v53 = vadd.f32 %v99_v42, %v83_v41  ;;  %v117_v54 = vmul.f32 %v115_v43, %v103_v44  ;;  %v133_v55 = vmul.f32 %v522_v45, %v131_v27  ;;  %v524_v57 = vsel %vm141_vm9, 1.0, %v664_v3  ;;  %v260_v45 = vld [vmem:[%s923_s6] sm:$0xff] }
  0x11   :  { %vm159_vm11 = vcmp.lt.s32.totalorder %v765_v12, 6  ;;  %v152_v58 = vmul.f32 %v150_v49, %v138_v52  ;;  %v168_v59 = vmul.f32 %v525_v46, %v167_v50  ;;  %v527_v60 = vsel %vm176_vm10, 1.0, %v664_v3  ;;  %v261_v46 = vld [vmem:[%s923_s6 + $0x8] sm:$0xff]  ;;  %v263_v49 = vld [vmem:[%s923_s6 + $0x18] sm:$0xff] }
  0x12   :  { %v185_v61 = vrot.slane %v45_v11, %v184_v47  ;;  %v136_v62 = vadd.f32 %v134_v48, %v118_v51  ;;  %v119_v0 = vadd.f32 %v117_v54, %v101_v53  ;;  %v135_v1 = vmul.f32 %v133_v55, %v121_v56  ;;  %v262_v47 = vld [vmem:[%s923_s6 + $0x10] sm:$0xff] }
  0x13   :  { %v151_v5 = vmul.f32 %v524_v57, %v149_v34  ;;  %v526_v7 = vsel %vm159_vm11, 1.0, %v664_v3  ;;  %vm177_vm12 = vcmp.lt.s32.totalorder %v765_v12, 5  ;;  %v170_v8 = vmul.f32 %v168_v59, %v156_v63  ;;  %v529_v12 = vld [vmem:[%s922_s3] ss:$0 sm:$0xff] }
  0x14   :  { %v186_v9 = vmul.f32 %v527_v60, %v185_v61  ;;  %v154_v10 = vadd.f32 %v152_v58, %v136_v62  ;;  %v137_v14 = vadd.f32 %v135_v1, %v119_v0  ;;  %v169_v16 = vmul.f32 %v526_v7, %v167_v50  ;;  %v530_v58 = vld [vmem:[%s924_s4] ss:$0 sm:$0xff] }
  0x15   :  { %v153_v15 = vmul.f32 %v151_v5, %v139_v6  ;;  %v528_v11 = vsel %vm177_vm12, 1.0, %v664_v3  ;;  %v608_v48 = vpack.c.bf16 %v261_v46, %v260_v45  ;;  %v612_v50 = vpack.c.bf16 %v263_v49, %v262_v47  ;;  %v531_v60 = vld [vmem:[%s925_s5] ss:$0 sm:$0xff]  ;;  %v414_v47 = vld [vmem:[%s926_s10 + $0x28] sm:$0xff]  ;;  %v415_v49 = vld [vmem:[%s926_s10 + $0x30] sm:$0xff] }
  0x16   :  { %v188_v18 = vmul.f32 %v186_v9, %v174_v13  ;;  %v172_v19 = vadd.f32 %v170_v8, %v154_v10  ;;  %v171_v21 = vmul.f32 %v169_v16, %v157_v17  ;;  %v187_v22 = vmul.f32 %v528_v11, %v185_v61  ;;  %v409_v8 = vld [vmem:[%s926_s10] sm:$0xff]  ;;  %v410_v9 = vld [vmem:[%s926_s10 + $0x8] sm:$0xff]  ;;  %v411_v10 = vld [vmem:[%s926_s10 + $0x10] sm:$0xff] }
  0x17   :  { %v155_v20 = vadd.f32 %v153_v15, %v137_v14  ;;  %609 = vmatprep.subr.bf16.mxu0 %v608_v48  ;;  %v616_v13 = vpack.c.bf16 %v410_v9, %v409_v8  ;;  %v412_v14 = vld [vmem:[%s926_s10 + $0x18] sm:$0xff]  ;;  %v532_v16 = vld [vmem:[%s927_s7] ss:$0 sm:$0xff] }
  0x18   :  { %v190_v24 = vadd.f32 %v188_v18, %v172_v19  ;;  %v189_v26 = vmul.f32 %v187_v22, %v175_v23  ;;  %611 = vmatpush3.bf16.msra.mxu0 %v608_v48  ;;  %v620_v15 = vpack.c.bf16 %v412_v14, %v411_v10  ;;  %v413_v46 = vld [vmem:[%s926_s10 + $0x20] sm:$0xff] }
  0x19   :  { %v173_v25 = vadd.f32 %v171_v21, %v155_v20  ;;  %613 = vmatprep.subr.bf16.mxu0 %v612_v50  ;;  %617 = vmatprep.subr.bf16.mxu1 %v616_v13  ;;  %v624_v48 = vpack.c.bf16 %v414_v47, %v413_v46  ;;  %v535_v8 = vld [vmem:[%s928_s8] ss:$0 sm:$0xff] }
  0x1a   :  { %v199_v27 = vadd.f32 %v529_v12, %v190_v24  ;;  %619 = vmatpush3.bf16.msra.mxu1 %v616_v13  ;;  %v536_v13 = vld [vmem:[%s929_s9] ss:$0 sm:$0xff] }
  0x1b   :  { %v191_v28 = vadd.f32 %v189_v26, %v173_v25  ;;  %621 = vmatprep.subr.bf16.mxu1 %v620_v15 }
  0x1c   :  { %615 = vmatpush3.bf16.msra.mxu0 %v612_v50  ;;  %v416_v50 = vld [vmem:[%s926_s10 + $0x38] sm:$0xff] }
  0x1d   :  { %v200_v3 = vadd.f32 %v529_v12, %v191_v28 }
  0x1e   :  { %623 = vmatpush3.bf16.msra.mxu1 %v620_v15 }
  0x1f   :  { %625 = vmatprep.subr.bf16.mxu1 %v624_v48 }
  0x22   :  { %627 = vmatpush3.bf16.msra.mxu1 %v624_v48 }
  0x81   :  { %v801_v29 = vpop.permute.xlu0 %203 }
  0x82   :  { %v211_v30 = vmul.f32 %v801_v29, %v199_v27 }
  0x84   :  { %v215_v31 = vsel %vm73_vm0, %v211_v30, 0.0 }
  0x85   :  { %v805_v32 = vpop.permute.xlu0 %208  ;;  %216 = vadd.xlane.f32.xlu1 %v215_v31 }
  0x86   :  { %v212_v33 = vmul.f32 %v805_v32, %v200_v3 }
  0x88   :  { %v218_v34 = vsel %vm73_vm0, %v212_v33, 0.0 }
  0x89   :  { %219 = vadd.xlane.f32.xlu1 %v218_v34 }
 0x112   :  { %v217_v35 = vpop.xlane.xlu1 %216 }
 0x113   :  { %v222_v36 = vmul.f32 0.03125, %v217_v35 }
 0x115   :  { %v224_v37 = vsub.f32 %v211_v30, %v222_v36 }
 0x116   :  { %v220_v38 = vpop.xlane.xlu1 %219 }
 0x117   :  { %v223_v39 = vmul.f32 0.03125, %v220_v38  ;;  %v226_v40 = vmul.f32 %v224_v37, %v224_v37 }
 0x119   :  { %v225_v41 = vsub.f32 %v212_v33, %v223_v39  ;;  %v228_v42 = vsel %vm73_vm0, %v226_v40, 0.0 }
 0x11a   :  { %229 = vadd.xlane.f32.xlu0 %v228_v42 }
 0x11b   :  { %v227_v43 = vmul.f32 %v225_v41, %v225_v41 }
 0x11d   :  { %v231_v44 = vsel %vm73_vm0, %v227_v43, 0.0 }
 0x11e   :  { %232 = vadd.xlane.f32.xlu1 %v231_v44 }
 0x1a7   :  { %v230_v51 = vpop.xlane.xlu0 %229 }
 0x1a8   :  { %v234_v52 = vmul.f32 0.03125, %v230_v51  ;;  %v628_v51 = vpack.c.bf16 %v416_v50, %v415_v49 }
 0x1aa   :  { %v236_v53 = vadd.f32 1e-06, %v234_v52  ;;  %v417_v52 = vld [vmem:[%s926_s10 + $0x40] sm:$0xff]  ;;  %629 = vmatprep.subr.bf16.mxu1 %v628_v51 }
 0x1ab   :  { %v233_v54 = vpop.xlane.xlu1 %232  ;;  %631 = vmatpush3.bf16.msra.mxu1 %v628_v51 }
 0x1ac   :  { %651 = vrsqrt.f32 %v236_v53  ;;  %v235_v55 = vmul.f32 0.03125, %v233_v54  ;;  %v418_v53 = vld [vmem:[%s926_s10 + $0x48] sm:$0xff] }
 0x1ad   :  { %v632_v54 = vpack.c.bf16 %v418_v53, %v417_v52 }
 0x1ae   :  { %v237_v56 = vadd.f32 1e-06, %v235_v55  ;;  %v419_v55 = vld [vmem:[%s926_s10 + $0x50] sm:$0xff] }
 0x1af   :  { %633 = vmatprep.subr.bf16.mxu1 %v632_v54 }
 0x1b0   :  { %653 = vrsqrt.f32 %v237_v56  ;;  %v420_v56 = vld [vmem:[%s926_s10 + $0x58] sm:$0xff]  ;;  %635 = vmatpush3.bf16.msra.mxu1 %v632_v54 }
 0x1b6   :  { %v652_v57 = vpop.eup %651 }
 0x1b7   :  { %v240_v59 = vmul.f32 %v652_v57, %v224_v37  ;;  %v636_v57 = vpack.c.bf16 %v420_v56, %v419_v55 }
 0x1b9   :  { %v248_v61 = vmul.f32 %v530_v58, %v240_v59  ;;  %v422_v59 = vld [vmem:[%s926_s10 + $0x68] sm:$0xff]  ;;  %637 = vmatprep.subr.bf16.mxu1 %v636_v57 }
 0x1ba   :  { %v654_v62 = vpop.eup %653  ;;  %639 = vmatpush3.bf16.msra.mxu1 %v636_v57 }
 0x1bb   :  { %v241_v63 = vmul.f32 %v654_v62, %v225_v41  ;;  %v256_v0 = vadd.f32 %v531_v60, %v248_v61  ;;  %v423_v61 = vld [vmem:[%s926_s10 + $0x70] sm:$0xff]  ;;  %v424_v62 = vld [vmem:[%s926_s10 + $0x78] sm:$0xff] }
 0x1bd   :  { %v249_v1 = vmul.f32 %v530_v58, %v241_v63  ;;  %v258_v5 = vmul.f32 %v256_v0, %v801_v29  ;;  %v421_v58 = vld [vmem:[%s926_s10 + $0x60] sm:$0xff]  ;;  %v644_v63 = vpack.c.bf16 %v424_v62, %v423_v61 }
 0x1bf   :  { %v257_v6 = vadd.f32 %v531_v60, %v249_v1  ;;  %570 = vmatprep.mubr.msk.f32.mxu0 %vm73_vm0, %v258_v5  ;;  %v640_v60 = vpack.c.bf16 %v422_v59, %v421_v58 }
 0x1c1   :  { %v259_v7 = vmul.f32 %v257_v6, %v805_v32  ;;  %641 = vmatprep.subr.bf16.mxu1 %v640_v60 }
 0x1c2   :  { %643 = vmatpush3.bf16.msra.mxu1 %v640_v60 }
 0x1c3   :  { %571 = vmatmul.mubr.msk.f32.vlgmr.msra.gmra.mrb[0].mxu0 %vm73_vm0, %v259_v7  ;;  %645 = vmatprep.subr.bf16.mxu1 %v644_v63 }
 0x1c6   :  { %647 = vmatpush3.bf16.msra.mxu1 %v644_v63 }
 0x296   :  { %v572_v17 = vpop.f32.mrb[0].mxu0 }
 0x297   :  { %v349_v11 = vadd.f32 %v572_v17, %v532_v16  ;;  %v343_v18 = vpop.f32.mrb[1].mxu0 }
 0x298   :  { %v344_v19 = vadd.f32 %v532_v16, %v343_v18 }
 0x299   :  { %v355_v20 = vmul.f32 0.70710677, %v349_v11  ;;  %v353_v24 = vmul.f32 0.5, %v349_v11 }
 0x29a   :  { %v354_v21 = vmul.f32 0.70710677, %v344_v19  ;;  %v352_v26 = vmul.f32 0.5, %v344_v19  ;;  %v537_v19 = vld [vmem:[%s930_s11] ss:$0 sm:$0xff] }
 0x29b   :  { %655 = verf.f32 %v355_v20 }
 0x29c   :  { %657 = verf.f32 %v354_v21 }
 0x2a5   :  { %v656_v22 = vpop.eup %655 }
 0x2a6   :  { %v658_v23 = vpop.eup %657  ;;  %v359_v25 = vadd.f32 1.0, %v656_v22 }
 0x2a7   :  { %v358_v12 = vadd.f32 1.0, %v658_v23 }
 0x2a8   :  { %v361_v27 = vmul.f32 %v359_v25, %v353_v24 }
 0x2a9   :  { %v360_v28 = vmul.f32 %v358_v12, %v352_v26 }
 0x2aa   :  { %v849_v30 = vmul.f32 %v361_v27, %v805_v32 }
 0x2ab   :  { %v852_v3 = vmul.f32 %v360_v28, %v801_v29 }
 0x2ac   :  { %v365_v31 = vmul.f32 %v849_v30, %v849_v30 }
 0x2ad   :  { %v364_v33 = vmul.f32 %v852_v3, %v852_v3 }
 0x2af   :  { %v366_v34 = vadd.f32 %v365_v31, %v364_v33 }
 0x2b1   :  { %v367_v35 = vrot.slane %v366_v34, 4 }
 0x2b3   :  { %v368_v36 = vadd.f32 %v367_v35, %v366_v34 }
 0x2b5   :  { %v369_v37 = vrot.slane %v368_v36, 2 }
 0x2b7   :  { %v370_v38 = vadd.f32 %v369_v37, %v368_v36 }
 0x2b9   :  { %v371_v39 = vrot.slane %v370_v38, 1 }
 0x2bb   :  { %v372_v40 = vadd.f32 %v371_v39, %v370_v38 }
 0x2bd   :  { %659 = vrsqrt.f32 %v372_v40  ;;  %vm375_vm13 = vcmp.eq.f32.partialorder %v372_v40, inf  ;;  %v378_v43 = vand.u32 2147483648, %v372_v40  ;;  %vm377_vm14 = vcmp.eq.f32.partialorder %v372_v40, 0.0 }
 0x2c7   :  { %v660_v41 = vpop.eup %659 }
 0x2c8   :  { %v374_v42 = vmul.f32 %v660_v41, %v372_v40 }
 0x2ca   :  { %v376_v44 = vsel %vm375_vm13, %v372_v40, %v374_v42 }
 0x2cb   :  { %v379_v45 = vsel %vm377_vm14, %v378_v43, %v376_v44 }
 0x2cc   :  { %380 = vadd.xlane.f32.xlu1 %v379_v45 }
 0x359   :  { %v381_v0 = vpop.xlane.xlu1 %380 }
 0x35a   :  { %v383_v1 = vmul.f32 0.0078125, %v381_v0 }
 0x35c   :  { %v384_v5 = vadd.f32 1e-06, %v383_v1 }
 0x35e   :  { %661 = vrcp.f32 %v384_v5 }
 0x368   :  { %v662_v6 = vpop.eup %661 }
 0x369   :  { %v386_v7 = vmul.f32 %v662_v6, %v379_v45 }
 0x36b   :  { %v388_v9 = vmul.f32 %v386_v7, %v852_v3  ;;  %v389_v10 = vmul.f32 %v386_v7, %v849_v30 }
 0x36d   :  { %v396_v14 = vmul.f32 %v535_v8, %v388_v9  ;;  %v397_v15 = vmul.f32 %v535_v8, %v389_v10 }
 0x36f   :  { %v405_v16 = vadd.f32 %v536_v13, %v396_v14  ;;  %v406_v17 = vadd.f32 %v536_v13, %v397_v15 }
 0x371   :  { %v407_v11 = vadd.f32 %v405_v16, %v852_v3  ;;  %v408_v18 = vadd.f32 %v406_v17, %v849_v30 }
 0x373   :  { %605 = vmatprep.mubr.f32.mxu1 %v407_v11 }
 0x374   :  { %606 = vmatmul.mubr.f32.vlgmr.msra.gmra.mrb[0].mxu1 %v408_v18 }
 0x447   :  { %v607_v20 = vpop.f32.mrb[0].mxu1 }
 0x448   :  { %v504_v21 = vadd.f32 %v607_v20, %v537_v19  ;;  %v498_v22 = vpop.f32.mrb[1].mxu1 }
 0x449   :  { %v499_v23 = vadd.f32 %v537_v19, %v498_v22 }
 0x44a   :  { %v508_v24 = vmul.f32 %v504_v21, %v805_v32 }
 0x44b   :  { %v507_v25 = vmul.f32 %v499_v23, %v801_v29 }
 0x44c   :  { %v510_v26 = vadd.f32 %v508_v24, %v745_v4 }
 0x44d   :  { %v509_v12 = vadd.f32 %v507_v25, %v736_v2 }
 0x44e   :  { %512 = vst.msk [vmem:[%s931_s12 + $0x8] sm:$0xff] %vm73_vm0, %v510_v26 }
 0x44f   :  { %511 = vst.msk [vmem:[%s931_s12] sm:$0xff] %vm73_vm0, %v509_v12 }

// kernel: sparse_convnextv2_forward.14
= control target key start
LH: loop header
LB: loop body
LE: loop exit
PB: predicated region body
PF: predicated region fallthrough
CT: control target
= control target key end

     0   :  { %s321_s23 = smov 96   ;;  %vm34_vm0 = vcmask 261120   ;;  %v323_v17 = vmov 0.0|0.0   ;;  %vm324_vm1 = vmmov 0   ;;  %v325_v21 = vmov 0.0   ;;  %s417_s0 = inlined_call_operand.vmem [shape: f32[8,64], index: 0, kind: input, shape index: {}]   ;;  %s418_s3 = inlined_call_operand.vmem [shape: f32[1,32], index: 3, kind: input, shape index: {}]   ;;  %s419_s2 = inlined_call_operand.vmem [shape: f32[1,32], index: 2, kind: input, shape index: {}]   ;;  %s420_s4 = inlined_call_operand.vmem [shape: f32[64,64], index: 4, kind: input, shape index: {}]   ;;  %s421_s1 = inlined_call_operand.vmem [shape: f32[8,1], index: 1, kind: input, shape index: {}]   ;;  %s422_s5 = inlined_call_operand.vmem [shape: f32[1,64], index: 5, kind: input, shape index: {}]   ;;  %s423_s6 = inlined_call_operand.vmem [shape: f32[8,64], index: 6, kind: output, shape index: {}]  }
   0x1   :  { %v23_v0 = vld [vmem:[%s417_s0] sm:$0xff]  ;;  %s322_s0 = smov 32   ;;  %304 = vmatprep.subr.bf16.mxu1 %v323_v17  ;;  %v27_v19 = vld [vmem:[%s420_s4 + $0x8] sm:$0xff]  ;;  %v28_v20 = vld [vmem:[%s420_s4 + $0x10] sm:$0xff]  ;;  %295 = vmatprep.mubr.msk.f32.mxu1 %vm324_vm1, %v325_v21  ;;  %v326_v34 = vmov 0   ;;  %vm255_vm2 = vcmask 523264  }
   0x2   :  { %64 = vrot.lane.b32.xlu0 %v23_v0, %s321_s23  ;;  %v35_v7 = vsel %vm34_vm0, %v23_v0, 0.0  ;;  %v372_v8 = vld [vmem:[%s418_s3] ss:$0 sm:$0xff]  ;;  %v29_v23 = vld [vmem:[%s420_s4 + $0x18] sm:$0xff]  ;;  %298 = vmatprep.subr.bf16.mxu0 %v323_v17  ;;  %v31_v26 = vld [vmem:[%s420_s4 + $0x28] sm:$0xff] }
   0x3   :  { %v261_v11 = vld [vmem:[%s419_s2] ss:$0 sm:$0xff]  ;;  %284 = vmatprep.mubr.msk.f32.mxu0 %vm324_vm1, %v325_v21  ;;  %v308_v24 = vpack.c.bf16 %v29_v23, %v28_v20  ;;  %v32_v27 = vld [vmem:[%s420_s4 + $0x30] sm:$0xff]  ;;  %v33_v29 = vld [vmem:[%s420_s4 + $0x38] sm:$0xff]  ;;  %316 = vset.pattern.permute.xlu0 %v326_v34 }
   0x4   :  { %v26_v18 = vld [vmem:[%s420_s4] sm:$0xff]  ;;  %v302_v30 = vpack.c.bf16 %v33_v29, %v32_v27 }
   0x5   :  { %v305_v22 = vpack.c.bf16 %v27_v19, %v26_v18  ;;  %v30_v25 = vld [vmem:[%s420_s4 + $0x20] sm:$0xff] }
   0x6   :  { %v299_v28 = vpack.c.bf16 %v31_v26, %v30_v25  ;;  %v248_v41 = vld [vmem:[%s421_s1] sm:$0xff] }
   0x7   :  { %306 = vmatpush3.bf16.msra.mxu1 %v305_v22  ;;  %v265_v53 = vld [vmem:[%s422_s5] ss:$0 sm:$0xff] }
   0x8   :  { %307 = vmatprep.subr.bf16.mxu1 %v323_v17  ;;  %300 = vmatpush3.bf16.msra.mxu0 %v299_v28 }
   0x9   :  { %301 = vmatprep.subr.bf16.mxu0 %v323_v17 }
   0xb   :  { %309 = vmatpush3.bf16.msra.mxu1 %v308_v24 }
   0xc   :  { %303 = vmatpush3.bf16.msra.mxu0 %v302_v30 }
  0x74   :  { %v65_v1 = vpop.permute.xlu0 %64 }
  0x75   :  { %v67_v2 = vsel %vm34_vm0, %v65_v1, 0.0 }
  0x76   :  { %68 = vadd.xlane.f32.xlu0 %v67_v2 }
 0x103   :  { %v69_v3 = vpop.xlane.xlu0 %68 }
 0x104   :  { %v70_v4 = vmul.f32 0.03125, %v69_v3 }
 0x106   :  { %v71_v5 = vsub.f32 %v23_v0, %v70_v4 }
 0x108   :  { %v72_v6 = vmul.f32 %v71_v5, %v71_v5 }
 0x10a   :  { %74 = vrot.lane.b32.xlu1 %v72_v6, %s321_s23 }
 0x12e   :  { %36 = vadd.xlane.f32.xlu1 %v35_v7 }
 0x13f   :  { %88 = vrot.lane.b32.xlu1 %v372_v8, %s322_s0 }
 0x17c   :  { %v75_v9 = vpop.permute.xlu1 %74 }
 0x17d   :  { %v77_v10 = vsel %vm34_vm0, %v75_v9, 0.0 }
 0x17e   :  { %78 = vadd.xlane.f32.xlu0 %v77_v10 }
 0x194   :  { %84 = vrot.lane.b32.xlu0 %v261_v11, %s322_s0 }
 0x1bb   :  { %v37_v12 = vpop.xlane.xlu1 %36 }
 0x1bc   :  { %v39_v13 = vmul.f32 0.03125, %v37_v12 }
 0x1be   :  { %v40_v14 = vsub.f32 %v23_v0, %v39_v13 }
 0x1bf   :  { %v89_v38 = vpop.permute.xlu1 %88 }
 0x1c0   :  { %v41_v15 = vmul.f32 %v40_v14, %v40_v14 }
 0x1c2   :  { %v42_v16 = vsel %vm34_vm0, %v41_v15, 0.0 }
 0x1c3   :  { %43 = vadd.xlane.f32.xlu1 %v42_v16 }
 0x20b   :  { %v79_v31 = vpop.xlane.xlu0 %78 }
 0x20c   :  { %v80_v32 = vmul.f32 0.03125, %v79_v31 }
 0x20e   :  { %v81_v33 = vadd.f32 1e-06, %v80_v32 }
 0x20f   :  { %v85_v36 = vpop.permute.xlu0 %84 }
 0x210   :  { %317 = vrsqrt.f32 %v81_v33 }
 0x21a   :  { %v318_v35 = vpop.eup %317 }
 0x21b   :  { %v83_v37 = vmul.f32 %v318_v35, %v71_v5 }
 0x21d   :  { %v87_v39 = vmul.f32 %v85_v36, %v83_v37 }
 0x21f   :  { %v91_v40 = vadd.f32 %v89_v38, %v87_v39 }
 0x221   :  { %93 = vrot.lane.b32.xlu0 %v91_v40, %s321_s23 }
 0x225   :  { %251 = vperm.xlu0 %316, %v248_v41  }
 0x250   :  { %v44_v42 = vpop.xlane.xlu1 %43 }
 0x251   :  { %v45_v43 = vmul.f32 0.03125, %v44_v42 }
 0x253   :  { %v46_v44 = vadd.f32 1e-06, %v45_v43 }
 0x255   :  { %319 = vrsqrt.f32 %v46_v44 }
 0x25f   :  { %v320_v45 = vpop.eup %319 }
 0x260   :  { %v48_v46 = vmul.f32 %v320_v45, %v40_v14 }
 0x262   :  { %v55_v47 = vmul.f32 %v261_v11, %v48_v46 }
 0x264   :  { %v62_v48 = vadd.f32 %v372_v8, %v55_v47 }
 0x266   :  { %296 = vmatmul.mubr.msk.f32.vlgmr.msra.gmra.mrb[0].mxu1 %vm34_vm0, %v62_v48 }
 0x293   :  { %v94_v49 = vpop.permute.xlu0 %93 }
 0x294   :  { %285 = vmatmul.mubr.msk.f32.vlgmr.msra.gmra.mrb[0].mxu0 %vm34_vm0, %v94_v49 }
 0x2a4   :  { %v252_v56 = vpop.permute.xlu0 %251 }
 0x339   :  { %v236_v50 = vpop.f32.mrb[0].mxu1 }
 0x33a   :  { %v297_v51 = vpop.f32.mrb[1].mxu1 }
 0x367   :  { %v163_v52 = vpop.f32.mrb[0].mxu0 }
 0x368   :  { %v237_v54 = vadd.f32 %v236_v50, %v163_v52  ;;  %v286_v55 = vpop.f32.mrb[1].mxu0 }
 0x36a   :  { %v247_v57 = vadd.f32 %v265_v53, %v237_v54 }
 0x36c   :  { %v254_v58 = vmul.f32 %v252_v56, %v247_v57 }
 0x36e   :  { %256 = vst.msk [vmem:[%s423_s6] sm:$0xff] %vm255_vm2, %v254_v58 }

// kernel: sparse_convnextv2_forward.15
= control target key start
LH: loop header
LB: loop body
LE: loop exit
PB: predicated region body
PF: predicated region fallthrough
CT: control target
= control target key end

     0   :  { %vm59_vm0 = vcmask 523264   ;;  %v622_v2 = vmov 0   ;;  %s919_s0 = inlined_call_operand.vmem [shape: f32[8,64], index: 0, kind: input, shape index: {}]   ;;  %s920_s1 = inlined_call_operand.vmem [shape: f32[8,1], index: 1, kind: input, shape index: {}]   ;;  %s921_s2 = inlined_call_operand.vmem [shape: f32[7,64], index: 2, kind: input, shape index: {}]   ;;  %s922_s3 = inlined_call_operand.vmem [shape: f32[1,64], index: 3, kind: input, shape index: {}]   ;;  %s923_s4 = inlined_call_operand.vmem [shape: f32[1,64], index: 4, kind: input, shape index: {}]   ;;  %s924_s5 = inlined_call_operand.vmem [shape: f32[1,64], index: 5, kind: input, shape index: {}]   ;;  %s925_s6 = inlined_call_operand.vmem [shape: f32[64,256], index: 6, kind: input, shape index: {}]   ;;  %s926_s7 = inlined_call_operand.vmem [shape: f32[1,256], index: 7, kind: input, shape index: {}]   ;;  %s927_s8 = inlined_call_operand.vmem [shape: f32[1,256], index: 8, kind: input, shape index: {}]   ;;  %s928_s9 = inlined_call_operand.vmem [shape: f32[1,256], index: 9, kind: input, shape index: {}]   ;;  %s929_s10 = inlined_call_operand.vmem [shape: f32[256,64], index: 10, kind: input, shape index: {}]   ;;  %s930_s11 = inlined_call_operand.vmem [shape: f32[1,64], index: 11, kind: input, shape index: {}]   ;;  %s931_s12 = inlined_call_operand.hbm [shape: f32[8,64], index: 12, kind: output, shape index: {}]  }
   0x1   :  { %v43_v0 = vld [vmem:[%s920_s1] sm:$0xff]  ;;  %585 = vset.pattern.permute.xlu0 %v622_v2 }
   0x2   :  { %v696_v1 = vld [vmem:[%s919_s0] sm:$0xff] }
   0x3   :  { %62 = vst.msk [vmem:[#allocation2 + $0x8] sm:$0xff] %vm59_vm0, %v696_v1 }
   0x4   :  { %17 = vsyncpa [#allocation4], 0  ;;  %144 = vperm.xlu0 %585, %v43_v0   ;;  %v623_v3 = vmov 0.0   ;;  %v45_v4 = vlaneseq  ;;  %v44_v8 = vld [vmem:[%s921_s2] sm:$0x7f]  ;;  %v180_v63 = vld [vmem:[%s925_s6 + $0x8] sm:$0xff] }
   0x5   :  { %60 = vst.msk [vmem:[#allocation2] sm:$0xff] %vm59_vm0, %v623_v3  ;;  %61 = vst.msk [vmem:[#allocation2 + $0x10] sm:$0xff] %vm59_vm0, %v623_v3  ;;  %274 = vmatprep.mubr.f32.mxu0 %v623_v3  ;;  %v494_v53 = vld [vmem:[%s922_s3] ss:$0 sm:$0xff]  ;;  %v182_v0 = vld [vmem:[%s925_s6 + $0x18] sm:$0xff] }
   0x6   :  { %v46_v5 = vshrl.u32 %v45_v4, 7  ;;  %v534_v2 = vpack.c.bf16 %v182_v0, %v180_v63  ;;  %v181_v4 = vld [vmem:[%s925_s6 + $0x10] sm:$0xff] }
   0x8   :  { %v51_v6 = vand.u32 3, %v46_v5  ;;  %v702_v7 = vsub.s32 0, %v46_v5  ;;  %v65_v9 = vsub.s32 3, %v46_v5  ;;  %v708_v11 = vsub.s32 1, %v46_v5  ;;  %535 = vmatprep.subr.bf16.mxu0 %v534_v2 }
   0x9   :  { %v96_v16 = vsub.s32 2, %v46_v5  ;;  %v107_v19 = vsub.s32 4, %v46_v5  ;;  %v118_v26 = vsub.s32 5, %v46_v5  ;;  %v129_v33 = vsub.s32 6, %v46_v5 }
   0xa   :  { %vm69_vm1 = vcmp.ge.s32.totalorder %v51_v6, 3  ;;  %v75_v10 = vrot.slane %v44_v8, %v702_v7  ;;  %vm80_vm2 = vcmp.ge.s32.totalorder %v51_v6, 2  ;;  %v66_v13 = vrot.slane %v44_v8, %v65_v9 }
   0xb   :  { %v488_v12 = vsel %vm69_vm1, 1.0, %v623_v3  ;;  %v86_v15 = vrot.slane %v44_v8, %v708_v11  ;;  %v489_v18 = vsel %vm80_vm2, 1.0, %v623_v3  ;;  %vm91_vm3 = vcmp.ge.s32.totalorder %v51_v6, 1 }
   0xc   :  { %v76_v14 = vmul.f32 %v488_v12, %v75_v10  ;;  %v68_v17 = vld [vmem:[#allocation2 + $0x5] sm:$0xff]  ;;  %v67_v20 = vmul.f32 %v66_v13, %v696_v1  ;;  %v97_v23 = vrot.slane %v44_v8, %v96_v16  ;;  %v490_v25 = vsel %vm91_vm3, 1.0, %v623_v3  ;;  %v185_v12 = vld [vmem:[%s925_s6 + $0x30] sm:$0xff] }
   0xd   :  { %v87_v22 = vmul.f32 %v489_v18, %v86_v15  ;;  %v79_v24 = vld [vmem:[#allocation2 + $0x6] sm:$0xff]  ;;  %vm102_vm4 = vcmp.lt.s32.totalorder %v51_v6, 3  ;;  %v108_v30 = vrot.slane %v44_v8, %v107_v19  ;;  %vm113_vm5 = vcmp.lt.s32.totalorder %v51_v6, 2  ;;  %v190_v15 = vld [vmem:[%s925_s6 + $0x58] sm:$0xff]  ;;  %v189_v18 = vld [vmem:[%s925_s6 + $0x50] sm:$0xff] }
   0xe   :  { %v77_v21 = vmul.f32 %v76_v14, %v68_v17  ;;  %v98_v29 = vmul.f32 %v490_v25, %v97_v23  ;;  %v90_v31 = vld [vmem:[#allocation2 + $0x7] sm:$0xff]  ;;  %v491_v32 = vsel %vm102_vm4, 1.0, %v623_v3  ;;  %v119_v37 = vrot.slane %v44_v8, %v118_v26 }
   0xf   :  { %v88_v28 = vmul.f32 %v87_v22, %v79_v24  ;;  %v109_v36 = vmul.f32 %v491_v32, %v108_v30  ;;  %v101_v38 = vld [vmem:[#allocation2 + $0x9] sm:$0xff]  ;;  %v492_v39 = vsel %vm113_vm5, 1.0, %v623_v3  ;;  %vm124_vm6 = vcmp.lt.s32.totalorder %v51_v6, 1  ;;  %v183_v10 = vld [vmem:[%s925_s6 + $0x20] sm:$0xff] }
  0x10   :  { %v78_v27 = vadd.f32 %v77_v21, %v67_v20  ;;  %v99_v35 = vmul.f32 %v98_v29, %v90_v31  ;;  %v120_v42 = vmul.f32 %v492_v39, %v119_v37  ;;  %v130_v43 = vrot.slane %v44_v8, %v129_v33  ;;  %v112_v44 = vld [vmem:[#allocation2 + $0xa] sm:$0xff]  ;;  %v186_v8 = vld [vmem:[%s925_s6 + $0x38] sm:$0xff]  ;;  %v187_v17 = vld [vmem:[%s925_s6 + $0x40] sm:$0xff] }
  0x11   :  { %v110_v41 = vmul.f32 %v109_v36, %v101_v38  ;;  %v493_v45 = vsel %vm124_vm6, 1.0, %v623_v3  ;;  %v123_v49 = vld [vmem:[#allocation2 + $0xb] sm:$0xff]  ;;  %v179_v3 = vld [vmem:[%s925_s6] sm:$0xff]  ;;  %v540_v13 = vpack.c.bf16 %v185_v12, %v183_v10  ;;  %v544_v19 = vpack.c.bf16 %v189_v18, %v187_v17  ;;  %v194_v21 = vld [vmem:[%s925_s6 + $0x78] sm:$0xff] }
  0x12   :  { %v89_v34 = vadd.f32 %v88_v28, %v78_v27  ;;  %v121_v47 = vmul.f32 %v120_v42, %v112_v44  ;;  %v131_v48 = vmul.f32 %v493_v45, %v130_v43  ;;  %v536_v5 = vpack.c.bf16 %v181_v4, %v179_v3  ;;  %v184_v6 = vld [vmem:[%s925_s6 + $0x28] sm:$0xff]  ;;  %v191_v22 = vld [vmem:[%s925_s6 + $0x60] sm:$0xff]  ;;  %v193_v24 = vld [vmem:[%s925_s6 + $0x70] sm:$0xff] }
  0x13   :  { %v538_v9 = vpack.c.bf16 %v186_v8, %v184_v6  ;;  %v188_v14 = vld [vmem:[%s925_s6 + $0x48] sm:$0xff]  ;;  %v548_v25 = vpack.c.bf16 %v193_v24, %v191_v22  ;;  %v495_v30 = vld [vmem:[%s923_s4] ss:$0 sm:$0xff]  ;;  %v381_v42 = vld [vmem:[%s929_s10 + $0x98] sm:$0xff] }
  0x14   :  { %v100_v40 = vadd.f32 %v99_v35, %v89_v34  ;;  %v132_v51 = vmul.f32 %v131_v48, %v123_v49  ;;  %537 = vmatpush1.bf16.msra.mxu0 %v536_v5  ;;  %v542_v16 = vpack.c.bf16 %v190_v15, %v188_v14  ;;  %v192_v20 = vld [vmem:[%s925_s6 + $0x68] sm:$0xff]  ;;  %v496_v32 = vld [vmem:[%s924_s5] ss:$0 sm:$0xff]  ;;  %v364_v45 = vld [vmem:[%s929_s10 + $0x10] sm:$0xff] }
  0x15   :  { %539 = vmatprep.subr.bf16.mxu0 %v538_v9  ;;  %v546_v23 = vpack.c.bf16 %v194_v21, %v192_v20  ;;  %v378_v36 = vld [vmem:[%s929_s10 + $0x80] sm:$0xff]  ;;  %v379_v37 = vld [vmem:[%s929_s10 + $0x88] sm:$0xff] }
  0x16   :  { %v111_v46 = vadd.f32 %v110_v41, %v100_v40  ;;  %v362_v38 = vld [vmem:[%s929_s10] sm:$0xff]  ;;  %v550_v39 = vpack.c.bf16 %v379_v37, %v378_v36  ;;  %v363_v40 = vld [vmem:[%s929_s10 + $0x8] sm:$0xff]  ;;  %v380_v41 = vld [vmem:[%s929_s10 + $0x90] sm:$0xff] }
  0x17   :  { %v552_v43 = vpack.c.bf16 %v363_v40, %v362_v38  ;;  %v554_v44 = vpack.c.bf16 %v381_v42, %v380_v41  ;;  %v195_v48 = vld [vmem:[%s926_s7] sm:$0x3]  ;;  %v367_v36 = vld [vmem:[%s929_s10 + $0x28] sm:$0xff]  ;;  %v384_v38 = vld [vmem:[%s929_s10 + $0xb0] sm:$0xff] }
  0x18   :  { %v122_v50 = vadd.f32 %v121_v47, %v111_v46  ;;  %541 = vmatpush1.bf16.msra.mxu0 %v540_v13  ;;  %v365_v46 = vld [vmem:[%s929_s10 + $0x18] sm:$0xff]  ;;  %551 = vmatprep.subr.bf16.mxu1 %v550_v39  ;;  %v200_v49 = vrot.slane %v195_v48, %v702_v7  ;;  %v368_v41 = vld [vmem:[%s929_s10 + $0x30] sm:$0xff] }
  0x19   :  { %543 = vmatprep.subr.bf16.mxu0 %v542_v16  ;;  %553 = vmatpush3.bf16.msra.mxu1 %v552_v43  ;;  %v556_v47 = vpack.c.bf16 %v365_v46, %v364_v45  ;;  %v385_v39 = vld [vmem:[%s929_s10 + $0xb8] sm:$0xff]  ;;  %v387_v45 = vld [vmem:[%s929_s10 + $0xc8] sm:$0xff] }
  0x1a   :  { %v133_v52 = vadd.f32 %v132_v51, %v122_v50  ;;  %555 = vmatprep.subr.bf16.mxu1 %v554_v44  ;;  %v204_v50 = vrot.slane %v195_v48, %v708_v11  ;;  %v562_v40 = vpack.c.bf16 %v385_v39, %v384_v38  ;;  %v369_v42 = vld [vmem:[%s929_s10 + $0x38] sm:$0xff]  ;;  %v386_v44 = vld [vmem:[%s929_s10 + $0xc0] sm:$0xff]  ;;  %v371_v48 = vld [vmem:[%s929_s10 + $0x48] sm:$0xff] }
  0x1b   :  { %v564_v43 = vpack.c.bf16 %v369_v42, %v368_v41  ;;  %v566_v46 = vpack.c.bf16 %v387_v45, %v386_v44 }
  0x1c   :  { %v141_v54 = vadd.f32 %v494_v53, %v133_v52  ;;  %545 = vmatpush1.bf16.msra.mxu0 %v544_v19 }
  0x1d   :  { %547 = vmatprep.subr.bf16.mxu0 %v546_v23  ;;  %557 = vmatpush3.bf16.msra.mxu1 %v556_v47  ;;  %v370_v47 = vld [vmem:[%s929_s10 + $0x40] sm:$0xff] }
  0x20   :  { %549 = vmatpush1.bf16.msra.mxu0 %v548_v25 }
  0x83   :  { %v715_v55 = vpop.permute.xlu0 %144 }
  0x84   :  { %v147_v56 = vmul.f32 %v715_v55, %v141_v54 }
  0x86   :  { %v150_v57 = vsel %vm59_vm0, %v147_v56, 0.0 }
  0x87   :  { %151 = vadd.xlane.f32.xlu0 %v150_v57 }
 0x114   :  { %v152_v58 = vpop.xlane.xlu0 %151 }
 0x115   :  { %v154_v59 = vmul.f32 0.015625, %v152_v58 }
 0x117   :  { %v155_v60 = vsub.f32 %v147_v56, %v154_v59 }
 0x119   :  { %v156_v61 = vmul.f32 %v155_v60, %v155_v60 }
 0x11b   :  { %v157_v62 = vsel %vm59_vm0, %v156_v61, 0.0 }
 0x11c   :  { %158 = vadd.xlane.f32.xlu1 %v157_v62 }
 0x1a9   :  { %v159_v26 = vpop.xlane.xlu1 %158 }
 0x1aa   :  { %v160_v27 = vmul.f32 0.015625, %v159_v26 }
 0x1ac   :  { %v161_v28 = vadd.f32 1e-06, %v160_v27 }
 0x1ae   :  { %586 = vrsqrt.f32 %v161_v28 }
 0x1b8   :  { %v587_v29 = vpop.eup %586 }
 0x1b9   :  { %v163_v31 = vmul.f32 %v587_v29, %v155_v60 }
 0x1bb   :  { %v170_v33 = vmul.f32 %v495_v30, %v163_v31 }
 0x1bd   :  { %v177_v34 = vadd.f32 %v496_v32, %v170_v33  ;;  %v382_v32 = vld [vmem:[%s929_s10 + $0xa0] sm:$0xff]  ;;  %v383_v33 = vld [vmem:[%s929_s10 + $0xa8] sm:$0xff] }
 0x1bf   :  { %v178_v35 = vmul.f32 %v177_v34, %v715_v55  ;;  %v558_v34 = vpack.c.bf16 %v383_v33, %v382_v32 }
 0x1c1   :  { %497 = vmatmul.mubr.msk.f32.vlgmr.msra.gmra.mrb[0].mxu0 %vm59_vm0, %v178_v35  ;;  %v366_v35 = vld [vmem:[%s929_s10 + $0x20] sm:$0xff]  ;;  %559 = vmatprep.subr.bf16.mxu1 %v558_v34 }
 0x1c2   :  { %v560_v37 = vpack.c.bf16 %v367_v36, %v366_v35 }
 0x1c4   :  { %561 = vmatpush3.bf16.msra.mxu1 %v560_v37 }
 0x1c5   :  { %563 = vmatprep.subr.bf16.mxu1 %v562_v40 }
 0x1c8   :  { %565 = vmatpush3.bf16.msra.mxu1 %v564_v43 }
 0x1c9   :  { %567 = vmatprep.subr.bf16.mxu1 %v566_v46 }
 0x294   :  { %v276_v51 = vpop.f32.mrb[0].mxu0 }
 0x295   :  { %v277_v52 = vadd.f32 %v276_v51, %v200_v49  ;;  %v278_v53 = vpop.f32.mrb[1].mxu0  ;;  %v568_v49 = vpack.c.bf16 %v371_v48, %v370_v47  ;;  %v389_v51 = vld [vmem:[%s929_s10 + $0xd8] sm:$0xff] }
 0x296   :  { %v279_v54 = vadd.f32 %v278_v53, %v204_v50  ;;  %v388_v50 = vld [vmem:[%s929_s10 + $0xd0] sm:$0xff] }
 0x297   :  { %v283_v56 = vmul.f32 0.70710677, %v277_v52  ;;  %v281_v60 = vmul.f32 0.5, %v277_v52  ;;  %569 = vmatpush3.bf16.msra.mxu1 %v568_v49  ;;  %v570_v52 = vpack.c.bf16 %v389_v51, %v388_v50  ;;  %v372_v53 = vld [vmem:[%s929_s10 + $0x50] sm:$0xff] }
 0x298   :  { %v284_v57 = vmul.f32 0.70710677, %v279_v54  ;;  %v282_v62 = vmul.f32 0.5, %v279_v54  ;;  %v373_v54 = vld [vmem:[%s929_s10 + $0x58] sm:$0xff] }
 0x299   :  { %588 = verf.f32 %v283_v56  ;;  %v572_v56 = vpack.c.bf16 %v373_v54, %v372_v53  ;;  %571 = vmatprep.subr.bf16.mxu1 %v570_v52 }
 0x29a   :  { %590 = verf.f32 %v284_v57  ;;  %v390_v57 = vld [vmem:[%s929_s10 + $0xe0] sm:$0xff] }
 0x29b   :  { %573 = vmatpush3.bf16.msra.mxu1 %v572_v56 }
 0x2a3   :  { %v589_v58 = vpop.eup %588 }
 0x2a4   :  { %v591_v59 = vpop.eup %590  ;;  %v287_v61 = vadd.f32 1.0, %v589_v58  ;;  %v391_v58 = vld [vmem:[%s929_s10 + $0xe8] sm:$0xff] }
 0x2a5   :  { %v288_v63 = vadd.f32 1.0, %v591_v59  ;;  %v374_v59 = vld [vmem:[%s929_s10 + $0x60] sm:$0xff] }
 0x2a6   :  { %v289_v0 = vmul.f32 %v287_v61, %v281_v60  ;;  %v574_v60 = vpack.c.bf16 %v391_v58, %v390_v57  ;;  %v375_v61 = vld [vmem:[%s929_s10 + $0x68] sm:$0xff] }
 0x2a7   :  { %v290_v2 = vmul.f32 %v288_v63, %v282_v62  ;;  %v392_v62 = vld [vmem:[%s929_s10 + $0xf0] sm:$0xff]  ;;  %v393_v63 = vld [vmem:[%s929_s10 + $0xf8] sm:$0xff] }
 0x2a8   :  { %v806_v3 = vmul.f32 %v289_v0, %v715_v55  ;;  %v576_v0 = vpack.c.bf16 %v375_v61, %v374_v59  ;;  %575 = vmatprep.subr.bf16.mxu1 %v574_v60 }
 0x2a9   :  { %v809_v4 = vmul.f32 %v290_v2, %v715_v55  ;;  %v578_v2 = vpack.c.bf16 %v393_v63, %v392_v62 }
 0x2aa   :  { %v293_v5 = vmul.f32 %v806_v3, %v806_v3  ;;  %577 = vmatpush3.bf16.msra.mxu1 %v576_v0 }
 0x2ab   :  { %v294_v6 = vmul.f32 %v809_v4, %v809_v4  ;;  %579 = vmatprep.subr.bf16.mxu1 %v578_v2 }
 0x2ac   :  { %v295_v8 = vrot.slane %v293_v5, 4 }
 0x2ad   :  { %v301_v9 = vrot.slane %v294_v6, 4 }
 0x2ae   :  { %v296_v10 = vadd.f32 %v295_v8, %v293_v5  ;;  %v376_v5 = vld [vmem:[%s929_s10 + $0x70] sm:$0xff] }
 0x2af   :  { %v302_v12 = vadd.f32 %v301_v9, %v294_v6  ;;  %v377_v6 = vld [vmem:[%s929_s10 + $0x78] sm:$0xff]  ;;  %s624_s10 = smov [#allocation3]  }
 0x2b0   :  { %v297_v13 = vrot.slane %v296_v10, 2  ;;  %v580_v8 = vpack.c.bf16 %v377_v6, %v376_v5  ;;  %s480_s7 = sshll.u32 %s624_s10, 4  ;;  %s481_s7 = int_to_ptr.vmem [resolvable:$true] %s480_s7 }
 0x2b1   :  { %v303_v14 = vrot.slane %v302_v12, 2  ;;  %s598_s14 = scalar_lea.vmem %s481_s7, 128  ;;  %p603_p1 = scmp.lt.s32.totalorder %s481_s7, %s481_s7 }
 0x2b2   :  { %v298_v15 = vadd.f32 %v297_v13, %v296_v10  ;;  %581 = vmatpush3.bf16.msra.mxu1 %v580_v8  ;;  %v330_v13 = vld [vmem:[%s927_s8] sm:$0x3]  ;;  %p599_p0 = scmp.ne.s32.totalorder %s481_s7, %s598_s14  ;;  %p604_p2 = scmp.lt.s32.totalorder %s598_s14, %s598_s14 }
 0x2b3   :  { %v304_v16 = vadd.f32 %v303_v14, %v302_v12 }
 0x2b4   :  { %v299_v17 = vrot.slane %v298_v15, 1  ;;  %p605_p3 = por %p604_p2, %p603_p1 }
 0x2b5   :  { %v305_v18 = vrot.slane %v304_v16, 1 }
 0x2b6   :  { %v300_v19 = vadd.f32 %v299_v17, %v298_v15  ;;  %v346_v15 = vld [vmem:[%s928_s9] sm:$0x3]  ;;  %p606_p4 = pnand %p605_p3, %p599_p0 }
 0x2b7   :  { %v306_v20 = vadd.f32 %v305_v18, %v304_v16  ;;  %v337_v18 = vrot.slane %v330_v13, %v702_v7 }
 0x2b8   :  { %592 = vrsqrt.f32 %v300_v19  ;;  %vm309_vm7 = vcmp.eq.f32.partialorder %v300_v19, inf  ;;  %v312_v24 = vand.u32 2147483648, %v300_v19  ;;  %vm311_vm8 = vcmp.eq.f32.partialorder %v300_v19, 0.0 }
 0x2b9   :  { %594 = vrsqrt.f32 %v306_v20  ;;  %vm316_vm9 = vcmp.eq.f32.partialorder %v306_v20, inf  ;;  %v319_v27 = vand.u32 2147483648, %v306_v20  ;;  %vm318_vm10 = vcmp.eq.f32.partialorder %v306_v20, 0.0 }
 0x2c2   :  { %v593_v21 = vpop.eup %592 }
 0x2c3   :  { %v595_v22 = vpop.eup %594  ;;  %v308_v23 = vmul.f32 %v593_v21, %v300_v19  ;;  %v351_v21 = vrot.slane %v346_v15, %v702_v7 }
 0x2c4   :  { %v315_v25 = vmul.f32 %v595_v22, %v306_v20  ;;  %v355_v22 = vrot.slane %v346_v15, %v708_v11 }
 0x2c5   :  { %v310_v26 = vsel %vm309_vm7, %v300_v19, %v308_v23  ;;  %v341_v19 = vrot.slane %v330_v13, %v708_v11 }
 0x2c6   :  { %v313_v28 = vsel %vm311_vm8, %v312_v24, %v310_v26  ;;  %v317_v29 = vsel %vm316_vm9, %v306_v20, %v315_v25 }
 0x2c7   :  { %v320_v30 = vsel %vm318_vm10, %v319_v27, %v317_v29 }
 0x2c8   :  { %v321_v31 = vadd.f32 %v320_v30, %v313_v28 }
 0x2ca   :  { %322 = vadd.xlane.f32.xlu1 %v321_v31  ;;  %v498_v31 = vld [vmem:[%s930_s11] ss:$0 sm:$0xff] }
 0x357   :  { %v323_v9 = vpop.xlane.xlu1 %322 }
 0x358   :  { %v325_v10 = vmul.f32 0.00390625, %v323_v9 }
 0x35a   :  { %v326_v12 = vadd.f32 1e-06, %v325_v10 }
 0x35c   :  { %596 = vrcp.f32 %v326_v12 }
 0x366   :  { %v597_v14 = vpop.eup %596 }
 0x367   :  { %v328_v16 = vmul.f32 %v597_v14, %v313_v28  ;;  %v329_v17 = vmul.f32 %v597_v14, %v320_v30 }
 0x369   :  { %v332_v20 = vmul.f32 %v329_v17, %v809_v4  ;;  %v331_v23 = vmul.f32 %v328_v16, %v806_v3 }
 0x36b   :  { %v345_v24 = vmul.f32 %v341_v19, %v332_v20  ;;  %v344_v25 = vmul.f32 %v337_v18, %v331_v23 }
 0x36d   :  { %v359_v26 = vadd.f32 %v355_v22, %v345_v24  ;;  %v358_v27 = vadd.f32 %v351_v21, %v344_v25 }
 0x36f   :  { %v361_v29 = vadd.f32 %v359_v26, %v809_v4  ;;  %v360_v28 = vadd.f32 %v358_v27, %v806_v3 }
 0x371   :  { %465 = vmatprep.mubr.f32.mxu1 %v361_v29 }
 0x372   :  { %466 = vmatmul.mubr.f32.vlgmr.msra.gmra.mrb[0].mxu1 %v360_v28 }
 0x445   :  { %v531_v30 = vpop.f32.mrb[0].mxu1 }
 0x446   :  { %v532_v7 = vpop.f32.mrb[1].mxu1 }
 0x447   :  { %v533_v32 = vadd.f32 %v532_v7, %v531_v30 }
 0x449   :  { %v468_v11 = vadd.f32 %v533_v32, %v498_v31 }
 0x44b   :  { %v471_v33 = vmul.f32 %v468_v11, %v715_v55 }
 0x44d   :  { %v472_v34 = vadd.f32 %v471_v33, %v696_v1 }
 0x44f   :  { %473 = vst.msk [vmem:[#allocation3] sm:$0xff] %vm59_vm0, %v472_v34 }
 0x450   :  { %609 = shalt.err (!%p606_p4)
}
 0x451   :  { %s610_s16 = scalar_lea.hbm %s931_s12, 128 }
 0x452   :  { %p611_p5 = scmp.ne.s32.totalorder %s931_s12, %s610_s16  ;;  %p614_p6 = scmp.lt.u32.totalorder %s610_s16, %s931_s12 }
 0x454   :  { %p616_p7 = pnand %p614_p6, %p611_p5 }
 0x456   :  { %619 = shalt.err (!%p616_p7)
}
 0x457   :  { %483 = dma.vmem_to_hbm [thread:$0]  %s481_s7, 128, %s931_s12, [#allocation4]  }
 0x458   :  { %620 = dma.done.wait [#allocation4], 128  }
 0x459   :  { %621 = vsyncadd [#allocation4], 4294967168 }
 0x45a   :  { %487 = vsyncpa [#allocation4], 1 }

</bundles_post_ra>
